<compile_context>
chip_gen: v7x
topology: tpu7x:2x2x1
jax: 0.10.0
libtpu: 0.0.40
codegen_flags: <defaults>
</compile_context>

<pallas_src>
import jax
import jax.numpy as jnp
from jax.experimental import pallas as pl
from jax.experimental.pallas import tpu as pltpu


def _round_up(n, m):
    return ((n + m - 1) // m) * m


def rpn_forward(x_nchw, params, *, compute_dtype=jnp.bfloat16, row_tile=512):
    """Forward pass of RPN. x_nchw: (B, Cin, H, W) float32 (PyTorch layout).

    Returns (logits (B, A, H, W), bbox_pred (B, 4A, H, W)) matching the module.
    """
    w_conv, b_conv, w_cls, b_cls, w_box, b_box = params
    B, Cin, H, W = x_nchw.shape
    Cmid = w_conv.shape[-1]
    A = w_cls.shape[-1]
    A4 = w_box.shape[-1]

    # Lane padding: hidden channels and fused-head output -> multiples of 128.
    Cmid_pad = _round_up(Cmid, 128)
    Nout = A + A4
    Nout_pad = _round_up(Nout, 128)

    # Width (incl. conv padding) rounded to the sublane packing of the compute
    # dtype (16 rows/vreg for 2-byte types, 8 for fp32) so every slab slice and
    # store stays tile-aligned.
    sub = 16 if jnp.dtype(compute_dtype).itemsize < 4 else 8
    Wp = _round_up(W + 2, sub)

    # Row tiling: th image rows per grid step (target row_tile pixels/step).
    th = max(1, min(H, row_tile // max(W, 1)))
    nh = pl.cdiv(H, th)
    H_pad = nh * th
    N = th * Wp                      # pixel rows per step (incl. width padding)

    # ---- input prep (wrapper): cast FIRST, then pad, then halo windows -------
    x = jnp.transpose(x_nchw, (0, 2, 3, 1)).astype(compute_dtype)   # NHWC
    # conv "same" padding + extra bottom rows to H_pad + right cols to Wp.
    x = jnp.pad(x, ((0, 0), (1, 1 + H_pad - H), (1, Wp - W - 1), (0, 0)))
    # Overlapping row windows with a 2-row halo (duplicates only 2 rows/tile).
    x_halo = jnp.stack([x[:, i * th:i * th + th + 2] for i in range(nh)], axis=1)
    # Flatten (rows, width) so the kernel slab is a plain 2D (rows, Cin) tile.
    x_halo = x_halo.reshape(B, nh, (th + 2) * Wp, Cin)

    # ---- weight prep (once, outside the kernel) ------------------------------
    # Conv weights: HWIO (3,3,Cin,Cmid) -> (9, Cin, Cmid_pad), tap k = 3*ky+kx.
    w_conv_p = jnp.pad(w_conv, ((0, 0), (0, 0), (0, 0), (0, Cmid_pad - Cmid)))
    wconv_mat = w_conv_p.reshape(9, Cin, Cmid_pad).astype(compute_dtype)
    bconv_p = jnp.pad(b_conv, (0, Cmid_pad - Cmid)
                      ).reshape(1, Cmid_pad).astype(jnp.float32)
    # Fused head weights: [w_cls | w_box], zero-padded rows/cols (dead lanes).
    w_head = jnp.concatenate([w_cls, w_box], axis=1)                 # (Cmid, 5A)
    w_head = jnp.pad(w_head, ((0, Cmid_pad - Cmid), (0, Nout_pad - Nout)))
    w_head = w_head.astype(compute_dtype)
    b_head = jnp.pad(jnp.concatenate([b_cls, b_box]), (0, Nout_pad - Nout)
                     ).reshape(1, Nout_pad).astype(jnp.float32)

    # ---- fused kernel: in-VMEM 3x3 conv -> bias+ReLU -> fused 1x1 heads ------
    def kernel(x_ref, wconv_ref, bconv_ref, whead_ref, bhead_ref, out_ref):
        # x_ref:  ((th+2)*Wp, Cin) halo'd slab, row r = y*Wp + x (padded coords)
        # out_ref: (N, Nout_pad) fp32, row r = y*Wp + x of the output tile
        acc = jnp.zeros((N, Cmid_pad), jnp.float32)
        for ky in range(3):
            # Tile-aligned sublane slice (ky*Wp is a multiple of the packing).
            a = x_ref[ky * Wp:ky * Wp + N, :]                  # (N, Cin)
            for kx in range(3):
                p = jnp.dot(a, wconv_ref[3 * ky + kx],
                            preferred_element_type=jnp.float32)
                if kx:
                    # Horizontal tap: shift rows up by kx (fp32, post-matmul).
                    # Wrapped rows land in discarded width-pad columns.
                    p = jnp.concatenate([p[kx:, :], p[:kx, :]], axis=0)
                acc = acc + p
        # Bias + ReLU in fp32 on the VPU (lane-dense: Cmid_pad % 128 == 0).
        hidden = jnp.maximum(acc + bconv_ref[...], 0.0)
        # Both 1x1 heads fused into one matmul; lane-dense output store.
        out = jnp.dot(hidden.astype(whead_ref.dtype), whead_ref[...],
                      preferred_element_type=jnp.float32) + bhead_ref[...]
        out_ref[...] = out.astype(out_ref.dtype)

    # VMEM budget / cost hints.
    itemsize = jnp.dtype(compute_dtype).itemsize
    in_block = (th + 2) * Wp * Cin * itemsize
    out_block = N * Nout_pad * 4
    w_bytes = ((wconv_mat.size + w_head.size) * itemsize
               + (bconv_p.size + b_head.size) * 4)
    vmem_limit = int(min(max(4 * (2 * (in_block + out_block) + 2 * w_bytes),
                             16 * 1024 * 1024), 64 * 1024 * 1024))
    flops = int(B * nh * (2 * N * Cin * Cmid_pad * 9
                          + 2 * N * Cmid_pad * Nout_pad))
    bytes_accessed = int(x_halo.size * x_halo.dtype.itemsize + w_bytes
                         + B * nh * out_block)

    out = pl.pallas_call(
        kernel,
        out_shape=jax.ShapeDtypeStruct((B, nh, N, Nout_pad), jnp.float32),
        grid_spec=pltpu.PrefetchScalarGridSpec(
            num_scalar_prefetch=0,
            grid=(B, nh),
            in_specs=[
                pl.BlockSpec((None, None, (th + 2) * Wp, Cin),
                             lambda b, i: (b, i, 0, 0)),
                pl.BlockSpec((9, Cin, Cmid_pad), lambda b, i: (0, 0, 0)),
                pl.BlockSpec((1, Cmid_pad), lambda b, i: (0, 0)),
                pl.BlockSpec((Cmid_pad, Nout_pad), lambda b, i: (0, 0)),
                pl.BlockSpec((1, Nout_pad), lambda b, i: (0, 0)),
            ],
            out_specs=pl.BlockSpec((None, None, N, Nout_pad),
                                   lambda b, i: (b, i, 0, 0)),
        ),
        compiler_params=pltpu.CompilerParams(
            dimension_semantics=("parallel", "parallel"),
            vmem_limit_bytes=vmem_limit),
        cost_estimate=pl.CostEstimate(flops=flops, transcendentals=0,
                                      bytes_accessed=bytes_accessed),
    )(x_halo, wconv_mat, bconv_p, w_head, b_head)

    # Drop row/width/lane padding, split fused heads, back to NCHW.
    out = out.reshape(B, nh, th, Wp, Nout_pad).reshape(B, H_pad, Wp, Nout_pad)
    out = out[:, :H, :W, :]
    logits = jnp.transpose(out[..., :A], (0, 3, 1, 2))
    bbox = jnp.transpose(out[..., A:A + A4], (0, 3, 1, 2))
    return logits, bbox


def init_params(key, in_channels, mid_channels, num_anchors):
    """Deterministic synthetic init (shapes match the PyTorch module)."""
    k1, k2, k3, k4, k5, k6 = jax.random.split(key, 6)
    # conv: PyTorch weight is (Cmid, Cin, 3, 3); we store HWIO (3, 3, Cin, Cmid).
    w_conv = jax.random.normal(k1, (3, 3, in_channels, mid_channels),
                               jnp.float32) * (1.0 / jnp.sqrt(9.0 * in_channels))
    b_conv = jax.random.normal(k2, (mid_channels,), jnp.float32) * 0.01
    w_cls = jax.random.normal(k3, (mid_channels, num_anchors),
                              jnp.float32) * (1.0 / jnp.sqrt(1.0 * mid_channels))
    b_cls = jax.random.normal(k4, (num_anchors,), jnp.float32) * 0.01
    w_box = jax.random.normal(k5, (mid_channels, num_anchors * 4),
                              jnp.float32) * (1.0 / jnp.sqrt(1.0 * mid_channels))
    b_box = jax.random.normal(k6, (num_anchors * 4,), jnp.float32) * 0.01
    return (w_conv, b_conv, w_cls, b_cls, w_box, b_box)


def _reference_forward(x_nchw, params):
    """Pure-JAX reference (lax conv) for a correctness cross-check."""
    w_conv, b_conv, w_cls, b_cls, w_box, b_box = params
    h = jax.lax.conv_general_dilated(
        x_nchw, w_conv, window_strides=(1, 1), padding=((1, 1), (1, 1)),
        dimension_numbers=("NCHW", "HWIO", "NCHW"))
    h = jax.nn.relu(h + b_conv[None, :, None, None])
    logits = jnp.einsum("bchw,ca->bahw", h, w_cls) + b_cls[None, :, None, None]
    bbox = jnp.einsum("bchw,ca->bahw", h, w_box) + b_box[None, :, None, None]
    return logits, bbox


if __name__ == "__main__":
    # Small shapes consistent with the module (scaled-down channels).
    B, Cin, Cmid, A, H, W = 2, 32, 64, 9, 16, 16

    key = jax.random.PRNGKey(0)
    kx_, kp = jax.random.split(key)
    x = jax.random.normal(kx_, (B, Cin, H, W), jnp.float32)  # NCHW input
    params = init_params(kp, Cin, Cmid, A)

    ref_logits, ref_bbox = _reference_forward(x, params)

    # fp32-operand path: strict numerical check of the fused-kernel plumbing
    # (halo windows, tap shifts, padding, fused heads).
    fwd_f32 = jax.jit(lambda xx, pp: rpn_forward(xx, pp,
                                                 compute_dtype=jnp.float32))
    logits32, bbox32 = jax.block_until_ready(fwd_f32(x, params))
    assert logits32.shape == (B, A, H, W), logits32.shape
    assert bbox32.shape == (B, A * 4, H, W), bbox32.shape
    assert jnp.allclose(logits32, ref_logits, rtol=1e-3, atol=1e-3)
    assert jnp.allclose(bbox32, ref_bbox, rtol=1e-3, atol=1e-3)

    # Default optimized path: bf16 matmul operands, fp32 accumulation.
    fwd_bf16 = jax.jit(lambda xx, pp: rpn_forward(xx, pp))
    logits, bbox = jax.block_until_ready(fwd_bf16(x, params))
    assert logits.shape == (B, A, H, W), logits.shape
    assert bbox.shape == (B, A * 4, H, W), bbox.shape
    assert jnp.allclose(logits, ref_logits, rtol=3e-2, atol=3e-2)
    assert jnp.allclose(bbox, ref_bbox, rtol=3e-2, atol=3e-2)

    # TODO(synk): _generate_anchors / generate_anchors_for_feature_map are pure
    # host-side box arithmetic (no hot path); not implemented as Pallas kernels.
    print("KERNEL_OK")
</pallas_src>

<mosaic_0001>
module attributes {stable_mosaic.version = 11 : i64} {
  func.func @kernel(%arg0: i32, %arg1: i32, %arg2: memref<1x1x432x32xf32, #tpu.memory_space<vmem>>, %arg3: memref<9x32x128xf32, #tpu.memory_space<vmem>>, %arg4: memref<1x128xf32, #tpu.memory_space<vmem>>, %arg5: memref<128x128xf32, #tpu.memory_space<vmem>>, %arg6: memref<1x128xf32, #tpu.memory_space<vmem>>, %arg7: memref<1x1x384x128xf32, #tpu.memory_space<vmem>>) attributes {dimension_semantics = [#tpu.dimension_semantics<parallel>, #tpu.dimension_semantics<parallel>], iteration_bounds = array<i64: 2, 1>, scalar_prefetch = 0 : i64, scratch_operands = 0 : i64, tpu.core_type = #tpu.core_type<tc>, window_params = [{transform_indices = @transform_0, window_bounds = array<i64: 1, 1, 432, 32>}, {pipeline_mode = #tpu.pipeline_mode<synchronous>, transform_indices = @transform_1, window_bounds = array<i64: 9, 32, 128>}, {pipeline_mode = #tpu.pipeline_mode<synchronous>, transform_indices = @transform_2, window_bounds = array<i64: 1, 128>}, {pipeline_mode = #tpu.pipeline_mode<synchronous>, transform_indices = @transform_3, window_bounds = array<i64: 128, 128>}, {pipeline_mode = #tpu.pipeline_mode<synchronous>, transform_indices = @transform_4, window_bounds = array<i64: 1, 128>}, {transform_indices = @transform_5, window_bounds = array<i64: 1, 1, 384, 128>}]} {
    %cst = arith.constant 0.000000e+00 : f32
    %0 = vector.broadcast %cst : f32 to vector<384x128xf32>
    %c0 = arith.constant 0 : index
    %c0_0 = arith.constant 0 : index
    %c0_1 = arith.constant 0 : index
    %c0_2 = arith.constant 0 : index
    %1 = vector.load %arg2[%c0, %c0_0, %c0_1, %c0_2] : memref<1x1x432x32xf32, #tpu.memory_space<vmem>>, vector<1x1x384x32xf32>
    %2 = vector.shape_cast %1 : vector<1x1x384x32xf32> to vector<384x32xf32>
    %c0_3 = arith.constant 0 : index
    %c0_4 = arith.constant 0 : index
    %c0_5 = arith.constant 0 : index
    %3 = vector.load %arg3[%c0_3, %c0_4, %c0_5] : memref<9x32x128xf32, #tpu.memory_space<vmem>>, vector<1x32x128xf32>
    %4 = vector.shape_cast %3 : vector<1x32x128xf32> to vector<32x128xf32>
    %cst_6 = arith.constant dense<0.000000e+00> : vector<384x128xf32>
    %5 = tpu.matmul %2, %4, %cst_6 {dimension_numbers = #tpu.dot_dimension_numbers<[1], [0], [0], [1], [0, 0, 1, 1], [], []>} : vector<384x32xf32>, vector<32x128xf32>, vector<384x128xf32> -> vector<384x128xf32>
    %6 = arith.addf %0, %5 : vector<384x128xf32>
    %c1 = arith.constant 1 : index
    %c0_7 = arith.constant 0 : index
    %c0_8 = arith.constant 0 : index
    %7 = vector.load %arg3[%c1, %c0_7, %c0_8] : memref<9x32x128xf32, #tpu.memory_space<vmem>>, vector<1x32x128xf32>
    %8 = vector.shape_cast %7 : vector<1x32x128xf32> to vector<32x128xf32>
    %cst_9 = arith.constant dense<0.000000e+00> : vector<384x128xf32>
    %9 = tpu.matmul %2, %8, %cst_9 {dimension_numbers = #tpu.dot_dimension_numbers<[1], [0], [0], [1], [0, 0, 1, 1], [], []>} : vector<384x32xf32>, vector<32x128xf32>, vector<384x128xf32> -> vector<384x128xf32>
    %10 = vector.extract_strided_slice %9 {offsets = [1, 0], sizes = [383, 128], strides = [1, 1]} : vector<384x128xf32> to vector<383x128xf32>
    %11 = vector.extract_strided_slice %9 {offsets = [0, 0], sizes = [1, 128], strides = [1, 1]} : vector<384x128xf32> to vector<1x128xf32>
    %12 = tpu.concatenate %10, %11 in 0 : vector<383x128xf32>, vector<1x128xf32> -> vector<384x128xf32>
    %13 = arith.addf %6, %12 : vector<384x128xf32>
    %c2 = arith.constant 2 : index
    %c0_10 = arith.constant 0 : index
    %c0_11 = arith.constant 0 : index
    %14 = vector.load %arg3[%c2, %c0_10, %c0_11] : memref<9x32x128xf32, #tpu.memory_space<vmem>>, vector<1x32x128xf32>
    %15 = vector.shape_cast %14 : vector<1x32x128xf32> to vector<32x128xf32>
    %cst_12 = arith.constant dense<0.000000e+00> : vector<384x128xf32>
    %16 = tpu.matmul %2, %15, %cst_12 {dimension_numbers = #tpu.dot_dimension_numbers<[1], [0], [0], [1], [0, 0, 1, 1], [], []>} : vector<384x32xf32>, vector<32x128xf32>, vector<384x128xf32> -> vector<384x128xf32>
    %17 = vector.extract_strided_slice %16 {offsets = [2, 0], sizes = [382, 128], strides = [1, 1]} : vector<384x128xf32> to vector<382x128xf32>
    %18 = vector.extract_strided_slice %16 {offsets = [0, 0], sizes = [2, 128], strides = [1, 1]} : vector<384x128xf32> to vector<2x128xf32>
    %19 = tpu.concatenate %17, %18 in 0 : vector<382x128xf32>, vector<2x128xf32> -> vector<384x128xf32>
    %20 = arith.addf %13, %19 : vector<384x128xf32>
    %c0_13 = arith.constant 0 : index
    %c0_14 = arith.constant 0 : index
    %c24 = arith.constant 24 : index
    %c0_15 = arith.constant 0 : index
    %21 = vector.load %arg2[%c0_13, %c0_14, %c24, %c0_15] : memref<1x1x432x32xf32, #tpu.memory_space<vmem>>, vector<1x1x384x32xf32>
    %22 = vector.shape_cast %21 : vector<1x1x384x32xf32> to vector<384x32xf32>
    %c3 = arith.constant 3 : index
    %c0_16 = arith.constant 0 : index
    %c0_17 = arith.constant 0 : index
    %23 = vector.load %arg3[%c3, %c0_16, %c0_17] : memref<9x32x128xf32, #tpu.memory_space<vmem>>, vector<1x32x128xf32>
    %24 = vector.shape_cast %23 : vector<1x32x128xf32> to vector<32x128xf32>
    %cst_18 = arith.constant dense<0.000000e+00> : vector<384x128xf32>
    %25 = tpu.matmul %22, %24, %cst_18 {dimension_numbers = #tpu.dot_dimension_numbers<[1], [0], [0], [1], [0, 0, 1, 1], [], []>} : vector<384x32xf32>, vector<32x128xf32>, vector<384x128xf32> -> vector<384x128xf32>
    %26 = arith.addf %20, %25 : vector<384x128xf32>
    %c4 = arith.constant 4 : index
    %c0_19 = arith.constant 0 : index
    %c0_20 = arith.constant 0 : index
    %27 = vector.load %arg3[%c4, %c0_19, %c0_20] : memref<9x32x128xf32, #tpu.memory_space<vmem>>, vector<1x32x128xf32>
    %28 = vector.shape_cast %27 : vector<1x32x128xf32> to vector<32x128xf32>
    %cst_21 = arith.constant dense<0.000000e+00> : vector<384x128xf32>
    %29 = tpu.matmul %22, %28, %cst_21 {dimension_numbers = #tpu.dot_dimension_numbers<[1], [0], [0], [1], [0, 0, 1, 1], [], []>} : vector<384x32xf32>, vector<32x128xf32>, vector<384x128xf32> -> vector<384x128xf32>
    %30 = vector.extract_strided_slice %29 {offsets = [1, 0], sizes = [383, 128], strides = [1, 1]} : vector<384x128xf32> to vector<383x128xf32>
    %31 = vector.extract_strided_slice %29 {offsets = [0, 0], sizes = [1, 128], strides = [1, 1]} : vector<384x128xf32> to vector<1x128xf32>
    %32 = tpu.concatenate %30, %31 in 0 : vector<383x128xf32>, vector<1x128xf32> -> vector<384x128xf32>
    %33 = arith.addf %26, %32 : vector<384x128xf32>
    %c5 = arith.constant 5 : index
    %c0_22 = arith.constant 0 : index
    %c0_23 = arith.constant 0 : index
    %34 = vector.load %arg3[%c5, %c0_22, %c0_23] : memref<9x32x128xf32, #tpu.memory_space<vmem>>, vector<1x32x128xf32>
    %35 = vector.shape_cast %34 : vector<1x32x128xf32> to vector<32x128xf32>
    %cst_24 = arith.constant dense<0.000000e+00> : vector<384x128xf32>
    %36 = tpu.matmul %22, %35, %cst_24 {dimension_numbers = #tpu.dot_dimension_numbers<[1], [0], [0], [1], [0, 0, 1, 1], [], []>} : vector<384x32xf32>, vector<32x128xf32>, vector<384x128xf32> -> vector<384x128xf32>
    %37 = vector.extract_strided_slice %36 {offsets = [2, 0], sizes = [382, 128], strides = [1, 1]} : vector<384x128xf32> to vector<382x128xf32>
    %38 = vector.extract_strided_slice %36 {offsets = [0, 0], sizes = [2, 128], strides = [1, 1]} : vector<384x128xf32> to vector<2x128xf32>
    %39 = tpu.concatenate %37, %38 in 0 : vector<382x128xf32>, vector<2x128xf32> -> vector<384x128xf32>
    %40 = arith.addf %33, %39 : vector<384x128xf32>
    %c0_25 = arith.constant 0 : index
    %c0_26 = arith.constant 0 : index
    %c48 = arith.constant 48 : index
    %c0_27 = arith.constant 0 : index
    %41 = vector.load %arg2[%c0_25, %c0_26, %c48, %c0_27] : memref<1x1x432x32xf32, #tpu.memory_space<vmem>>, vector<1x1x384x32xf32>
    %42 = vector.shape_cast %41 : vector<1x1x384x32xf32> to vector<384x32xf32>
    %c6 = arith.constant 6 : index
    %c0_28 = arith.constant 0 : index
    %c0_29 = arith.constant 0 : index
    %43 = vector.load %arg3[%c6, %c0_28, %c0_29] : memref<9x32x128xf32, #tpu.memory_space<vmem>>, vector<1x32x128xf32>
    %44 = vector.shape_cast %43 : vector<1x32x128xf32> to vector<32x128xf32>
    %cst_30 = arith.constant dense<0.000000e+00> : vector<384x128xf32>
    %45 = tpu.matmul %42, %44, %cst_30 {dimension_numbers = #tpu.dot_dimension_numbers<[1], [0], [0], [1], [0, 0, 1, 1], [], []>} : vector<384x32xf32>, vector<32x128xf32>, vector<384x128xf32> -> vector<384x128xf32>
    %46 = arith.addf %40, %45 : vector<384x128xf32>
    %c7 = arith.constant 7 : index
    %c0_31 = arith.constant 0 : index
    %c0_32 = arith.constant 0 : index
    %47 = vector.load %arg3[%c7, %c0_31, %c0_32] : memref<9x32x128xf32, #tpu.memory_space<vmem>>, vector<1x32x128xf32>
    %48 = vector.shape_cast %47 : vector<1x32x128xf32> to vector<32x128xf32>
    %cst_33 = arith.constant dense<0.000000e+00> : vector<384x128xf32>
    %49 = tpu.matmul %42, %48, %cst_33 {dimension_numbers = #tpu.dot_dimension_numbers<[1], [0], [0], [1], [0, 0, 1, 1], [], []>} : vector<384x32xf32>, vector<32x128xf32>, vector<384x128xf32> -> vector<384x128xf32>
    %50 = vector.extract_strided_slice %49 {offsets = [1, 0], sizes = [383, 128], strides = [1, 1]} : vector<384x128xf32> to vector<383x128xf32>
    %51 = vector.extract_strided_slice %49 {offsets = [0, 0], sizes = [1, 128], strides = [1, 1]} : vector<384x128xf32> to vector<1x128xf32>
    %52 = tpu.concatenate %50, %51 in 0 : vector<383x128xf32>, vector<1x128xf32> -> vector<384x128xf32>
    %53 = arith.addf %46, %52 : vector<384x128xf32>
    %c8 = arith.constant 8 : index
    %c0_34 = arith.constant 0 : index
    %c0_35 = arith.constant 0 : index
    %54 = vector.load %arg3[%c8, %c0_34, %c0_35] : memref<9x32x128xf32, #tpu.memory_space<vmem>>, vector<1x32x128xf32>
    %55 = vector.shape_cast %54 : vector<1x32x128xf32> to vector<32x128xf32>
    %cst_36 = arith.constant dense<0.000000e+00> : vector<384x128xf32>
    %56 = tpu.matmul %42, %55, %cst_36 {dimension_numbers = #tpu.dot_dimension_numbers<[1], [0], [0], [1], [0, 0, 1, 1], [], []>} : vector<384x32xf32>, vector<32x128xf32>, vector<384x128xf32> -> vector<384x128xf32>
    %57 = vector.extract_strided_slice %56 {offsets = [2, 0], sizes = [382, 128], strides = [1, 1]} : vector<384x128xf32> to vector<382x128xf32>
    %58 = vector.extract_strided_slice %56 {offsets = [0, 0], sizes = [2, 128], strides = [1, 1]} : vector<384x128xf32> to vector<2x128xf32>
    %59 = tpu.concatenate %57, %58 in 0 : vector<382x128xf32>, vector<2x128xf32> -> vector<384x128xf32>
    %60 = arith.addf %53, %59 : vector<384x128xf32>
    %c0_37 = arith.constant 0 : index
    %c0_38 = arith.constant 0 : index
    %61 = vector.load %arg4[%c0_37, %c0_38] : memref<1x128xf32, #tpu.memory_space<vmem>>, vector<1x128xf32>
    %62 = vector.broadcast %61 : vector<1x128xf32> to vector<384x128xf32>
    %63 = arith.addf %60, %62 : vector<384x128xf32>
    %cst_39 = arith.constant 0.000000e+00 : f32
    %64 = vector.broadcast %cst_39 : f32 to vector<384x128xf32>
    %65 = arith.maximumf %63, %64 : vector<384x128xf32>
    %c0_40 = arith.constant 0 : index
    %c0_41 = arith.constant 0 : index
    %66 = vector.load %arg5[%c0_40, %c0_41] : memref<128x128xf32, #tpu.memory_space<vmem>>, vector<128x128xf32>
    %cst_42 = arith.constant dense<0.000000e+00> : vector<384x128xf32>
    %67 = tpu.matmul %65, %66, %cst_42 {dimension_numbers = #tpu.dot_dimension_numbers<[1], [0], [0], [1], [0, 0, 1, 1], [], []>} : vector<384x128xf32>, vector<128x128xf32>, vector<384x128xf32> -> vector<384x128xf32>
    %c0_43 = arith.constant 0 : index
    %c0_44 = arith.constant 0 : index
    %68 = vector.load %arg6[%c0_43, %c0_44] : memref<1x128xf32, #tpu.memory_space<vmem>>, vector<1x128xf32>
    %69 = vector.broadcast %68 : vector<1x128xf32> to vector<384x128xf32>
    %70 = arith.addf %67, %69 : vector<384x128xf32>
    %c0_45 = arith.constant 0 : index
    %c0_46 = arith.constant 0 : index
    %c0_47 = arith.constant 0 : index
    %c0_48 = arith.constant 0 : index
    %71 = vector.load %arg7[%c0_45, %c0_46, %c0_47, %c0_48] : memref<1x1x384x128xf32, #tpu.memory_space<vmem>>, vector<1x1x384x128xf32>
    %72 = vector.shape_cast %71 : vector<1x1x384x128xf32> to vector<384x128xf32>
    %73 = vector.shape_cast %70 : vector<384x128xf32> to vector<1x1x384x128xf32>
    tpu.vector_store %arg7[%c0_45, %c0_46, %c0_47, %c0_48], %73 {strides = array<i32>} : memref<1x1x384x128xf32, #tpu.memory_space<vmem>>, vector<1x1x384x128xf32>,
    return
  }
  func.func @transform_0(%arg0: i32, %arg1: i32) -> (i32, i32, i32, i32) {
    %c0_i32 = arith.constant 0 : i32
    %c0_i32_0 = arith.constant 0 : i32
    %c0_i32_1 = arith.constant 0 : i32
    return %arg0, %arg1, %c0_i32, %c0_i32_0 : i32, i32, i32, i32
  }
  func.func @transform_1(%arg0: i32, %arg1: i32) -> (i32, i32, i32) {
    %c0_i32 = arith.constant 0 : i32
    %c0_i32_0 = arith.constant 0 : i32
    %c0_i32_1 = arith.constant 0 : i32
    %c0_i32_2 = arith.constant 0 : i32
    return %c0_i32, %c0_i32_0, %c0_i32_1 : i32, i32, i32
  }
  func.func @transform_2(%arg0: i32, %arg1: i32) -> (i32, i32) {
    %c0_i32 = arith.constant 0 : i32
    %c0_i32_0 = arith.constant 0 : i32
    %c0_i32_1 = arith.constant 0 : i32
    return %c0_i32, %c0_i32_0 : i32, i32
  }
  func.func @transform_3(%arg0: i32, %arg1: i32) -> (i32, i32) {
    %c0_i32 = arith.constant 0 : i32
    %c0_i32_0 = arith.constant 0 : i32
    %c0_i32_1 = arith.constant 0 : i32
    return %c0_i32, %c0_i32_0 : i32, i32
  }
  func.func @transform_4(%arg0: i32, %arg1: i32) -> (i32, i32) {
    %c0_i32 = arith.constant 0 : i32
    %c0_i32_0 = arith.constant 0 : i32
    %c0_i32_1 = arith.constant 0 : i32
    return %c0_i32, %c0_i32_0 : i32, i32
  }
  func.func @transform_5(%arg0: i32, %arg1: i32) -> (i32, i32, i32, i32) {
    %c0_i32 = arith.constant 0 : i32
    %c0_i32_0 = arith.constant 0 : i32
    %c0_i32_1 = arith.constant 0 : i32
    return %arg0, %arg1, %c0_i32, %c0_i32_0 : i32, i32, i32, i32
  }
}

</mosaic_0001>

<bundles_post_ra>
// kernel: _lambda_.1
= control target key start
LH: loop header
LB: loop body
LE: loop exit
PB: predicated region body
PF: predicated region fallthrough
CT: control target
= control target key end

     0   :  { %s7997_s18 = smov 0   ;;  %s7999_s19 = smov 0   ;;  %s10439_s0 = inlined_call_operand.vmem [shape: f32[2,1,432,32], index: 0, kind: input, shape index: {}]   ;;  %s10440_s1 = inlined_call_operand.vmem [shape: f32[9,32,128], index: 1, kind: input, shape index: {}]   ;;  %s10441_s2 = inlined_call_operand.vmem [shape: f32[1,128], index: 2, kind: input, shape index: {}]   ;;  %s10442_s3 = inlined_call_operand.vmem [shape: f32[128,128], index: 3, kind: input, shape index: {}]   ;;  %s10443_s4 = inlined_call_operand.vmem [shape: f32[1,128], index: 4, kind: input, shape index: {}]   ;;  %s10444_s5 = inlined_call_operand.vmem [shape: f32[2,1,384,128], index: 5, kind: output, shape index: {}]  }
   0x1   :  { %s8001_s20 = smov 0  }
   0x2 LB: > { %s27_s21 = sadd.s32 1, %s7961_s19  ;;  %p5698_p0 = scmp.ge.s32.totalorder %s7965_s20, 1  ;;  %s7965_s20 = sphi %s8001_s20, %s15_s20   ;;  %s7961_s19 = sphi %s7999_s19, %s10598_s19   ;;  %s7957_s18 = sphi %s7997_s18, %s10597_s18  }
   0x3   : > { %p29_p1 = scmp.ge.s32.totalorder %s27_s21, 2  ;;  %p207_p2 = scmp.lt.s32.totalorder %s7965_s20, 3 }
   0x5   : > { %s10600_s21 = smov (%p29_p1, %s27_s21), 0  ;;  %p208_p3 = pnand %p5698_p0, %p207_p2 }
   0x7   : > { %211 = sbr.rel (%p208_p3) target bundleno = 943 (0x3af), region = 40 }
   0xe   : > { %v5701_v0 = vld [vmem:[%s10440_s1 + $0x20] sm:$0xff]  ;;  %v5702_v1 = vld [vmem:[%s10440_s1 + $0x28] sm:$0xff]  ;;  %p243_p4 = scmp.lt.s32.totalorder %s7957_s18, 1  ;;  %v5703_v5 = vld [vmem:[%s10440_s1 + $0x30] sm:$0xff]  ;;  %vm318_vm0 = vcmask 261120   ;;  %vm816_vm1 = vcmask 1046528  }
   0xf   : > { %v309_v2 = vld [vmem:[%s10440_s1] sm:$0xff]  ;;  %v7525_v3 = vpack.c.bf16 %v5702_v1, %v5701_v0  ;;  %v310_v4 = vld [vmem:[%s10440_s1 + $0x8] sm:$0xff]  ;;  %v5704_v6 = vld [vmem:[%s10440_s1 + $0x38] sm:$0xff]  ;;  %vm1625_vm2 = vcmask 1045504  }
  0x10   : > { %v7533_v7 = vpack.c.bf16 %v310_v4, %v309_v2  ;;  %v7529_v8 = vpack.c.bf16 %v5704_v6, %v5703_v5  ;;  %v311_v9 = vld [vmem:[%s10440_s1 + $0x10] sm:$0xff]  ;;  %v312_v10 = vld [vmem:[%s10440_s1 + $0x18] sm:$0xff]  ;;  %s10602_s18 = smov (!%p243_p4, %s7957_s18), 1  ;;  %v5801_v12 = vld [vmem:[%s10440_s1 + $0x40] sm:$0xff] }
  0x11   : > { %7526 = vmatprep.subr.bf16.mxu0 %v7525_v3  ;;  %v7537_v11 = vpack.c.bf16 %v312_v10, %v311_v9  ;;  %v5802_v13 = vld [vmem:[%s10440_s1 + $0x48] sm:$0xff]  ;;  %s7917_s17 = smul.u32 432, %s10602_s18  ;;  %v5853_v14 = vld [vmem:[%s10440_s1 + $0x60] sm:$0xff]  ;;  %v5803_v19 = vld [vmem:[%s10440_s1 + $0x50] sm:$0xff] }
  0x12   : > { %7534 = vmatprep.subr.bf16.mxu1 %v7533_v7  ;;  %7528 = vmatpush3.bf16.msra.mxu0 %v7525_v3  ;;  %v5854_v15 = vld [vmem:[%s10440_s1 + $0x68] sm:$0xff]  ;;  %v7541_v16 = vpack.c.bf16 %v5802_v13, %v5801_v12  ;;  %v5804_v20 = vld [vmem:[%s10440_s1 + $0x58] sm:$0xff]  ;;  %v5855_v22 = vld [vmem:[%s10440_s1 + $0x70] sm:$0xff]  ;;  %s7918_s29 = smul.u32 384, %s10602_s18 }
  0x13   : > { %7536 = vmatpush3.bf16.msra.mxu1 %v7533_v7  ;;  %7530 = vmatprep.subr.bf16.mxu0 %v7529_v8  ;;  %s8057_s28 = scalar_lea.vmem %s10439_s0, %s7917_s17  ;;  %v7549_v17 = vpack.c.bf16 %v5854_v15, %v5853_v14  ;;  %v5856_v23 = vld [vmem:[%s10440_s1 + $0x78] sm:$0xff]  ;;  %v7545_v25 = vpack.c.bf16 %v5804_v20, %v5803_v19  ;;  %v5905_v27 = vld [vmem:[%s10440_s1 + $0x80] sm:$0xff]  ;;  %v5906_v28 = vld [vmem:[%s10440_s1 + $0x88] sm:$0xff] }
  0x14   : > { %7538 = vmatprep.subr.bf16.mxu1 %v7537_v11  ;;  %v8060_v18 = vld [vmem:[%s8057_s28] sm:$0xff]  ;;  %v8071_v21 = vld [vmem:[%s8057_s28 + $0x8] sm:$0xff]  ;;  %v8082_v24 = vld [vmem:[%s8057_s28 + $0x10] sm:$0xff]  ;;  %v7553_v26 = vpack.c.bf16 %v5856_v23, %v5855_v22  ;;  %v8104_v31 = vpack.c.bf16 %v5906_v28, %v5905_v27  ;;  %s10332_s9 = scalar_lea.vmem %s10444_s5, %s7918_s29 }
  0x15   : > { %6709 = vmatprep.mubr.msk.f32.mxu0 %vm318_vm0, %v8060_v18  ;;  %6789 = vmatprep.mubr.msk.f32.mxu1 %vm318_vm0, %v8060_v18  ;;  %v8095_v29 = vld [vmem:[%s8057_s28 + $0x18] sm:$0xff]  ;;  %v8102_v30 = vld [vmem:[%s8057_s28 + $0x20] sm:$0xff]  ;;  %v8113_v32 = vld [vmem:[%s8057_s28 + $0x28] sm:$0xff] }
  0x16   : > { %7532 = vmatpush3.bf16.msra.mxu0 %v7529_v8  ;;  %v8118_v33 = vld [vmem:[%s8057_s28 + $0x30] sm:$0xff]  ;;  %v8128_v34 = vld [vmem:[%s8057_s28 + $0x38] sm:$0xff]  ;;  %v8133_v35 = vld [vmem:[%s8057_s28 + $0x40] sm:$0xff] }
  0x17   : > { %7540 = vmatpush3.bf16.msra.mxu1 %v7537_v11  ;;  %7542 = vmatprep.subr.bf16.mxu0 %v7541_v16  ;;  %v8142_v36 = vld [vmem:[%s8057_s28 + $0x48] sm:$0xff]  ;;  %v8147_v37 = vld [vmem:[%s8057_s28 + $0x50] sm:$0xff]  ;;  %v8156_v38 = vld [vmem:[%s8057_s28 + $0x58] sm:$0xff] }
  0x18   : > { %7550 = vmatprep.subr.bf16.mxu1 %v7549_v17  ;;  %v8161_v39 = vld [vmem:[%s8057_s28 + $0x60] sm:$0xff]  ;;  %v8170_v40 = vld [vmem:[%s8057_s28 + $0x68] sm:$0xff]  ;;  %v8175_v41 = vld [vmem:[%s8057_s28 + $0x70] sm:$0xff] }
  0x19   : > { %6710 = vmatmul.mubr.msk.f32.vlgmr.msra.gmra.mrb[0].mxu0 %vm318_vm0, %v8071_v21  ;;  %v8184_v42 = vld [vmem:[%s8057_s28 + $0x78] sm:$0xff]  ;;  %v8189_v43 = vld [vmem:[%s8057_s28 + $0x80] sm:$0xff]  ;;  %v8198_v44 = vld [vmem:[%s8057_s28 + $0x88] sm:$0xff] }
  0x1a   : > { %6790 = vmatmul.mubr.msk.f32.vlgmr.msra.gmra.mrb[0].mxu1 %vm318_vm0, %v8071_v21  ;;  %7544 = vmatpush3.bf16.msra.mxu0 %v7541_v16  ;;  %v8203_v45 = vld [vmem:[%s8057_s28 + $0x90] sm:$0xff]  ;;  %v8212_v46 = vld [vmem:[%s8057_s28 + $0x98] sm:$0xff]  ;;  %v8217_v47 = vld [vmem:[%s8057_s28 + $0xa0] sm:$0xff] }
  0x1b   : > { %6712 = vmatprep.mubr.msk.f32.mxu0 %vm318_vm0, %v8082_v24  ;;  %6792 = vmatprep.mubr.msk.f32.mxu1 %vm318_vm0, %v8082_v24  ;;  %v8226_v48 = vld [vmem:[%s8057_s28 + $0xa8] sm:$0xff]  ;;  %v8231_v49 = vld [vmem:[%s8057_s28 + $0xb0] sm:$0xff]  ;;  %v8240_v50 = vld [vmem:[%s8057_s28 + $0xb8] sm:$0xff] }
  0x1c   : > { %7546 = vmatprep.subr.bf16.mxu0 %v7545_v25  ;;  %7552 = vmatpush3.bf16.msra.mxu1 %v7549_v17  ;;  %v8245_v51 = vld [vmem:[%s8057_s28 + $0xc0] sm:$0xff]  ;;  %v8254_v52 = vld [vmem:[%s8057_s28 + $0xc8] sm:$0xff]  ;;  %v8259_v53 = vld [vmem:[%s8057_s28 + $0xd0] sm:$0xff] }
  0x1d   : > { %6713 = vmatmul.mubr.msk.f32.gmra.mrb[2].mxu0 %vm318_vm0, %v8095_v29  ;;  %7554 = vmatprep.subr.bf16.mxu1 %v7553_v26  ;;  %v8268_v54 = vld [vmem:[%s8057_s28 + $0xd8] sm:$0xff]  ;;  %v8273_v55 = vld [vmem:[%s8057_s28 + $0xe0] sm:$0xff]  ;;  %v8282_v56 = vld [vmem:[%s8057_s28 + $0xe8] sm:$0xff] }
  0x1e   : > { %6793 = vmatmul.mubr.msk.f32.gmra.mrb[2].mxu1 %vm318_vm0, %v8095_v29  ;;  %6715 = vmatprep.mubr.msk.f32.mxu0 %vm318_vm0, %v8102_v30  ;;  %v8287_v57 = vld [vmem:[%s8057_s28 + $0xf0] sm:$0xff]  ;;  %v5957_v58 = vld [vmem:[%s10440_s1 + $0xa0] sm:$0xff]  ;;  %v5958_v59 = vld [vmem:[%s10440_s1 + $0xa8] sm:$0xff] }
  0x1f   : > { %6795 = vmatprep.mubr.msk.f32.mxu1 %vm318_vm0, %v8102_v30  ;;  %7548 = vmatpush3.bf16.msra.mxu0 %v7545_v25  ;;  %v8295_v60 = vpack.c.bf16 %v5958_v59, %v5957_v58  ;;  %v8304_v61 = vld [vmem:[%s8057_s28 + $0xf8] sm:$0xff]  ;;  %v8309_v62 = vld [vmem:[%s8057_s28 + $0x100] sm:$0xff]  ;;  %v8319_v63 = vld [vmem:[%s8057_s28 + $0x108] sm:$0xff] }
  0x20   : > { %7556 = vmatpush3.bf16.msra.mxu1 %v7553_v26  ;;  %7558 = vmatprep.subr.bf16.mxu0 %v8104_v31  ;;  %v8324_v0 = vld [vmem:[%s8057_s28 + $0x110] sm:$0xff]  ;;  %v8333_v1 = vld [vmem:[%s8057_s28 + $0x118] sm:$0xff]  ;;  %v8338_v2 = vld [vmem:[%s8057_s28 + $0x120] sm:$0xff] }
  0x21   : > { %6716 = vmatmul.mubr.msk.f32.gmra.mrb[4].mxu0 %vm318_vm0, %v8113_v32  ;;  %7566 = vmatprep.subr.bf16.mxu1 %v8295_v60  ;;  %v8347_v3 = vld [vmem:[%s8057_s28 + $0x128] sm:$0xff]  ;;  %v8352_v4 = vld [vmem:[%s8057_s28 + $0x130] sm:$0xff]  ;;  %v8361_v5 = vld [vmem:[%s8057_s28 + $0x138] sm:$0xff] }
  0x22   : > { %6796 = vmatmul.mubr.msk.f32.gmra.mrb[4].mxu1 %vm318_vm0, %v8113_v32  ;;  %6718 = vmatprep.mubr.msk.f32.mxu0 %vm318_vm0, %v8118_v33  ;;  %v8366_v6 = vld [vmem:[%s8057_s28 + $0x140] sm:$0xff]  ;;  %v8375_v7 = vld [vmem:[%s8057_s28 + $0x148] sm:$0xff]  ;;  %v8380_v8 = vld [vmem:[%s8057_s28 + $0x150] sm:$0xff] }
  0x23   : > { %6798 = vmatprep.mubr.msk.f32.mxu1 %vm318_vm0, %v8118_v33  ;;  %v8389_v9 = vld [vmem:[%s8057_s28 + $0x158] sm:$0xff]  ;;  %v8394_v10 = vld [vmem:[%s8057_s28 + $0x160] sm:$0xff]  ;;  %v8403_v11 = vld [vmem:[%s8057_s28 + $0x168] sm:$0xff] }
  0x24   : > { %v8408_v12 = vld [vmem:[%s8057_s28 + $0x170] sm:$0xff]  ;;  %v8417_v13 = vld [vmem:[%s8057_s28 + $0x178] sm:$0xff]  ;;  %v6062_v22 = vld [vmem:[%s10440_s1 + $0xe8] sm:$0xff] }
  0x25   : > { %6719 = vmatmul.mubr.msk.f32.gmra.mrb[6].mxu0 %vm318_vm0, %v8128_v34  ;;  %v5907_v14 = vld [vmem:[%s10440_s1 + $0x90] sm:$0xff]  ;;  %v5908_v15 = vld [vmem:[%s10440_s1 + $0x98] sm:$0xff]  ;;  %v6009_v23 = vld [vmem:[%s10440_s1 + $0xc0] sm:$0xff] }
  0x26   : > { %6799 = vmatmul.mubr.msk.f32.gmra.mrb[6].mxu1 %vm318_vm0, %v8128_v34  ;;  %6721 = vmatprep.mubr.msk.f32.mxu0 %vm318_vm0, %v8133_v35  ;;  %v5959_v16 = vld [vmem:[%s10440_s1 + $0xb0] sm:$0xff]  ;;  %v5960_v17 = vld [vmem:[%s10440_s1 + $0xb8] sm:$0xff]  ;;  %v7561_v19 = vpack.c.bf16 %v5908_v15, %v5907_v14  ;;  %v8635_v26 = vld [vmem:[%s8057_s28 + $0x180] sm:$0xff] }
  0x27   : > { %6801 = vmatprep.mubr.msk.f32.mxu1 %vm318_vm0, %v8133_v35  ;;  %v7569_v20 = vpack.c.bf16 %v5960_v17, %v5959_v16  ;;  %v8638_v27 = vld [vmem:[%s8057_s28 + $0x188] sm:$0xff]  ;;  %v8649_v28 = vld [vmem:[%s8057_s28 + $0x190] sm:$0xff]  ;;  %v6064_v58 = vld [vmem:[%s10440_s1 + $0xf8] sm:$0xff] }
  0x28   : > { %v6011_v59 = vld [vmem:[%s10440_s1 + $0xd0] sm:$0xff]  ;;  %v6113_v16 = vld [vmem:[%s10440_s1 + $0x100] sm:$0xff]  ;;  %v6114_v17 = vld [vmem:[%s10440_s1 + $0x108] sm:$0xff] }
  0x29   : > { %6722 = vmatmul.mubr.msk.f32.gmra.mrb[8].mxu0 %vm318_vm0, %v8142_v36 }
  0x2a   : > { %6802 = vmatmul.mubr.msk.f32.gmra.mrb[8].mxu1 %vm318_vm0, %v8142_v36  ;;  %6724 = vmatprep.mubr.msk.f32.mxu0 %vm318_vm0, %v8147_v37 }
  0x2b   : > { %6804 = vmatprep.mubr.msk.f32.mxu1 %vm318_vm0, %v8147_v37 }
  0x2d   : > { %6725 = vmatmul.mubr.msk.f32.gmra.mrb[10].mxu0 %vm318_vm0, %v8156_v38 }
  0x2e   : > { %6805 = vmatmul.mubr.msk.f32.gmra.mrb[10].mxu1 %vm318_vm0, %v8156_v38  ;;  %6727 = vmatprep.mubr.msk.f32.mxu0 %vm318_vm0, %v8161_v39 }
  0x2f   : > { %6807 = vmatprep.mubr.msk.f32.mxu1 %vm318_vm0, %v8161_v39 }
  0x31   : > { %6728 = vmatmul.mubr.msk.f32.gmra.mrb[12].mxu0 %vm318_vm0, %v8170_v40 }
  0x32   : > { %6808 = vmatmul.mubr.msk.f32.gmra.mrb[12].mxu1 %vm318_vm0, %v8170_v40  ;;  %6730 = vmatprep.mubr.msk.f32.mxu0 %vm318_vm0, %v8175_v41 }
  0x33   : > { %6810 = vmatprep.mubr.msk.f32.mxu1 %vm318_vm0, %v8175_v41 }
  0x35   : > { %6731 = vmatmul.mubr.msk.f32.gmra.mrb[14].mxu0 %vm318_vm0, %v8184_v42 }
  0x36   : > { %6811 = vmatmul.mubr.msk.f32.gmra.mrb[14].mxu1 %vm318_vm0, %v8184_v42  ;;  %6733 = vmatprep.mubr.msk.f32.mxu0 %vm318_vm0, %v8189_v43 }
  0x37   : > { %6813 = vmatprep.mubr.msk.f32.mxu1 %vm318_vm0, %v8189_v43 }
  0x39   : > { %6734 = vmatmul.mubr.msk.f32.gmra.mrb[16].mxu0 %vm318_vm0, %v8198_v44 }
  0x3a   : > { %6814 = vmatmul.mubr.msk.f32.gmra.mrb[16].mxu1 %vm318_vm0, %v8198_v44  ;;  %6736 = vmatprep.mubr.msk.f32.mxu0 %vm318_vm0, %v8203_v45 }
  0x3b   : > { %6816 = vmatprep.mubr.msk.f32.mxu1 %vm318_vm0, %v8203_v45 }
  0x3d   : > { %6737 = vmatmul.mubr.msk.f32.gmra.mrb[18].mxu0 %vm318_vm0, %v8212_v46 }
  0x3e   : > { %6817 = vmatmul.mubr.msk.f32.gmra.mrb[18].mxu1 %vm318_vm0, %v8212_v46  ;;  %6739 = vmatprep.mubr.msk.f32.mxu0 %vm318_vm0, %v8217_v47 }
  0x3f   : > { %6819 = vmatprep.mubr.msk.f32.mxu1 %vm318_vm0, %v8217_v47 }
  0x41   : > { %6740 = vmatmul.mubr.msk.f32.gmra.mrb[20].mxu0 %vm318_vm0, %v8226_v48 }
  0x42   : > { %6820 = vmatmul.mubr.msk.f32.gmra.mrb[20].mxu1 %vm318_vm0, %v8226_v48  ;;  %6742 = vmatprep.mubr.msk.f32.mxu0 %vm318_vm0, %v8231_v49 }
  0x43   : > { %6822 = vmatprep.mubr.msk.f32.mxu1 %vm318_vm0, %v8231_v49 }
  0x45   : > { %6743 = vmatmul.mubr.msk.f32.gmra.mrb[22].mxu0 %vm318_vm0, %v8240_v50 }
  0x46   : > { %6823 = vmatmul.mubr.msk.f32.gmra.mrb[22].mxu1 %vm318_vm0, %v8240_v50  ;;  %6745 = vmatprep.mubr.msk.f32.mxu0 %vm318_vm0, %v8245_v51 }
  0x47   : > { %6825 = vmatprep.mubr.msk.f32.mxu1 %vm318_vm0, %v8245_v51 }
  0x49   : > { %6746 = vmatmul.mubr.msk.f32.gmra.mrb[24].mxu0 %vm318_vm0, %v8254_v52 }
  0x4a   : > { %6826 = vmatmul.mubr.msk.f32.gmra.mrb[24].mxu1 %vm318_vm0, %v8254_v52  ;;  %6748 = vmatprep.mubr.msk.f32.mxu0 %vm318_vm0, %v8259_v53 }
  0x4b   : > { %6828 = vmatprep.mubr.msk.f32.mxu1 %vm318_vm0, %v8259_v53 }
  0x4d   : > { %6749 = vmatmul.mubr.msk.f32.gmra.mrb[26].mxu0 %vm318_vm0, %v8268_v54 }
  0x4e   : > { %6829 = vmatmul.mubr.msk.f32.gmra.mrb[26].mxu1 %vm318_vm0, %v8268_v54  ;;  %6751 = vmatprep.mubr.msk.f32.mxu0 %vm318_vm0, %v8273_v55 }
  0x4f   : > { %6831 = vmatprep.mubr.msk.f32.mxu1 %vm318_vm0, %v8273_v55 }
  0x51   : > { %6752 = vmatmul.mubr.msk.f32.gmra.mrb[28].mxu0 %vm318_vm0, %v8282_v56 }
  0x52   : > { %6832 = vmatmul.mubr.msk.f32.gmra.mrb[28].mxu1 %vm318_vm0, %v8282_v56  ;;  %6754 = vmatprep.mubr.msk.f32.mxu0 %vm318_vm0, %v8287_v57 }
  0x53   : > { %6834 = vmatprep.mubr.msk.f32.mxu1 %vm318_vm0, %v8287_v57 }
  0x55   : > { %6755 = vmatmul.mubr.msk.f32.gmra.mrb[30].mxu0 %vm318_vm0, %v8304_v61 }
  0x56   : > { %6835 = vmatmul.mubr.msk.f32.gmra.mrb[30].mxu1 %vm318_vm0, %v8304_v61  ;;  %6757 = vmatprep.mubr.msk.f32.mxu0 %vm318_vm0, %v8309_v62 }
  0x57   : > { %6837 = vmatprep.mubr.msk.f32.mxu1 %vm318_vm0, %v8309_v62 }
  0x59   : > { %6758 = vmatmul.mubr.msk.f32.gmra.mrb[32].mxu0 %vm318_vm0, %v8319_v63 }
  0x5a   : > { %6838 = vmatmul.mubr.msk.f32.gmra.mrb[32].mxu1 %vm318_vm0, %v8319_v63  ;;  %6760 = vmatprep.mubr.msk.f32.mxu0 %vm318_vm0, %v8324_v0 }
  0x5b   : > { %6840 = vmatprep.mubr.msk.f32.mxu1 %vm318_vm0, %v8324_v0 }
  0x5d   : > { %6761 = vmatmul.mubr.msk.f32.gmra.mrb[34].mxu0 %vm318_vm0, %v8333_v1 }
  0x5e   : > { %6841 = vmatmul.mubr.msk.f32.gmra.mrb[34].mxu1 %vm318_vm0, %v8333_v1  ;;  %6763 = vmatprep.mubr.msk.f32.mxu0 %vm318_vm0, %v8338_v2 }
  0x5f   : > { %6843 = vmatprep.mubr.msk.f32.mxu1 %vm318_vm0, %v8338_v2 }
  0x61   : > { %6764 = vmatmul.mubr.msk.f32.gmra.mrb[36].mxu0 %vm318_vm0, %v8347_v3 }
  0x62   : > { %6844 = vmatmul.mubr.msk.f32.gmra.mrb[36].mxu1 %vm318_vm0, %v8347_v3  ;;  %6766 = vmatprep.mubr.msk.f32.mxu0 %vm318_vm0, %v8352_v4 }
  0x63   : > { %6846 = vmatprep.mubr.msk.f32.mxu1 %vm318_vm0, %v8352_v4 }
  0x65   : > { %6767 = vmatmul.mubr.msk.f32.gmra.mrb[38].mxu0 %vm318_vm0, %v8361_v5 }
  0x66   : > { %6847 = vmatmul.mubr.msk.f32.gmra.mrb[38].mxu1 %vm318_vm0, %v8361_v5  ;;  %6769 = vmatprep.mubr.msk.f32.mxu0 %vm318_vm0, %v8366_v6 }
  0x67   : > { %6849 = vmatprep.mubr.msk.f32.mxu1 %vm318_vm0, %v8366_v6 }
  0x69   : > { %6770 = vmatmul.mubr.msk.f32.gmra.mrb[40].mxu0 %vm318_vm0, %v8375_v7 }
  0x6a   : > { %6850 = vmatmul.mubr.msk.f32.gmra.mrb[40].mxu1 %vm318_vm0, %v8375_v7  ;;  %6772 = vmatprep.mubr.msk.f32.mxu0 %vm318_vm0, %v8380_v8 }
  0x6b   : > { %6852 = vmatprep.mubr.msk.f32.mxu1 %vm318_vm0, %v8380_v8 }
  0x6d   : > { %6773 = vmatmul.mubr.msk.f32.gmra.mrb[42].mxu0 %vm318_vm0, %v8389_v9 }
  0x6e   : > { %6853 = vmatmul.mubr.msk.f32.gmra.mrb[42].mxu1 %vm318_vm0, %v8389_v9  ;;  %6775 = vmatprep.mubr.msk.f32.mxu0 %vm318_vm0, %v8394_v10 }
  0x6f   : > { %6855 = vmatprep.mubr.msk.f32.mxu1 %vm318_vm0, %v8394_v10 }
  0x71   : > { %6776 = vmatmul.mubr.msk.f32.gmra.mrb[44].mxu0 %vm318_vm0, %v8403_v11 }
  0x72   : > { %6856 = vmatmul.mubr.msk.f32.gmra.mrb[44].mxu1 %vm318_vm0, %v8403_v11  ;;  %6778 = vmatprep.mubr.msk.f32.mxu0 %vm318_vm0, %v8408_v12 }
  0x73   : > { %6858 = vmatprep.mubr.msk.f32.mxu1 %vm318_vm0, %v8408_v12 }
  0x75   : > { %6779 = vmatmul.mubr.msk.f32.gmra.mrb[46].mxu0 %vm318_vm0, %v8417_v13 }
  0x76   : > { %6859 = vmatmul.mubr.msk.f32.gmra.mrb[46].mxu1 %vm318_vm0, %v8417_v13  ;;  %6869 = vmatprep.mubr.msk.f32.mxu0 %vm318_vm0, %v8060_v18  ;;  %v6061_v18 = vld [vmem:[%s10440_s1 + $0xe0] sm:$0xff] }
  0x77   : > { %6949 = vmatprep.mubr.msk.f32.mxu1 %vm318_vm0, %v8095_v29 }
  0x79   : > { %6870 = vmatmul.mubr.msk.f32.vlgmr.msra.gmra.mrb[48].mxu0 %vm318_vm0, %v8071_v21  ;;  %v8457_v21 = vpack.c.bf16 %v6062_v22, %v6061_v18 }
  0x7a   : > { %6950 = vmatmul.mubr.msk.f32.vlgmr.msra.gmra.mrb[0].mxu1 %vm318_vm0, %v8102_v30  ;;  %7560 = vmatpush3.bf16.msra.mxu0 %v8104_v31  ;;  %v6063_v31 = vld [vmem:[%s10440_s1 + $0xf0] sm:$0xff] }
  0x7b   : > { %6872 = vmatprep.mubr.msk.f32.mxu0 %vm318_vm0, %v8082_v24  ;;  %6952 = vmatprep.mubr.msk.f32.mxu1 %vm318_vm0, %v8113_v32  ;;  %v6010_v24 = vld [vmem:[%s10440_s1 + $0xc8] sm:$0xff]  ;;  %v7585_v14 = vpack.c.bf16 %v6064_v58, %v6063_v31 }
  0x7c   : > { %7562 = vmatprep.subr.bf16.mxu0 %v7561_v19  ;;  %7568 = vmatpush3.bf16.msra.mxu1 %v8295_v60  ;;  %v7573_v25 = vpack.c.bf16 %v6010_v24, %v6009_v23  ;;  %v6012_v60 = vld [vmem:[%s10440_s1 + $0xd8] sm:$0xff] }
  0x7d   : > { %6873 = vmatmul.mubr.msk.f32.gmra.mrb[50].mxu0 %vm318_vm0, %v8095_v29  ;;  %7570 = vmatprep.subr.bf16.mxu1 %v7569_v20  ;;  %v7577_v15 = vpack.c.bf16 %v6012_v60, %v6011_v59 }
  0x7e   : > { %6953 = vmatmul.mubr.msk.f32.gmra.mrb[2].mxu1 %vm318_vm0, %v8118_v33  ;;  %6875 = vmatprep.mubr.msk.f32.mxu0 %vm318_vm0, %v8102_v30 }
  0x7f   : > { %6955 = vmatprep.mubr.msk.f32.mxu1 %vm318_vm0, %v8128_v34  ;;  %7564 = vmatpush3.bf16.msra.mxu0 %v7561_v19 }
  0x80   : > { %7572 = vmatpush3.bf16.msra.mxu1 %v7569_v20  ;;  %7582 = vmatprep.subr.bf16.mxu0 %v8457_v21 }
  0x81   : > { %6876 = vmatmul.mubr.msk.f32.gmra.mrb[52].mxu0 %vm318_vm0, %v8113_v32  ;;  %7574 = vmatprep.subr.bf16.mxu1 %v7573_v25 }
  0x82   : > { %6956 = vmatmul.mubr.msk.f32.gmra.mrb[4].mxu1 %vm318_vm0, %v8133_v35  ;;  %6878 = vmatprep.mubr.msk.f32.mxu0 %vm318_vm0, %v8118_v33 }
  0x83   : > { %6958 = vmatprep.mubr.msk.f32.mxu1 %vm318_vm0, %v8142_v36 }
  0x85   : > { %6879 = vmatmul.mubr.msk.f32.gmra.mrb[54].mxu0 %vm318_vm0, %v8128_v34 }
  0x86   : > { %6959 = vmatmul.mubr.msk.f32.gmra.mrb[6].mxu1 %vm318_vm0, %v8147_v37  ;;  %6881 = vmatprep.mubr.msk.f32.mxu0 %vm318_vm0, %v8133_v35 }
  0x87   : > { %6961 = vmatprep.mubr.msk.f32.mxu1 %vm318_vm0, %v8156_v38 }
  0x89   : > { %6882 = vmatmul.mubr.msk.f32.gmra.mrb[56].mxu0 %vm318_vm0, %v8142_v36 }
  0x8a   : > { %6962 = vmatmul.mubr.msk.f32.gmra.mrb[8].mxu1 %vm318_vm0, %v8161_v39  ;;  %6884 = vmatprep.mubr.msk.f32.mxu0 %vm318_vm0, %v8147_v37 }
  0x8b   : > { %6964 = vmatprep.mubr.msk.f32.mxu1 %vm318_vm0, %v8170_v40 }
  0x8d   : > { %6885 = vmatmul.mubr.msk.f32.gmra.mrb[58].mxu0 %vm318_vm0, %v8156_v38 }
  0x8e   : > { %6965 = vmatmul.mubr.msk.f32.gmra.mrb[10].mxu1 %vm318_vm0, %v8175_v41  ;;  %6887 = vmatprep.mubr.msk.f32.mxu0 %vm318_vm0, %v8161_v39 }
  0x8f   : > { %6967 = vmatprep.mubr.msk.f32.mxu1 %vm318_vm0, %v8184_v42 }
  0x91   : > { %6888 = vmatmul.mubr.msk.f32.gmra.mrb[60].mxu0 %vm318_vm0, %v8170_v40 }
  0x92   : > { %6968 = vmatmul.mubr.msk.f32.gmra.mrb[12].mxu1 %vm318_vm0, %v8189_v43  ;;  %6890 = vmatprep.mubr.msk.f32.mxu0 %vm318_vm0, %v8175_v41 }
  0x93   : > { %6970 = vmatprep.mubr.msk.f32.mxu1 %vm318_vm0, %v8198_v44 }
  0x95   : > { %6891 = vmatmul.mubr.msk.f32.gmra.mrb[62].mxu0 %vm318_vm0, %v8184_v42 }
  0x96   : > { %6971 = vmatmul.mubr.msk.f32.gmra.mrb[14].mxu1 %vm318_vm0, %v8203_v45  ;;  %6893 = vmatprep.mubr.msk.f32.mxu0 %vm318_vm0, %v8189_v43 }
  0x97   : > { %6973 = vmatprep.mubr.msk.f32.mxu1 %vm318_vm0, %v8212_v46 }
  0x99   : > { %6894 = vmatmul.mubr.msk.f32.gmra.mrb[64].mxu0 %vm318_vm0, %v8198_v44 }
  0x9a   : > { %6974 = vmatmul.mubr.msk.f32.gmra.mrb[16].mxu1 %vm318_vm0, %v8217_v47  ;;  %6896 = vmatprep.mubr.msk.f32.mxu0 %vm318_vm0, %v8203_v45 }
  0x9b   : > { %6976 = vmatprep.mubr.msk.f32.mxu1 %vm318_vm0, %v8226_v48 }
  0x9d   : > { %6897 = vmatmul.mubr.msk.f32.gmra.mrb[66].mxu0 %vm318_vm0, %v8212_v46 }
  0x9e   : > { %6977 = vmatmul.mubr.msk.f32.gmra.mrb[18].mxu1 %vm318_vm0, %v8231_v49  ;;  %6899 = vmatprep.mubr.msk.f32.mxu0 %vm318_vm0, %v8217_v47 }
  0x9f   : > { %6979 = vmatprep.mubr.msk.f32.mxu1 %vm318_vm0, %v8240_v50 }
  0xa1   : > { %6900 = vmatmul.mubr.msk.f32.gmra.mrb[68].mxu0 %vm318_vm0, %v8226_v48 }
  0xa2   : > { %6980 = vmatmul.mubr.msk.f32.gmra.mrb[20].mxu1 %vm318_vm0, %v8245_v51  ;;  %6902 = vmatprep.mubr.msk.f32.mxu0 %vm318_vm0, %v8231_v49 }
  0xa3   : > { %6982 = vmatprep.mubr.msk.f32.mxu1 %vm318_vm0, %v8254_v52 }
  0xa5   : > { %6903 = vmatmul.mubr.msk.f32.gmra.mrb[70].mxu0 %vm318_vm0, %v8240_v50 }
  0xa6   : > { %6983 = vmatmul.mubr.msk.f32.gmra.mrb[22].mxu1 %vm318_vm0, %v8259_v53  ;;  %6905 = vmatprep.mubr.msk.f32.mxu0 %vm318_vm0, %v8245_v51 }
  0xa7   : > { %6985 = vmatprep.mubr.msk.f32.mxu1 %vm318_vm0, %v8268_v54 }
  0xa9   : > { %6906 = vmatmul.mubr.msk.f32.gmra.mrb[72].mxu0 %vm318_vm0, %v8254_v52 }
  0xaa   : > { %6986 = vmatmul.mubr.msk.f32.gmra.mrb[24].mxu1 %vm318_vm0, %v8273_v55  ;;  %6908 = vmatprep.mubr.msk.f32.mxu0 %vm318_vm0, %v8259_v53 }
  0xab   : > { %6988 = vmatprep.mubr.msk.f32.mxu1 %vm318_vm0, %v8282_v56 }
  0xad   : > { %6909 = vmatmul.mubr.msk.f32.gmra.mrb[74].mxu0 %vm318_vm0, %v8268_v54 }
  0xae   : > { %6989 = vmatmul.mubr.msk.f32.gmra.mrb[26].mxu1 %vm318_vm0, %v8287_v57  ;;  %6911 = vmatprep.mubr.msk.f32.mxu0 %vm318_vm0, %v8273_v55 }
  0xaf   : > { %6991 = vmatprep.mubr.msk.f32.mxu1 %vm318_vm0, %v8304_v61 }
  0xb1   : > { %6912 = vmatmul.mubr.msk.f32.gmra.mrb[76].mxu0 %vm318_vm0, %v8282_v56 }
  0xb2   : > { %6992 = vmatmul.mubr.msk.f32.gmra.mrb[28].mxu1 %vm318_vm0, %v8309_v62  ;;  %6914 = vmatprep.mubr.msk.f32.mxu0 %vm318_vm0, %v8287_v57 }
  0xb3   : > { %6994 = vmatprep.mubr.msk.f32.mxu1 %vm318_vm0, %v8319_v63 }
  0xb5   : > { %6915 = vmatmul.mubr.msk.f32.gmra.mrb[78].mxu0 %vm318_vm0, %v8304_v61 }
  0xb6   : > { %6995 = vmatmul.mubr.msk.f32.gmra.mrb[30].mxu1 %vm318_vm0, %v8324_v0  ;;  %6917 = vmatprep.mubr.msk.f32.mxu0 %vm318_vm0, %v8309_v62 }
  0xb7   : > { %6997 = vmatprep.mubr.msk.f32.mxu1 %vm318_vm0, %v8333_v1 }
  0xb9   : > { %6918 = vmatmul.mubr.msk.f32.gmra.mrb[80].mxu0 %vm318_vm0, %v8319_v63 }
  0xba   : > { %6998 = vmatmul.mubr.msk.f32.gmra.mrb[32].mxu1 %vm318_vm0, %v8338_v2  ;;  %6920 = vmatprep.mubr.msk.f32.mxu0 %vm318_vm0, %v8324_v0 }
  0xbb   : > { %7000 = vmatprep.mubr.msk.f32.mxu1 %vm318_vm0, %v8347_v3 }
  0xbd   : > { %6921 = vmatmul.mubr.msk.f32.gmra.mrb[82].mxu0 %vm318_vm0, %v8333_v1 }
  0xbe   : > { %7001 = vmatmul.mubr.msk.f32.gmra.mrb[34].mxu1 %vm318_vm0, %v8352_v4  ;;  %6923 = vmatprep.mubr.msk.f32.mxu0 %vm318_vm0, %v8338_v2 }
  0xbf   : > { %7003 = vmatprep.mubr.msk.f32.mxu1 %vm318_vm0, %v8361_v5 }
  0xc1   : > { %6924 = vmatmul.mubr.msk.f32.gmra.mrb[84].mxu0 %vm318_vm0, %v8347_v3 }
  0xc2   : > { %7004 = vmatmul.mubr.msk.f32.gmra.mrb[36].mxu1 %vm318_vm0, %v8366_v6  ;;  %6926 = vmatprep.mubr.msk.f32.mxu0 %vm318_vm0, %v8352_v4 }
  0xc3   : > { %7006 = vmatprep.mubr.msk.f32.mxu1 %vm318_vm0, %v8375_v7 }
  0xc5   : > { %6927 = vmatmul.mubr.msk.f32.gmra.mrb[86].mxu0 %vm318_vm0, %v8361_v5 }
  0xc6   : > { %7007 = vmatmul.mubr.msk.f32.gmra.mrb[38].mxu1 %vm318_vm0, %v8380_v8  ;;  %6929 = vmatprep.mubr.msk.f32.mxu0 %vm318_vm0, %v8366_v6 }
  0xc7   : > { %7009 = vmatprep.mubr.msk.f32.mxu1 %vm318_vm0, %v8389_v9 }
  0xc9   : > { %6930 = vmatmul.mubr.msk.f32.gmra.mrb[88].mxu0 %vm318_vm0, %v8375_v7 }
  0xca   : > { %7010 = vmatmul.mubr.msk.f32.gmra.mrb[40].mxu1 %vm318_vm0, %v8394_v10  ;;  %6932 = vmatprep.mubr.msk.f32.mxu0 %vm318_vm0, %v8380_v8 }
  0xcb   : > { %7012 = vmatprep.mubr.msk.f32.mxu1 %vm318_vm0, %v8403_v11 }
  0xcd   : > { %6933 = vmatmul.mubr.msk.f32.gmra.mrb[90].mxu0 %vm318_vm0, %v8389_v9 }
  0xce   : > { %7013 = vmatmul.mubr.msk.f32.gmra.mrb[42].mxu1 %vm318_vm0, %v8408_v12  ;;  %6935 = vmatprep.mubr.msk.f32.mxu0 %vm318_vm0, %v8394_v10 }
  0xcf   : > { %7015 = vmatprep.mubr.msk.f32.mxu1 %vm318_vm0, %v8417_v13 }
  0xd1   : > { %6936 = vmatmul.mubr.msk.f32.gmra.mrb[92].mxu0 %vm318_vm0, %v8403_v11 }
  0xd2   : > { %7016 = vmatmul.mubr.msk.f32.gmra.mrb[44].mxu1 %vm318_vm0, %v8635_v26  ;;  %6938 = vmatprep.mubr.msk.f32.mxu0 %vm318_vm0, %v8408_v12 }
  0xd3   : > { %7018 = vmatprep.mubr.msk.f32.mxu1 %vm318_vm0, %v8638_v27 }
  0xd5   : > { %6939 = vmatmul.mubr.msk.f32.gmra.mrb[94].mxu0 %vm318_vm0, %v8417_v13 }
  0xd6   : > { %7019 = vmatmul.mubr.msk.f32.gmra.mrb[46].mxu1 %vm318_vm0, %v8649_v28  ;;  %7029 = vmatprep.mubr.msk.f32.mxu0 %vm318_vm0, %v8095_v29 }
  0xd7   : > { %7109 = vmatprep.mubr.msk.f32.mxu1 %vm318_vm0, %v8095_v29  ;;  %v8686_v29 = vpack.c.bf16 %v6114_v17, %v6113_v16 }
  0xd9   : > { %7030 = vmatmul.mubr.msk.f32.vlgmr.msra.gmra.mrb[96].mxu0 %vm318_vm0, %v8102_v30 }
  0xda   : > { %7110 = vmatmul.mubr.msk.f32.vlgmr.msra.gmra.mrb[48].mxu1 %vm318_vm0, %v8102_v30  ;;  %7584 = vmatpush3.bf16.msra.mxu0 %v8457_v21 }
  0xdb   : > { %7032 = vmatprep.mubr.msk.f32.mxu0 %vm318_vm0, %v8113_v32  ;;  %7112 = vmatprep.mubr.msk.f32.mxu1 %vm318_vm0, %v8113_v32 }
  0xdc   : > { %7586 = vmatprep.subr.bf16.mxu0 %v7585_v14  ;;  %7576 = vmatpush3.bf16.msra.mxu1 %v7573_v25 }
  0xdd   : > { %7033 = vmatmul.mubr.msk.f32.gmra.mrb[98].mxu0 %vm318_vm0, %v8118_v33  ;;  %7578 = vmatprep.subr.bf16.mxu1 %v7577_v15 }
  0xde   : > { %7113 = vmatmul.mubr.msk.f32.gmra.mrb[50].mxu1 %vm318_vm0, %v8118_v33  ;;  %7035 = vmatprep.mubr.msk.f32.mxu0 %vm318_vm0, %v8128_v34 }
  0xdf   : > { %7115 = vmatprep.mubr.msk.f32.mxu1 %vm318_vm0, %v8128_v34  ;;  %7588 = vmatpush3.bf16.msra.mxu0 %v7585_v14 }
  0xe0   : > { %7580 = vmatpush3.bf16.msra.mxu1 %v7577_v15  ;;  %7590 = vmatprep.subr.bf16.mxu0 %v8686_v29 }
  0xe1   : > { %7036 = vmatmul.mubr.msk.f32.gmra.mrb[100].mxu0 %vm318_vm0, %v8133_v35 }
  0xe2   : > { %7116 = vmatmul.mubr.msk.f32.gmra.mrb[52].mxu1 %vm318_vm0, %v8133_v35  ;;  %7038 = vmatprep.mubr.msk.f32.mxu0 %vm318_vm0, %v8142_v36 }
  0xe3   : > { %7118 = vmatprep.mubr.msk.f32.mxu1 %vm318_vm0, %v8142_v36 }
  0xe5   : > { %7039 = vmatmul.mubr.msk.f32.gmra.mrb[102].mxu0 %vm318_vm0, %v8147_v37 }
  0xe6   : > { %7119 = vmatmul.mubr.msk.f32.gmra.mrb[54].mxu1 %vm318_vm0, %v8147_v37  ;;  %7041 = vmatprep.mubr.msk.f32.mxu0 %vm318_vm0, %v8156_v38 }
  0xe7   : > { %7121 = vmatprep.mubr.msk.f32.mxu1 %vm318_vm0, %v8156_v38 }
  0xe9   : > { %7042 = vmatmul.mubr.msk.f32.gmra.mrb[104].mxu0 %vm318_vm0, %v8161_v39 }
  0xea   : > { %7122 = vmatmul.mubr.msk.f32.gmra.mrb[56].mxu1 %vm318_vm0, %v8161_v39  ;;  %7044 = vmatprep.mubr.msk.f32.mxu0 %vm318_vm0, %v8170_v40 }
  0xeb   : > { %7124 = vmatprep.mubr.msk.f32.mxu1 %vm318_vm0, %v8170_v40 }
  0xec   : > { %v8721_v30 = vpop.f32.mrb[0].mxu0 }
  0xed   : > { %v8723_v32 = vpop.f32.mrb[1].mxu0  ;;  %7045 = vmatmul.mubr.msk.f32.gmra.mrb[106].mxu0 %vm318_vm0, %v8175_v41  ;;  %v10445_v36 = vrot.slane %v8721_v30, 1 }
  0xee   : > { %7125 = vmatmul.mubr.msk.f32.gmra.mrb[58].mxu1 %vm318_vm0, %v8175_v41  ;;  %7047 = vmatprep.mubr.msk.f32.mxu0 %vm318_vm0, %v8184_v42 }
  0xef   : > { %7127 = vmatprep.mubr.msk.f32.mxu1 %vm318_vm0, %v8184_v42 }
  0xf0   : > { %v6714_v33 = vpop.f32.mrb[2].mxu0 }
  0xf1   : > { %v822_v34 = vrot.slane %v6714_v33, 1  ;;  %v539_v35 = vpop.f32.mrb[3].mxu0  ;;  %7048 = vmatmul.mubr.msk.f32.gmra.mrb[108].mxu0 %vm318_vm0, %v8189_v43 }
  0xf2   : > { %v820_v37 = vrot.slane %v539_v35, 1  ;;  %7128 = vmatmul.mubr.msk.f32.gmra.mrb[60].mxu1 %vm318_vm0, %v8189_v43  ;;  %7050 = vmatprep.mubr.msk.f32.mxu0 %vm318_vm0, %v8198_v44 }
  0xf3   : > { %7130 = vmatprep.mubr.msk.f32.mxu1 %vm318_vm0, %v8198_v44 }
  0xf4   : > { %v8745_v38 = vsel %vm816_vm1, %v10445_v36, %v820_v37  ;;  %v8748_v39 = vsel %vm816_vm1, %v820_v37, %v822_v34  ;;  %v6717_v40 = vpop.f32.mrb[4].mxu0 }
  0xf5   : > { %v826_v41 = vrot.slane %v6717_v40, 1  ;;  %v549_v42 = vpop.f32.mrb[5].mxu0  ;;  %7051 = vmatmul.mubr.msk.f32.gmra.mrb[110].mxu0 %vm318_vm0, %v8203_v45 }
  0xf6   : > { %v824_v43 = vrot.slane %v549_v42, 1  ;;  %7131 = vmatmul.mubr.msk.f32.gmra.mrb[62].mxu1 %vm318_vm0, %v8203_v45  ;;  %7053 = vmatprep.mubr.msk.f32.mxu0 %vm318_vm0, %v8212_v46 }
  0xf7   : > { %7133 = vmatprep.mubr.msk.f32.mxu1 %vm318_vm0, %v8212_v46 }
  0xf8   : > { %v8759_v44 = vsel %vm816_vm1, %v822_v34, %v824_v43  ;;  %v8762_v19 = vsel %vm816_vm1, %v824_v43, %v826_v41  ;;  %v6720_v20 = vpop.f32.mrb[6].mxu0 }
  0xf9   : > { %v830_v18 = vrot.slane %v6720_v20, 1  ;;  %v559_v22 = vpop.f32.mrb[7].mxu0  ;;  %7054 = vmatmul.mubr.msk.f32.gmra.mrb[112].mxu0 %vm318_vm0, %v8217_v47 }
  0xfa   : > { %v828_v21 = vrot.slane %v559_v22, 1  ;;  %7134 = vmatmul.mubr.msk.f32.gmra.mrb[64].mxu1 %vm318_vm0, %v8217_v47  ;;  %7056 = vmatprep.mubr.msk.f32.mxu0 %vm318_vm0, %v8226_v48 }
  0xfb   : > { %7136 = vmatprep.mubr.msk.f32.mxu1 %vm318_vm0, %v8226_v48 }
  0xfc   : > { %v8773_v45 = vsel %vm816_vm1, %v826_v41, %v828_v21  ;;  %v8776_v46 = vsel %vm816_vm1, %v828_v21, %v830_v18  ;;  %v6723_v23 = vpop.f32.mrb[8].mxu0 }
  0xfd   : > { %v834_v24 = vrot.slane %v6723_v23, 1  ;;  %v569_v25 = vpop.f32.mrb[9].mxu0  ;;  %7057 = vmatmul.mubr.msk.f32.gmra.mrb[114].mxu0 %vm318_vm0, %v8231_v49 }
  0xfe   : > { %v832_v31 = vrot.slane %v569_v25, 1  ;;  %7137 = vmatmul.mubr.msk.f32.gmra.mrb[66].mxu1 %vm318_vm0, %v8231_v49  ;;  %7059 = vmatprep.mubr.msk.f32.mxu0 %vm318_vm0, %v8240_v50 }
  0xff   : > { %7139 = vmatprep.mubr.msk.f32.mxu1 %vm318_vm0, %v8240_v50 }
 0x100   : > { %v8787_v47 = vsel %vm816_vm1, %v830_v18, %v832_v31  ;;  %v8790_v48 = vsel %vm816_vm1, %v832_v31, %v834_v24  ;;  %v6726_v58 = vpop.f32.mrb[10].mxu0 }
 0x101   : > { %v838_v59 = vrot.slane %v6726_v58, 1  ;;  %v579_v60 = vpop.f32.mrb[11].mxu0  ;;  %7060 = vmatmul.mubr.msk.f32.gmra.mrb[116].mxu0 %vm318_vm0, %v8245_v51 }
 0x102   : > { %v836_v14 = vrot.slane %v579_v60, 1  ;;  %7140 = vmatmul.mubr.msk.f32.gmra.mrb[68].mxu1 %vm318_vm0, %v8245_v51  ;;  %7062 = vmatprep.mubr.msk.f32.mxu0 %vm318_vm0, %v8254_v52 }
 0x103   : > { %7142 = vmatprep.mubr.msk.f32.mxu1 %vm318_vm0, %v8254_v52 }
 0x104   : > { %v8801_v49 = vsel %vm816_vm1, %v834_v24, %v836_v14  ;;  %v8804_v50 = vsel %vm816_vm1, %v836_v14, %v838_v59  ;;  %v6729_v15 = vpop.f32.mrb[12].mxu0 }
 0x105   : > { %v842_v16 = vrot.slane %v6729_v15, 1  ;;  %v589_v17 = vpop.f32.mrb[13].mxu0  ;;  %7063 = vmatmul.mubr.msk.f32.gmra.mrb[118].mxu0 %vm318_vm0, %v8259_v53 }
 0x106   : > { %v840_v33 = vrot.slane %v589_v17, 1  ;;  %7143 = vmatmul.mubr.msk.f32.gmra.mrb[70].mxu1 %vm318_vm0, %v8259_v53  ;;  %7065 = vmatprep.mubr.msk.f32.mxu0 %vm318_vm0, %v8268_v54 }
 0x107   : > { %7145 = vmatprep.mubr.msk.f32.mxu1 %vm318_vm0, %v8268_v54 }
 0x108   : > { %v8815_v51 = vsel %vm816_vm1, %v838_v59, %v840_v33  ;;  %v8818_v52 = vsel %vm816_vm1, %v840_v33, %v842_v16  ;;  %v6732_v34 = vpop.f32.mrb[14].mxu0 }
 0x109   : > { %v846_v35 = vrot.slane %v6732_v34, 1  ;;  %v599_v37 = vpop.f32.mrb[15].mxu0  ;;  %7066 = vmatmul.mubr.msk.f32.gmra.mrb[120].mxu0 %vm318_vm0, %v8273_v55 }
 0x10a   : > { %v844_v40 = vrot.slane %v599_v37, 1  ;;  %7146 = vmatmul.mubr.msk.f32.gmra.mrb[72].mxu1 %vm318_vm0, %v8273_v55  ;;  %7068 = vmatprep.mubr.msk.f32.mxu0 %vm318_vm0, %v8282_v56 }
 0x10b   : > { %7148 = vmatprep.mubr.msk.f32.mxu1 %vm318_vm0, %v8282_v56 }
 0x10c   : > { %v8829_v53 = vsel %vm816_vm1, %v842_v16, %v844_v40  ;;  %v8832_v54 = vsel %vm816_vm1, %v844_v40, %v846_v35  ;;  %v6735_v41 = vpop.f32.mrb[16].mxu0 }
 0x10d   : > { %v850_v42 = vrot.slane %v6735_v41, 1  ;;  %v609_v43 = vpop.f32.mrb[17].mxu0  ;;  %7069 = vmatmul.mubr.msk.f32.gmra.mrb[122].mxu0 %vm318_vm0, %v8287_v57 }
 0x10e   : > { %v848_v20 = vrot.slane %v609_v43, 1  ;;  %7149 = vmatmul.mubr.msk.f32.gmra.mrb[74].mxu1 %vm318_vm0, %v8287_v57  ;;  %7071 = vmatprep.mubr.msk.f32.mxu0 %vm318_vm0, %v8304_v61 }
 0x10f   : > { %7151 = vmatprep.mubr.msk.f32.mxu1 %vm318_vm0, %v8304_v61 }
 0x110   : > { %v8843_v55 = vsel %vm816_vm1, %v846_v35, %v848_v20  ;;  %v8846_v56 = vsel %vm816_vm1, %v848_v20, %v850_v42  ;;  %v6738_v18 = vpop.f32.mrb[18].mxu0 }
 0x111   : > { %v854_v22 = vrot.slane %v6738_v18, 1  ;;  %v619_v21 = vpop.f32.mrb[19].mxu0  ;;  %7072 = vmatmul.mubr.msk.f32.gmra.mrb[124].mxu0 %vm318_vm0, %v8309_v62 }
 0x112   : > { %v852_v23 = vrot.slane %v619_v21, 1  ;;  %7152 = vmatmul.mubr.msk.f32.gmra.mrb[76].mxu1 %vm318_vm0, %v8309_v62  ;;  %7074 = vmatprep.mubr.msk.f32.mxu0 %vm318_vm0, %v8319_v63 }
 0x113   : > { %7154 = vmatprep.mubr.msk.f32.mxu1 %vm318_vm0, %v8319_v63 }
 0x114   : > { %v8857_v57 = vsel %vm816_vm1, %v850_v42, %v852_v23  ;;  %v8860_v61 = vsel %vm816_vm1, %v852_v23, %v854_v22  ;;  %v6741_v24 = vpop.f32.mrb[20].mxu0 }
 0x115   : > { %v858_v25 = vrot.slane %v6741_v24, 1  ;;  %v629_v31 = vpop.f32.mrb[21].mxu0  ;;  %7075 = vmatmul.mubr.msk.f32.gmra.mrb[126].mxu0 %vm318_vm0, %v8324_v0 }
 0x116   : > { %v856_v58 = vrot.slane %v629_v31, 1  ;;  %7155 = vmatmul.mubr.msk.f32.gmra.mrb[78].mxu1 %vm318_vm0, %v8324_v0  ;;  %7077 = vmatprep.mubr.msk.f32.mxu0 %vm318_vm0, %v8333_v1 }
 0x117   : > { %7157 = vmatprep.mubr.msk.f32.mxu1 %vm318_vm0, %v8333_v1 }
 0x118   : > { %v8871_v62 = vsel %vm816_vm1, %v854_v22, %v856_v58  ;;  %v8874_v63 = vsel %vm816_vm1, %v856_v58, %v858_v25  ;;  %v6744_v59 = vpop.f32.mrb[22].mxu0 }
 0x119   : > { %v862_v60 = vrot.slane %v6744_v59, 1  ;;  %v639_v14 = vpop.f32.mrb[23].mxu0  ;;  %7078 = vmatmul.mubr.msk.f32.gmra.mrb[128].mxu0 %vm318_vm0, %v8338_v2 }
 0x11a   : > { %v860_v15 = vrot.slane %v639_v14, 1  ;;  %7158 = vmatmul.mubr.msk.f32.gmra.mrb[80].mxu1 %vm318_vm0, %v8338_v2  ;;  %7080 = vmatprep.mubr.msk.f32.mxu0 %vm318_vm0, %v8347_v3 }
 0x11b   : > { %7160 = vmatprep.mubr.msk.f32.mxu1 %vm318_vm0, %v8347_v3 }
 0x11c   : > { %v8885_v0 = vsel %vm816_vm1, %v858_v25, %v860_v15  ;;  %v8888_v1 = vsel %vm816_vm1, %v860_v15, %v862_v60  ;;  %v6747_v16 = vpop.f32.mrb[24].mxu0 }
 0x11d   : > { %v866_v17 = vrot.slane %v6747_v16, 1  ;;  %v649_v33 = vpop.f32.mrb[25].mxu0  ;;  %7081 = vmatmul.mubr.msk.f32.gmra.mrb[130].mxu0 %vm318_vm0, %v8352_v4 }
 0x11e   : > { %v864_v34 = vrot.slane %v649_v33, 1  ;;  %7161 = vmatmul.mubr.msk.f32.gmra.mrb[82].mxu1 %vm318_vm0, %v8352_v4  ;;  %7083 = vmatprep.mubr.msk.f32.mxu0 %vm318_vm0, %v8361_v5 }
 0x11f   : > { %7163 = vmatprep.mubr.msk.f32.mxu1 %vm318_vm0, %v8361_v5 }
 0x120   : > { %v8899_v2 = vsel %vm816_vm1, %v862_v60, %v864_v34  ;;  %v8902_v3 = vsel %vm816_vm1, %v864_v34, %v866_v17  ;;  %v6750_v35 = vpop.f32.mrb[26].mxu0 }
 0x121   : > { %v870_v37 = vrot.slane %v6750_v35, 1  ;;  %v659_v40 = vpop.f32.mrb[27].mxu0  ;;  %7084 = vmatmul.mubr.msk.f32.gmra.mrb[132].mxu0 %vm318_vm0, %v8366_v6 }
 0x122   : > { %v868_v41 = vrot.slane %v659_v40, 1  ;;  %7164 = vmatmul.mubr.msk.f32.gmra.mrb[84].mxu1 %vm318_vm0, %v8366_v6  ;;  %7086 = vmatprep.mubr.msk.f32.mxu0 %vm318_vm0, %v8375_v7  ;;  %v8990_v40 = vld [vmem:[%s8057_s28 + $0x38] sm:$0xff] }
 0x123   : > { %7166 = vmatprep.mubr.msk.f32.mxu1 %vm318_vm0, %v8375_v7 }
 0x124   : > { %v8913_v4 = vsel %vm816_vm1, %v866_v17, %v868_v41  ;;  %v8916_v5 = vsel %vm816_vm1, %v868_v41, %v870_v37  ;;  %v6753_v42 = vpop.f32.mrb[28].mxu0 }
 0x125   : > { %v874_v43 = vrot.slane %v6753_v42, 1  ;;  %v669_v20 = vpop.f32.mrb[29].mxu0  ;;  %7087 = vmatmul.mubr.msk.f32.gmra.mrb[134].mxu0 %vm318_vm0, %v8380_v8 }
 0x126   : > { %v872_v18 = vrot.slane %v669_v20, 1  ;;  %7167 = vmatmul.mubr.msk.f32.gmra.mrb[86].mxu1 %vm318_vm0, %v8380_v8  ;;  %7089 = vmatprep.mubr.msk.f32.mxu0 %vm318_vm0, %v8389_v9  ;;  %v9001_v20 = vld [vmem:[%s8057_s28 + $0x40] sm:$0xff] }
 0x127   : > { %7169 = vmatprep.mubr.msk.f32.mxu1 %vm318_vm0, %v8389_v9 }
 0x128   : > { %v8927_v6 = vsel %vm816_vm1, %v870_v37, %v872_v18  ;;  %v8930_v7 = vsel %vm816_vm1, %v872_v18, %v874_v43  ;;  %v6756_v22 = vpop.f32.mrb[30].mxu0 }
 0x129   : > { %v878_v21 = vrot.slane %v6756_v22, 1  ;;  %v679_v23 = vpop.f32.mrb[31].mxu0  ;;  %7090 = vmatmul.mubr.msk.f32.gmra.mrb[136].mxu0 %vm318_vm0, %v8394_v10 }
 0x12a   : > { %v876_v24 = vrot.slane %v679_v23, 1  ;;  %7170 = vmatmul.mubr.msk.f32.gmra.mrb[88].mxu1 %vm318_vm0, %v8394_v10  ;;  %7092 = vmatprep.mubr.msk.f32.mxu0 %vm318_vm0, %v8403_v11  ;;  %v9009_v23 = vld [vmem:[%s8057_s28 + $0x48] sm:$0xff] }
 0x12b   : > { %7172 = vmatprep.mubr.msk.f32.mxu1 %vm318_vm0, %v8403_v11 }
 0x12c   : > { %v8941_v8 = vsel %vm816_vm1, %v874_v43, %v876_v24  ;;  %v8944_v9 = vsel %vm816_vm1, %v876_v24, %v878_v21  ;;  %v6759_v25 = vpop.f32.mrb[32].mxu0  ;;  %v9016_v24 = vld [vmem:[%s8057_s28 + $0x50] sm:$0xff] }
 0x12d   : > { %v882_v31 = vrot.slane %v6759_v25, 1  ;;  %v689_v58 = vpop.f32.mrb[33].mxu0  ;;  %7093 = vmatmul.mubr.msk.f32.gmra.mrb[138].mxu0 %vm318_vm0, %v8408_v12 }
 0x12e   : > { %v880_v10 = vrot.slane %v689_v58, 1  ;;  %7173 = vmatmul.mubr.msk.f32.gmra.mrb[90].mxu1 %vm318_vm0, %v8408_v12  ;;  %7095 = vmatprep.mubr.msk.f32.mxu0 %vm318_vm0, %v8417_v13  ;;  %v8969_v12 = vld [vmem:[%s8057_s28 + $0x30] sm:$0xff] }
 0x12f   : > { %7175 = vmatprep.mubr.msk.f32.mxu1 %vm318_vm0, %v8417_v13 }
 0x130   : > { %v8955_v11 = vsel %vm816_vm1, %v878_v21, %v880_v10  ;;  %v8958_v59 = vsel %vm816_vm1, %v880_v10, %v882_v31  ;;  %v6762_v60 = vpop.f32.mrb[34].mxu0 }
 0x131   : > { %v886_v14 = vrot.slane %v6762_v60, 1  ;;  %v699_v15 = vpop.f32.mrb[35].mxu0  ;;  %7096 = vmatmul.mubr.msk.f32.gmra.mrb[140].mxu0 %vm318_vm0, %v8635_v26 }
 0x132   : > { %v884_v16 = vrot.slane %v699_v15, 1  ;;  %7176 = vmatmul.mubr.msk.f32.gmra.mrb[92].mxu1 %vm318_vm0, %v8635_v26  ;;  %7098 = vmatprep.mubr.msk.f32.mxu0 %vm318_vm0, %v8638_v27  ;;  %v6115_v26 = vld [vmem:[%s10440_s1 + $0x110] sm:$0xff]  ;;  %v9036_v15 = vld [vmem:[%s8057_s28 + $0x60] sm:$0xff] }
 0x133   : > { %7178 = vmatprep.mubr.msk.f32.mxu1 %vm318_vm0, %v8638_v27  ;;  %v6116_v27 = vld [vmem:[%s10440_s1 + $0x118] sm:$0xff] }
 0x134   : > { %v8972_v13 = vsel %vm816_vm1, %v882_v31, %v884_v16  ;;  %v8975_v17 = vsel %vm816_vm1, %v884_v16, %v886_v14  ;;  %v6765_v33 = vpop.f32.mrb[36].mxu0  ;;  %v7593_v18 = vpack.c.bf16 %v6116_v27, %v6115_v26 }
 0x135   : > { %v890_v34 = vrot.slane %v6765_v33, 1  ;;  %v709_v35 = vpop.f32.mrb[37].mxu0  ;;  %7099 = vmatmul.mubr.msk.f32.gmra.mrb[142].mxu0 %vm318_vm0, %v8649_v28 }
 0x136   : > { %v888_v37 = vrot.slane %v709_v35, 1  ;;  %7179 = vmatmul.mubr.msk.f32.gmra.mrb[94].mxu1 %vm318_vm0, %v8649_v28  ;;  %7269 = vmatprep.mubr.msk.f32.mxu0 %vm318_vm0, %v8969_v12 }
 0x137   : > { %7189 = vmatprep.mubr.msk.f32.mxu1 %vm318_vm0, %v8969_v12 }
 0x138   : > { %v8995_v41 = vsel %vm816_vm1, %v886_v14, %v888_v37  ;;  %v8998_v42 = vsel %vm816_vm1, %v888_v37, %v890_v34  ;;  %v6768_v43 = vpop.f32.mrb[38].mxu0  ;;  %v9031_v14 = vld [vmem:[%s8057_s28 + $0x58] sm:$0xff]  ;;  %v9051_v37 = vld [vmem:[%s8057_s28 + $0x68] sm:$0xff] }
 0x139   : > { %v894_v28 = vrot.slane %v6768_v43, 1  ;;  %v719_v22 = vpop.f32.mrb[39].mxu0  ;;  %7270 = vmatmul.mubr.msk.f32.vlgmr.msra.gmra.mrb[144].mxu0 %vm318_vm0, %v8990_v40  ;;  %10462 = vst [vmem:[#allocation2_spill] sm:$0xff] %v9051_v37  ;;  %v9056_v43 = vld [vmem:[%s8057_s28 + $0x70] sm:$0xff] }
 0x13a   : > { %v892_v21 = vrot.slane %v719_v22, 1  ;;  %7190 = vmatmul.mubr.msk.f32.vlgmr.msra.gmra.mrb[0].mxu1 %vm318_vm0, %v8990_v40  ;;  %7592 = vmatpush3.bf16.msra.mxu0 %v8686_v29  ;;  %10463 = vst [vmem:[#allocation3_spill] sm:$0xff] %v9056_v43 }
 0x13b   : > { %7192 = vmatprep.mubr.msk.f32.mxu1 %vm318_vm0, %v9001_v20  ;;  %7272 = vmatprep.mubr.msk.f32.mxu0 %vm318_vm0, %v9001_v20 }
 0x13c   : > { %v9019_v25 = vsel %vm816_vm1, %v890_v34, %v892_v21  ;;  %v9022_v31 = vsel %vm816_vm1, %v892_v21, %v894_v28  ;;  %v6771_v58 = vpop.f32.mrb[40].mxu0  ;;  %7594 = vmatprep.subr.bf16.mxu0 %v7593_v18 }
 0x13d   : > { %v898_v29 = vrot.slane %v6771_v58, 1  ;;  %v729_v10 = vpop.f32.mrb[41].mxu0  ;;  %7273 = vmatmul.mubr.msk.f32.gmra.mrb[146].mxu0 %vm318_vm0, %v9009_v23 }
 0x13e   : > { %v896_v60 = vrot.slane %v729_v10, 1  ;;  %7193 = vmatmul.mubr.msk.f32.gmra.mrb[2].mxu1 %vm318_vm0, %v9009_v23  ;;  %7275 = vmatprep.mubr.msk.f32.mxu0 %vm318_vm0, %v9016_v24 }
 0x13f   : > { %7195 = vmatprep.mubr.msk.f32.mxu1 %vm318_vm0, %v9016_v24  ;;  %7596 = vmatpush3.bf16.msra.mxu0 %v7593_v18 }
 0x140   : > { %v9039_v16 = vsel %vm816_vm1, %v894_v28, %v896_v60  ;;  %v9042_v33 = vsel %vm816_vm1, %v896_v60, %v898_v29  ;;  %v6774_v34 = vpop.f32.mrb[42].mxu0  ;;  %v9076_v60 = vld [vmem:[%s8057_s28 + $0x80] sm:$0xff] }
 0x141   : > { %v902_v35 = vrot.slane %v6774_v34, 1  ;;  %v739_v26 = vpop.f32.mrb[43].mxu0  ;;  %7276 = vmatmul.mubr.msk.f32.gmra.mrb[148].mxu0 %vm318_vm0, %v9031_v14  ;;  %10466 = vst [vmem:[#allocation6_spill] sm:$0xff] %v9076_v60 }
 0x142   : > { %v900_v27 = vrot.slane %v739_v26, 1  ;;  %7196 = vmatmul.mubr.msk.f32.gmra.mrb[4].mxu1 %vm318_vm0, %v9031_v14  ;;  %7278 = vmatprep.mubr.msk.f32.mxu0 %vm318_vm0, %v9036_v15 }
 0x143   : > { %7198 = vmatprep.mubr.msk.f32.mxu1 %vm318_vm0, %v9036_v15 }
 0x144   : > { %v9059_v18 = vsel %vm816_vm1, %v898_v29, %v900_v27  ;;  %v9062_v28 = vsel %vm816_vm1, %v900_v27, %v902_v35  ;;  %v6777_v22 = vpop.f32.mrb[44].mxu0  ;;  %v9071_v29 = vld [vmem:[%s8057_s28 + $0x78] sm:$0xff] }
 0x145   : > { %10464 = vst [vmem:[#allocation4_spill] sm:$0xff] %v9062_v28  ;;  %v906_v21 = vrot.slane %v6777_v22, 1  ;;  %v749_v58 = vpop.f32.mrb[45].mxu0  ;;  %7279 = vmatmul.mubr.msk.f32.gmra.mrb[150].mxu0 %vm318_vm0, %v9051_v37  ;;  %10465 = vst [vmem:[#allocation5_spill] sm:$0xff] %v9071_v29  ;;  %v10454_v22 = vrot.slane %v8723_v32, 1 }
 0x146   : > { %v904_v10 = vrot.slane %v749_v58, 1  ;;  %7199 = vmatmul.mubr.msk.f32.gmra.mrb[6].mxu1 %vm318_vm0, %v9051_v37  ;;  %7281 = vmatprep.mubr.msk.f32.mxu0 %vm318_vm0, %v9056_v43 }
 0x147   : > { %7201 = vmatprep.mubr.msk.f32.mxu1 %vm318_vm0, %v9056_v43 }
 0x148   : > { %v9079_v34 = vsel %vm816_vm1, %v902_v35, %v904_v10  ;;  %v9082_v26 = vsel %vm816_vm1, %v904_v10, %v906_v21  ;;  %v9084_v27 = vpop.f32.mrb[46].mxu0  ;;  %v9094_v35 = vld [vmem:[%s8057_s28 + $0x88] sm:$0xff]  ;;  %v9099_v10 = vld [vmem:[%s8057_s28 + $0x90] sm:$0xff] }
 0x149   : > { %10467 = vst [vmem:[#allocation7_spill] sm:$0xff] %v9079_v34  ;;  %10468 = vst [vmem:[#allocation8_spill] sm:$0xff] %v9082_v26  ;;  %v759_v58 = vpop.f32.mrb[47].mxu0  ;;  %7282 = vmatmul.mubr.msk.f32.gmra.mrb[152].mxu0 %vm318_vm0, %v9071_v29 }
 0x14a   : > { %10469 = vst [vmem:[#allocation9_spill] sm:$0xff] %v9084_v27  ;;  %v908_v36 = vrot.slane %v759_v58, 1  ;;  %7202 = vmatmul.mubr.msk.f32.gmra.mrb[8].mxu1 %vm318_vm0, %v9071_v29  ;;  %7284 = vmatprep.mubr.msk.f32.mxu0 %vm318_vm0, %v9076_v60  ;;  %10470 = vst [vmem:[#allocation10_spill] sm:$0xff] %v9094_v35  ;;  %v10473_v58 = vrot.slane %v9084_v27, 1 }
 0x14b   : > { %7204 = vmatprep.mubr.msk.f32.mxu1 %vm318_vm0, %v9076_v60  ;;  %10471 = vst [vmem:[#allocation11_spill] sm:$0xff] %v9099_v10 }
 0x14c   : > { %v9103_v26 = vsel %vm816_vm1, %v906_v21, %v908_v36  ;;  %v9108_v29 = vsel %vm816_vm1, %v908_v36, %v10473_v58  ;;  %v6871_v34 = vpop.f32.mrb[48].mxu0  ;;  %v9120_v36 = vld [vmem:[%s8057_s28 + $0x98] sm:$0xff]  ;;  %v9125_v21 = vld [vmem:[%s8057_s28 + $0xa0] sm:$0xff] }
 0x14d   : > { %10472 = vst [vmem:[#allocation12_spill] sm:$0xff] %v9103_v26  ;;  %10474 = vst [vmem:[#allocation13_spill] sm:$0xff] %v9108_v29  ;;  %v1627_v43 = vrot.slane %v6871_v34, 2  ;;  %v9110_v37 = vpop.f32.mrb[49].mxu0  ;;  %7285 = vmatmul.mubr.msk.f32.gmra.mrb[154].mxu0 %vm318_vm0, %v9094_v35  ;;  %v10476_v34 = vrot.slane %v8721_v30, 1  ;;  %v9144_v30 = vld [vmem:[%s8057_s28 + $0xa8] sm:$0xff] }
 0x14e   : > { %v10453_v60 = vrot.slane %v9110_v37, 2  ;;  %7205 = vmatmul.mubr.msk.f32.gmra.mrb[10].mxu1 %vm318_vm0, %v9094_v35  ;;  %7287 = vmatprep.mubr.msk.f32.mxu0 %vm318_vm0, %v9099_v10  ;;  %10475 = vst [vmem:[#allocation14_spill] sm:$0xff] %v9120_v36 }
 0x14f   : > { %7207 = vmatprep.mubr.msk.f32.mxu1 %vm318_vm0, %v9099_v10  ;;  %v819_v58 = vsel %vm816_vm1, %v10454_v22, %v10476_v34 }
 0x150   : > { %v1628_v35 = vsel %vm1625_vm2, %v10453_v60, %v1627_v43  ;;  %v6874_v29 = vpop.f32.mrb[50].mxu0 }
 0x151   : > { %v9135_v26 = vadd.f32 %v1628_v35, %v819_v58  ;;  %v1631_v27 = vrot.slane %v6874_v29, 2  ;;  %v1348_v28 = vpop.f32.mrb[51].mxu0  ;;  %7288 = vmatmul.mubr.msk.f32.gmra.mrb[156].mxu0 %vm318_vm0, %v9120_v36  ;;  %v9149_v35 = vld [vmem:[%s8057_s28 + $0xb0] sm:$0xff] }
 0x152   : > { %v1629_v10 = vrot.slane %v1348_v28, 2  ;;  %7208 = vmatmul.mubr.msk.f32.gmra.mrb[12].mxu1 %vm318_vm0, %v9120_v36  ;;  %7290 = vmatprep.mubr.msk.f32.mxu0 %vm318_vm0, %v9125_v21 }
 0x153   : > { %10477 = vst [vmem:[#allocation15_spill] sm:$0xff] %v9135_v26  ;;  %7210 = vmatprep.mubr.msk.f32.mxu1 %vm318_vm0, %v9125_v21 }
 0x154   : > { %v1630_v29 = vsel %vm1625_vm2, %v1627_v43, %v1629_v10  ;;  %v1632_v34 = vsel %vm1625_vm2, %v1629_v10, %v1631_v27  ;;  %v6877_v28 = vpop.f32.mrb[52].mxu0  ;;  %v9166_v43 = vld [vmem:[%s8057_s28 + $0xb8] sm:$0xff] }
 0x155   : > { %v9154_v58 = vadd.f32 %v1630_v29, %v8745_v38  ;;  %v9157_v60 = vadd.f32 %v1632_v34, %v8748_v39  ;;  %v1635_v22 = vrot.slane %v6877_v28, 2  ;;  %v1358_v26 = vpop.f32.mrb[53].mxu0  ;;  %7291 = vmatmul.mubr.msk.f32.gmra.mrb[158].mxu0 %vm318_vm0, %v9144_v30  ;;  %v9171_v38 = vld [vmem:[%s8057_s28 + $0xc0] sm:$0xff] }
 0x156   : > { %v1633_v36 = vrot.slane %v1358_v26, 2  ;;  %7211 = vmatmul.mubr.msk.f32.gmra.mrb[14].mxu1 %vm318_vm0, %v9144_v30  ;;  %7293 = vmatprep.mubr.msk.f32.mxu0 %vm318_vm0, %v9149_v35 }
 0x157   : > { %10478 = vst [vmem:[#allocation16_spill] sm:$0xff] %v9154_v58  ;;  %10479 = vst [vmem:[#allocation17_spill] sm:$0xff] %v9157_v60  ;;  %7213 = vmatprep.mubr.msk.f32.mxu1 %vm318_vm0, %v9149_v35 }
 0x158   : > { %v1634_v39 = vsel %vm1625_vm2, %v1631_v27, %v1633_v36  ;;  %v1636_v10 = vsel %vm1625_vm2, %v1633_v36, %v1635_v22  ;;  %v6880_v26 = vpop.f32.mrb[54].mxu0  ;;  %v9188_v27 = vld [vmem:[%s8057_s28 + $0xc8] sm:$0xff] }
 0x159   : > { %v9176_v29 = vadd.f32 %v1634_v39, %v8759_v44  ;;  %v9179_v34 = vadd.f32 %v1636_v10, %v8762_v19  ;;  %v1639_v28 = vrot.slane %v6880_v26, 2  ;;  %v1368_v60 = vpop.f32.mrb[55].mxu0  ;;  %7294 = vmatmul.mubr.msk.f32.gmra.mrb[160].mxu0 %vm318_vm0, %v9166_v43  ;;  %v9193_v44 = vld [vmem:[%s8057_s28 + $0xd0] sm:$0xff] }
 0x15a   : > { %v1637_v58 = vrot.slane %v1368_v60, 2  ;;  %7214 = vmatmul.mubr.msk.f32.gmra.mrb[16].mxu1 %vm318_vm0, %v9166_v43  ;;  %7296 = vmatprep.mubr.msk.f32.mxu0 %vm318_vm0, %v9171_v38 }
 0x15b   : > { %10480 = vst [vmem:[#allocation18_spill] sm:$0xff] %v9176_v29  ;;  %10481 = vst [vmem:[#allocation19_spill] sm:$0xff] %v9179_v34  ;;  %7216 = vmatprep.mubr.msk.f32.mxu1 %vm318_vm0, %v9171_v38 }
 0x15c   : > { %v1638_v19 = vsel %vm1625_vm2, %v1635_v22, %v1637_v58  ;;  %v1640_v36 = vsel %vm1625_vm2, %v1637_v58, %v1639_v28  ;;  %v6883_v60 = vpop.f32.mrb[56].mxu0  ;;  %v9210_v22 = vld [vmem:[%s8057_s28 + $0xd8] sm:$0xff] }
 0x15d   : > { %v9198_v39 = vadd.f32 %v1638_v19, %v8773_v45  ;;  %v9201_v10 = vadd.f32 %v1640_v36, %v8776_v46  ;;  %v1643_v26 = vrot.slane %v6883_v60, 2  ;;  %v1378_v34 = vpop.f32.mrb[57].mxu0  ;;  %7297 = vmatmul.mubr.msk.f32.gmra.mrb[162].mxu0 %vm318_vm0, %v9188_v27  ;;  %v9215_v45 = vld [vmem:[%s8057_s28 + $0xe0] sm:$0xff] }
 0x15e   : > { %v1641_v29 = vrot.slane %v1378_v34, 2  ;;  %7217 = vmatmul.mubr.msk.f32.gmra.mrb[18].mxu1 %vm318_vm0, %v9188_v27  ;;  %7299 = vmatprep.mubr.msk.f32.mxu0 %vm318_vm0, %v9193_v44 }
 0x15f   : > { %10482 = vst [vmem:[#allocation20_spill] sm:$0xff] %v9198_v39  ;;  %10483 = vst [vmem:[#allocation21_spill] sm:$0xff] %v9201_v10  ;;  %7219 = vmatprep.mubr.msk.f32.mxu1 %vm318_vm0, %v9193_v44 }
 0x160   : > { %v1642_v46 = vsel %vm1625_vm2, %v1639_v28, %v1641_v29  ;;  %v1644_v58 = vsel %vm1625_vm2, %v1641_v29, %v1643_v26  ;;  %v6886_v34 = vpop.f32.mrb[58].mxu0  ;;  %v9232_v29 = vld [vmem:[%s8057_s28 + $0xe8] sm:$0xff] }
 0x161   : > { %v9220_v19 = vadd.f32 %v1642_v46, %v8787_v47  ;;  %v9223_v36 = vadd.f32 %v1644_v58, %v8790_v48  ;;  %v1647_v60 = vrot.slane %v6886_v34, 2  ;;  %v1388_v10 = vpop.f32.mrb[59].mxu0  ;;  %7300 = vmatmul.mubr.msk.f32.gmra.mrb[164].mxu0 %vm318_vm0, %v9210_v22  ;;  %v9237_v47 = vld [vmem:[%s8057_s28 + $0xf0] sm:$0xff] }
 0x162   : > { %v1645_v39 = vrot.slane %v1388_v10, 2  ;;  %7220 = vmatmul.mubr.msk.f32.gmra.mrb[20].mxu1 %vm318_vm0, %v9210_v22  ;;  %7302 = vmatprep.mubr.msk.f32.mxu0 %vm318_vm0, %v9215_v45 }
 0x163   : > { %10484 = vst [vmem:[#allocation22_spill] sm:$0xff] %v9220_v19  ;;  %10485 = vst [vmem:[#allocation23_spill] sm:$0xff] %v9223_v36  ;;  %7222 = vmatprep.mubr.msk.f32.mxu1 %vm318_vm0, %v9215_v45 }
 0x164   : > { %v1646_v48 = vsel %vm1625_vm2, %v1643_v26, %v1645_v39  ;;  %v1648_v28 = vsel %vm1625_vm2, %v1645_v39, %v1647_v60  ;;  %v6889_v10 = vpop.f32.mrb[60].mxu0  ;;  %v9254_v39 = vld [vmem:[%s8057_s28 + $0xf8] sm:$0xff] }
 0x165   : > { %v9242_v46 = vadd.f32 %v1646_v48, %v8801_v49  ;;  %v9245_v58 = vadd.f32 %v1648_v28, %v8804_v50  ;;  %v1651_v34 = vrot.slane %v6889_v10, 2  ;;  %v1398_v36 = vpop.f32.mrb[61].mxu0  ;;  %7303 = vmatmul.mubr.msk.f32.gmra.mrb[166].mxu0 %vm318_vm0, %v9232_v29  ;;  %v9259_v49 = vld [vmem:[%s8057_s28 + $0x100] sm:$0xff] }
 0x166   : > { %v1649_v19 = vrot.slane %v1398_v36, 2  ;;  %7223 = vmatmul.mubr.msk.f32.gmra.mrb[22].mxu1 %vm318_vm0, %v9232_v29  ;;  %7305 = vmatprep.mubr.msk.f32.mxu0 %vm318_vm0, %v9237_v47 }
 0x167   : > { %10486 = vst [vmem:[#allocation24_spill] sm:$0xff] %v9242_v46  ;;  %10487 = vst [vmem:[#allocation25_spill] sm:$0xff] %v9245_v58  ;;  %7225 = vmatprep.mubr.msk.f32.mxu1 %vm318_vm0, %v9237_v47 }
 0x168   : > { %v1650_v50 = vsel %vm1625_vm2, %v1647_v60, %v1649_v19  ;;  %v1652_v26 = vsel %vm1625_vm2, %v1649_v19, %v1651_v34  ;;  %v6892_v36 = vpop.f32.mrb[62].mxu0  ;;  %v9276_v19 = vld [vmem:[%s8057_s28 + $0x108] sm:$0xff] }
 0x169   : > { %v9264_v48 = vadd.f32 %v1650_v50, %v8815_v51  ;;  %v9267_v28 = vadd.f32 %v1652_v26, %v8818_v52  ;;  %v1655_v10 = vrot.slane %v6892_v36, 2  ;;  %v1408_v58 = vpop.f32.mrb[63].mxu0  ;;  %7306 = vmatmul.mubr.msk.f32.gmra.mrb[168].mxu0 %vm318_vm0, %v9254_v39  ;;  %v9281_v51 = vld [vmem:[%s8057_s28 + $0x110] sm:$0xff] }
 0x16a   : > { %v1653_v46 = vrot.slane %v1408_v58, 2  ;;  %7226 = vmatmul.mubr.msk.f32.gmra.mrb[24].mxu1 %vm318_vm0, %v9254_v39  ;;  %7308 = vmatprep.mubr.msk.f32.mxu0 %vm318_vm0, %v9259_v49 }
 0x16b   : > { %10488 = vst [vmem:[#allocation26_spill] sm:$0xff] %v9264_v48  ;;  %10489 = vst [vmem:[#allocation27_spill] sm:$0xff] %v9267_v28  ;;  %7228 = vmatprep.mubr.msk.f32.mxu1 %vm318_vm0, %v9259_v49 }
 0x16c   : > { %v1654_v52 = vsel %vm1625_vm2, %v1651_v34, %v1653_v46  ;;  %v1656_v60 = vsel %vm1625_vm2, %v1653_v46, %v1655_v10  ;;  %v6895_v58 = vpop.f32.mrb[64].mxu0  ;;  %v9298_v46 = vld [vmem:[%s8057_s28 + $0x118] sm:$0xff] }
 0x16d   : > { %v9286_v50 = vadd.f32 %v1654_v52, %v8829_v53  ;;  %v9289_v26 = vadd.f32 %v1656_v60, %v8832_v54  ;;  %v1659_v36 = vrot.slane %v6895_v58, 2  ;;  %v1418_v28 = vpop.f32.mrb[65].mxu0  ;;  %7309 = vmatmul.mubr.msk.f32.gmra.mrb[170].mxu0 %vm318_vm0, %v9276_v19  ;;  %v9303_v53 = vld [vmem:[%s8057_s28 + $0x120] sm:$0xff] }
 0x16e   : > { %v1657_v48 = vrot.slane %v1418_v28, 2  ;;  %7229 = vmatmul.mubr.msk.f32.gmra.mrb[26].mxu1 %vm318_vm0, %v9276_v19  ;;  %7311 = vmatprep.mubr.msk.f32.mxu0 %vm318_vm0, %v9281_v51 }
 0x16f   : > { %10490 = vst [vmem:[#allocation28_spill] sm:$0xff] %v9286_v50  ;;  %10491 = vst [vmem:[#allocation29_spill] sm:$0xff] %v9289_v26  ;;  %7231 = vmatprep.mubr.msk.f32.mxu1 %vm318_vm0, %v9281_v51 }
 0x170   : > { %v1658_v54 = vsel %vm1625_vm2, %v1655_v10, %v1657_v48  ;;  %v1660_v34 = vsel %vm1625_vm2, %v1657_v48, %v1659_v36  ;;  %v6898_v28 = vpop.f32.mrb[66].mxu0  ;;  %v9320_v48 = vld [vmem:[%s8057_s28 + $0x128] sm:$0xff] }
 0x171   : > { %v9308_v52 = vadd.f32 %v1658_v54, %v8843_v55  ;;  %v9311_v60 = vadd.f32 %v1660_v34, %v8846_v56  ;;  %v1663_v58 = vrot.slane %v6898_v28, 2  ;;  %v1428_v26 = vpop.f32.mrb[67].mxu0  ;;  %7312 = vmatmul.mubr.msk.f32.gmra.mrb[172].mxu0 %vm318_vm0, %v9298_v46  ;;  %v9325_v55 = vld [vmem:[%s8057_s28 + $0x130] sm:$0xff] }
 0x172   : > { %v1661_v50 = vrot.slane %v1428_v26, 2  ;;  %7232 = vmatmul.mubr.msk.f32.gmra.mrb[28].mxu1 %vm318_vm0, %v9298_v46  ;;  %7314 = vmatprep.mubr.msk.f32.mxu0 %vm318_vm0, %v9303_v53 }
 0x173   : > { %10492 = vst [vmem:[#allocation30_spill] sm:$0xff] %v9308_v52  ;;  %10493 = vst [vmem:[#allocation31_spill] sm:$0xff] %v9311_v60  ;;  %7234 = vmatprep.mubr.msk.f32.mxu1 %vm318_vm0, %v9303_v53 }
 0x174   : > { %v1662_v56 = vsel %vm1625_vm2, %v1659_v36, %v1661_v50  ;;  %v1664_v10 = vsel %vm1625_vm2, %v1661_v50, %v1663_v58  ;;  %v6901_v26 = vpop.f32.mrb[68].mxu0  ;;  %v9342_v50 = vld [vmem:[%s8057_s28 + $0x138] sm:$0xff] }
 0x175   : > { %v9330_v54 = vadd.f32 %v1662_v56, %v8857_v57  ;;  %v9333_v34 = vadd.f32 %v1664_v10, %v8860_v61  ;;  %v1667_v28 = vrot.slane %v6901_v26, 2  ;;  %v1438_v60 = vpop.f32.mrb[69].mxu0  ;;  %7315 = vmatmul.mubr.msk.f32.gmra.mrb[174].mxu0 %vm318_vm0, %v9320_v48  ;;  %v9347_v57 = vld [vmem:[%s8057_s28 + $0x140] sm:$0xff] }
 0x176   : > { %v1665_v52 = vrot.slane %v1438_v60, 2  ;;  %7235 = vmatmul.mubr.msk.f32.gmra.mrb[30].mxu1 %vm318_vm0, %v9320_v48  ;;  %7317 = vmatprep.mubr.msk.f32.mxu0 %vm318_vm0, %v9325_v55 }
 0x177   : > { %10494 = vst [vmem:[#allocation32_spill] sm:$0xff] %v9330_v54  ;;  %10495 = vst [vmem:[#allocation33_spill] sm:$0xff] %v9333_v34  ;;  %7237 = vmatprep.mubr.msk.f32.mxu1 %vm318_vm0, %v9325_v55 }
 0x178   : > { %v1666_v61 = vsel %vm1625_vm2, %v1663_v58, %v1665_v52  ;;  %v1668_v36 = vsel %vm1625_vm2, %v1665_v52, %v1667_v28  ;;  %v6904_v60 = vpop.f32.mrb[70].mxu0  ;;  %v9364_v52 = vld [vmem:[%s8057_s28 + $0x148] sm:$0xff] }
 0x179   : > { %v9352_v56 = vadd.f32 %v1666_v61, %v8871_v62  ;;  %v9355_v10 = vadd.f32 %v1668_v36, %v8874_v63  ;;  %v1671_v26 = vrot.slane %v6904_v60, 2  ;;  %v1448_v34 = vpop.f32.mrb[71].mxu0  ;;  %7318 = vmatmul.mubr.msk.f32.gmra.mrb[176].mxu0 %vm318_vm0, %v9342_v50  ;;  %v9369_v62 = vld [vmem:[%s8057_s28 + $0x150] sm:$0xff] }
 0x17a   : > { %v1669_v54 = vrot.slane %v1448_v34, 2  ;;  %7238 = vmatmul.mubr.msk.f32.gmra.mrb[32].mxu1 %vm318_vm0, %v9342_v50  ;;  %7320 = vmatprep.mubr.msk.f32.mxu0 %vm318_vm0, %v9347_v57 }
 0x17b   : > { %10496 = vst [vmem:[#allocation34_spill] sm:$0xff] %v9352_v56  ;;  %10497 = vst [vmem:[#allocation35_spill] sm:$0xff] %v9355_v10  ;;  %7240 = vmatprep.mubr.msk.f32.mxu1 %vm318_vm0, %v9347_v57 }
 0x17c   : > { %v1670_v63 = vsel %vm1625_vm2, %v1667_v28, %v1669_v54  ;;  %v1672_v58 = vsel %vm1625_vm2, %v1669_v54, %v1671_v26  ;;  %v6907_v34 = vpop.f32.mrb[72].mxu0  ;;  %v9386_v54 = vld [vmem:[%s8057_s28 + $0x158] sm:$0xff] }
 0x17d   : > { %v9374_v61 = vadd.f32 %v1670_v63, %v8885_v0  ;;  %v9377_v36 = vadd.f32 %v1672_v58, %v8888_v1  ;;  %v1675_v60 = vrot.slane %v6907_v34, 2  ;;  %v1458_v10 = vpop.f32.mrb[73].mxu0  ;;  %7321 = vmatmul.mubr.msk.f32.gmra.mrb[178].mxu0 %vm318_vm0, %v9364_v52  ;;  %v9391_v0 = vld [vmem:[%s8057_s28 + $0x160] sm:$0xff] }
 0x17e   : > { %v1673_v56 = vrot.slane %v1458_v10, 2  ;;  %7241 = vmatmul.mubr.msk.f32.gmra.mrb[34].mxu1 %vm318_vm0, %v9364_v52  ;;  %7323 = vmatprep.mubr.msk.f32.mxu0 %vm318_vm0, %v9369_v62 }
 0x17f   : > { %10498 = vst [vmem:[#allocation36_spill] sm:$0xff] %v9374_v61  ;;  %10499 = vst [vmem:[#allocation37_spill] sm:$0xff] %v9377_v36  ;;  %7243 = vmatprep.mubr.msk.f32.mxu1 %vm318_vm0, %v9369_v62 }
 0x180   : > { %v1674_v1 = vsel %vm1625_vm2, %v1671_v26, %v1673_v56  ;;  %v1676_v28 = vsel %vm1625_vm2, %v1673_v56, %v1675_v60  ;;  %v6910_v10 = vpop.f32.mrb[74].mxu0  ;;  %v9408_v56 = vld [vmem:[%s8057_s28 + $0x168] sm:$0xff] }
 0x181   : > { %v9396_v63 = vadd.f32 %v1674_v1, %v8899_v2  ;;  %v9399_v58 = vadd.f32 %v1676_v28, %v8902_v3  ;;  %v1679_v34 = vrot.slane %v6910_v10, 2  ;;  %v1468_v36 = vpop.f32.mrb[75].mxu0  ;;  %7324 = vmatmul.mubr.msk.f32.gmra.mrb[180].mxu0 %vm318_vm0, %v9386_v54  ;;  %v9413_v2 = vld [vmem:[%s8057_s28 + $0x170] sm:$0xff] }
 0x182   : > { %v1677_v61 = vrot.slane %v1468_v36, 2  ;;  %7244 = vmatmul.mubr.msk.f32.gmra.mrb[36].mxu1 %vm318_vm0, %v9386_v54  ;;  %7326 = vmatprep.mubr.msk.f32.mxu0 %vm318_vm0, %v9391_v0 }
 0x183   : > { %10500 = vst [vmem:[#allocation38_spill] sm:$0xff] %v9396_v63  ;;  %10501 = vst [vmem:[#allocation39_spill] sm:$0xff] %v9399_v58  ;;  %7246 = vmatprep.mubr.msk.f32.mxu1 %vm318_vm0, %v9391_v0 }
 0x184   : > { %v1678_v3 = vsel %vm1625_vm2, %v1675_v60, %v1677_v61  ;;  %v1680_v26 = vsel %vm1625_vm2, %v1677_v61, %v1679_v34  ;;  %v6913_v36 = vpop.f32.mrb[76].mxu0  ;;  %v9430_v61 = vld [vmem:[%s8057_s28 + $0x178] sm:$0xff] }
 0x185   : > { %v9418_v1 = vadd.f32 %v1678_v3, %v8913_v4  ;;  %v9421_v28 = vadd.f32 %v1680_v26, %v8916_v5  ;;  %v1683_v10 = vrot.slane %v6913_v36, 2  ;;  %v1478_v58 = vpop.f32.mrb[77].mxu0  ;;  %7327 = vmatmul.mubr.msk.f32.gmra.mrb[182].mxu0 %vm318_vm0, %v9408_v56  ;;  %v9435_v4 = vld [vmem:[%s8057_s28 + $0x180] sm:$0xff] }
 0x186   : > { %v1681_v63 = vrot.slane %v1478_v58, 2  ;;  %7247 = vmatmul.mubr.msk.f32.gmra.mrb[38].mxu1 %vm318_vm0, %v9408_v56  ;;  %7329 = vmatprep.mubr.msk.f32.mxu0 %vm318_vm0, %v9413_v2 }
 0x187   : > { %10502 = vst [vmem:[#allocation40_spill] sm:$0xff] %v9418_v1  ;;  %10503 = vst [vmem:[#allocation41_spill] sm:$0xff] %v9421_v28  ;;  %7249 = vmatprep.mubr.msk.f32.mxu1 %vm318_vm0, %v9413_v2 }
 0x188   : > { %v1682_v5 = vsel %vm1625_vm2, %v1679_v34, %v1681_v63  ;;  %v1684_v60 = vsel %vm1625_vm2, %v1681_v63, %v1683_v10  ;;  %v6916_v58 = vpop.f32.mrb[78].mxu0  ;;  %v9452_v63 = vld [vmem:[%s8057_s28 + $0x188] sm:$0xff] }
 0x189   : > { %v9440_v3 = vadd.f32 %v1682_v5, %v8927_v6  ;;  %v9443_v26 = vadd.f32 %v1684_v60, %v8930_v7  ;;  %v1687_v36 = vrot.slane %v6916_v58, 2  ;;  %v1488_v28 = vpop.f32.mrb[79].mxu0  ;;  %7330 = vmatmul.mubr.msk.f32.gmra.mrb[184].mxu0 %vm318_vm0, %v9430_v61  ;;  %v9457_v6 = vld [vmem:[%s8057_s28 + $0x190] sm:$0xff] }
 0x18a   : > { %v1685_v1 = vrot.slane %v1488_v28, 2  ;;  %7250 = vmatmul.mubr.msk.f32.gmra.mrb[40].mxu1 %vm318_vm0, %v9430_v61  ;;  %7332 = vmatprep.mubr.msk.f32.mxu0 %vm318_vm0, %v9435_v4 }
 0x18b   : > { %10504 = vst [vmem:[#allocation42_spill] sm:$0xff] %v9440_v3  ;;  %10505 = vst [vmem:[#allocation43_spill] sm:$0xff] %v9443_v26  ;;  %7252 = vmatprep.mubr.msk.f32.mxu1 %vm318_vm0, %v9435_v4 }
 0x18c   : > { %v1686_v7 = vsel %vm1625_vm2, %v1683_v10, %v1685_v1  ;;  %v1688_v34 = vsel %vm1625_vm2, %v1685_v1, %v1687_v36  ;;  %v6919_v28 = vpop.f32.mrb[80].mxu0  ;;  %v9474_v1 = vld [vmem:[%s8057_s28 + $0x198] sm:$0xff] }
 0x18d   : > { %v9462_v5 = vadd.f32 %v1686_v7, %v8941_v8  ;;  %v9465_v60 = vadd.f32 %v1688_v34, %v8944_v9  ;;  %v1691_v58 = vrot.slane %v6919_v28, 2  ;;  %v1498_v26 = vpop.f32.mrb[81].mxu0  ;;  %7333 = vmatmul.mubr.msk.f32.gmra.mrb[186].mxu0 %vm318_vm0, %v9452_v63  ;;  %v9479_v8 = vld [vmem:[%s8057_s28 + $0x1a0] sm:$0xff] }
 0x18e   : > { %v1689_v3 = vrot.slane %v1498_v26, 2  ;;  %7253 = vmatmul.mubr.msk.f32.gmra.mrb[42].mxu1 %vm318_vm0, %v9452_v63  ;;  %7335 = vmatprep.mubr.msk.f32.mxu0 %vm318_vm0, %v9457_v6 }
 0x18f   : > { %10506 = vst [vmem:[#allocation44_spill] sm:$0xff] %v9462_v5  ;;  %10507 = vst [vmem:[#allocation45_spill] sm:$0xff] %v9465_v60  ;;  %7255 = vmatprep.mubr.msk.f32.mxu1 %vm318_vm0, %v9457_v6 }
 0x190   : > { %v1690_v9 = vsel %vm1625_vm2, %v1687_v36, %v1689_v3  ;;  %v1692_v10 = vsel %vm1625_vm2, %v1689_v3, %v1691_v58  ;;  %v6922_v7 = vpop.f32.mrb[82].mxu0  ;;  %v9496_v3 = vld [vmem:[%s8057_s28 + $0x1a8] sm:$0xff] }
 0x191   : > { %v9484_v26 = vadd.f32 %v1690_v9, %v8955_v11  ;;  %v9487_v34 = vadd.f32 %v1692_v10, %v8958_v59  ;;  %v1695_v28 = vrot.slane %v6922_v7, 2  ;;  %v1508_v60 = vpop.f32.mrb[83].mxu0  ;;  %7336 = vmatmul.mubr.msk.f32.gmra.mrb[188].mxu0 %vm318_vm0, %v9474_v1 }
 0x192   : > { %v1693_v5 = vrot.slane %v1508_v60, 2  ;;  %7256 = vmatmul.mubr.msk.f32.gmra.mrb[44].mxu1 %vm318_vm0, %v9474_v1  ;;  %7338 = vmatprep.mubr.msk.f32.mxu0 %vm318_vm0, %v9479_v8 }
 0x193   : > { %10508 = vst [vmem:[#allocation46_spill] sm:$0xff] %v9487_v34  ;;  %7258 = vmatprep.mubr.msk.f32.mxu1 %vm318_vm0, %v9479_v8 }
 0x194   : > { %v1694_v11 = vsel %vm1625_vm2, %v1691_v58, %v1693_v5  ;;  %v1696_v59 = vsel %vm1625_vm2, %v1693_v5, %v1695_v28  ;;  %v6925_v36 = vpop.f32.mrb[84].mxu0 }
 0x195   : > { %v9503_v9 = vadd.f32 %v1694_v11, %v8972_v13  ;;  %v9506_v60 = vadd.f32 %v1696_v59, %v8975_v17  ;;  %v1699_v10 = vrot.slane %v6925_v36, 2  ;;  %v1518_v7 = vpop.f32.mrb[85].mxu0  ;;  %7339 = vmatmul.mubr.msk.f32.gmra.mrb[190].mxu0 %vm318_vm0, %v9496_v3 }
 0x196   : > { %v1697_v34 = vrot.slane %v1518_v7, 2  ;;  %7259 = vmatmul.mubr.msk.f32.gmra.mrb[46].mxu1 %vm318_vm0, %v9496_v3  ;;  %7349 = vmatprep.mubr.msk.f32.mxu0 %vm318_vm0, %v8969_v12 }
 0x198   : > { %v1698_v5 = vsel %vm1625_vm2, %v1695_v28, %v1697_v34  ;;  %v1700_v13 = vsel %vm1625_vm2, %v1697_v34, %v1699_v10  ;;  %v6928_v58 = vpop.f32.mrb[86].mxu0 }
 0x199   : > { %v9517_v17 = vadd.f32 %v1698_v5, %v8995_v41  ;;  %v9520_v11 = vadd.f32 %v1700_v13, %v8998_v42  ;;  %v1703_v59 = vrot.slane %v6928_v58, 2  ;;  %v1528_v36 = vpop.f32.mrb[87].mxu0  ;;  %7350 = vmatmul.mubr.msk.f32.vlgmr.msra.gmra.mrb[192].mxu0 %vm318_vm0, %v8990_v40  ;;  %v5226_v40 = vld [vmem:[%s10442_s3] sm:$0xff] }
 0x19a   : > { %v1701_v7 = vrot.slane %v1528_v36, 2  ;;  %7352 = vmatprep.mubr.msk.f32.mxu0 %vm318_vm0, %v9001_v20  ;;  %v5227_v20 = vld [vmem:[%s10442_s3 + $0x8] sm:$0xff] }
 0x19c   : > { %v1702_v12 = vsel %vm1625_vm2, %v1699_v10, %v1701_v7  ;;  %v1704_v34 = vsel %vm1625_vm2, %v1701_v7, %v1703_v59  ;;  %v6931_v28 = vpop.f32.mrb[88].mxu0 }
 0x19d   : > { %v9529_v41 = vadd.f32 %v1702_v12, %v9019_v25  ;;  %v9532_v42 = vadd.f32 %v1704_v34, %v9022_v31  ;;  %v1707_v5 = vrot.slane %v6931_v28, 2  ;;  %v1538_v13 = vpop.f32.mrb[89].mxu0  ;;  %7353 = vmatmul.mubr.msk.f32.gmra.mrb[194].mxu0 %vm318_vm0, %v9009_v23  ;;  %v7597_v25 = vpack.c.bf16 %v5227_v20, %v5226_v40 }
 0x19e   : > { %v1705_v10 = vrot.slane %v1538_v13, 2  ;;  %7355 = vmatprep.mubr.msk.f32.mxu0 %vm318_vm0, %v9016_v24 }
 0x19f   : > { %7598 = vmatprep.subr.bf16.mxu1 %v7597_v25 }
 0x1a0   : > { %v1706_v31 = vsel %vm1625_vm2, %v1703_v59, %v1705_v10  ;;  %v1708_v58 = vsel %vm1625_vm2, %v1705_v10, %v1707_v5  ;;  %v6934_v36 = vpop.f32.mrb[90].mxu0  ;;  %7600 = vmatpush3.bf16.msra.mxu1 %v7597_v25  ;;  %v10513_v25 = vld [vmem:[#allocation3_spill] sm:$0xff] }
 0x1a1   : > { %v9547_v23 = vadd.f32 %v1706_v31, %v9039_v16  ;;  %v9550_v7 = vadd.f32 %v1708_v58, %v9042_v33  ;;  %v1711_v12 = vrot.slane %v6934_v36, 2  ;;  %v1548_v34 = vpop.f32.mrb[91].mxu0  ;;  %7356 = vmatmul.mubr.msk.f32.gmra.mrb[196].mxu0 %vm318_vm0, %v9031_v14  ;;  %v10510_v33 = vld [vmem:[#allocation4_spill] sm:$0xff]  ;;  %v10512_v31 = vld [vmem:[#allocation2_spill] sm:$0xff]  ;;  %v10514_v36 = vld [vmem:[#allocation7_spill] sm:$0xff] }
 0x1a2   : > { %v1709_v24 = vrot.slane %v1548_v34, 2  ;;  %7358 = vmatprep.mubr.msk.f32.mxu0 %vm318_vm0, %v9036_v15  ;;  %v10516_v34 = vld [vmem:[#allocation8_spill] sm:$0xff] }
 0x1a4   : > { %v1710_v59 = vsel %vm1625_vm2, %v1707_v5, %v1709_v24  ;;  %v1712_v28 = vsel %vm1625_vm2, %v1709_v24, %v1711_v12  ;;  %v6937_v13 = vpop.f32.mrb[92].mxu0 }
 0x1a5   : > { %v9559_v16 = vadd.f32 %v1710_v59, %v9059_v18  ;;  %v9562_v40 = vadd.f32 %v1712_v28, %v10510_v33  ;;  %v1715_v20 = vrot.slane %v6937_v13, 2  ;;  %v1558_v10 = vpop.f32.mrb[93].mxu0  ;;  %7359 = vmatmul.mubr.msk.f32.gmra.mrb[198].mxu0 %vm318_vm0, %v10512_v31  ;;  %v10518_v13 = vld [vmem:[#allocation5_spill] sm:$0xff]  ;;  %v5228_v33 = vld [vmem:[%s10442_s3 + $0x10] sm:$0xff]  ;;  %v10519_v31 = vld [vmem:[#allocation6_spill] sm:$0xff] }
 0x1a6   : > { %v1713_v14 = vrot.slane %v1558_v10, 2  ;;  %7361 = vmatprep.mubr.msk.f32.mxu0 %vm318_vm0, %v10513_v25  ;;  %v10520_v25 = vrot.slane %v8723_v32, 1  ;;  %v10527_v32 = vld [vmem:[#allocation13_spill] sm:$0xff] }
 0x1a7   : > { %10509 = vst [vmem:[#allocation47_spill] sm:$0xff] %v9559_v16  ;;  %10511 = vst [vmem:[#allocation4_spill] sm:$0xff] %v9562_v40 }
 0x1a8   : > { %v1714_v15 = vsel %vm1625_vm2, %v1711_v12, %v1713_v14  ;;  %v1716_v5 = vsel %vm1625_vm2, %v1713_v14, %v1715_v20  ;;  %v6940_v58 = vpop.f32.mrb[94].mxu0  ;;  %v5229_v12 = vld [vmem:[%s10442_s3 + $0x18] sm:$0xff] }
 0x1a9   : > { %v9571_v18 = vadd.f32 %v1714_v15, %v10514_v36  ;;  %v9574_v24 = vadd.f32 %v1716_v5, %v10516_v34  ;;  %v1719_v59 = vrot.slane %v6940_v58, 2  ;;  %v1568_v28 = vpop.f32.mrb[95].mxu0  ;;  %7362 = vmatmul.mubr.msk.f32.gmra.mrb[200].mxu0 %vm318_vm0, %v10518_v13  ;;  %v7601_v14 = vpack.c.bf16 %v5229_v12, %v5228_v33  ;;  %v10521_v15 = vld [vmem:[#allocation9_spill] sm:$0xff] }
 0x1aa   : > { %v1717_v10 = vrot.slane %v1568_v28, 2  ;;  %7364 = vmatprep.mubr.msk.f32.mxu0 %vm318_vm0, %v10519_v31  ;;  %v10522_v5 = vrot.slane %v10521_v15, 1  ;;  %v10523_v36 = vrot.slane %v9110_v37, 2  ;;  %v10525_v31 = vld [vmem:[#allocation12_spill] sm:$0xff]  ;;  %v10530_v37 = vld [vmem:[#allocation10_spill] sm:$0xff] }
 0x1ab   : > { %10515 = vst [vmem:[#allocation2_spill] sm:$0xff] %v9571_v18  ;;  %10517 = vst [vmem:[#allocation3_spill] sm:$0xff] %v9574_v24  ;;  %7602 = vmatprep.subr.bf16.mxu1 %v7601_v14 }
 0x1ac   : > { %v961_v58 = vsel %vm816_vm1, %v10522_v5, %v10520_v25  ;;  %v1770_v34 = vsel %vm1625_vm2, %v1719_v59, %v10523_v36  ;;  %v1718_v24 = vsel %vm1625_vm2, %v1715_v20, %v1717_v10  ;;  %v1720_v28 = vsel %vm1625_vm2, %v1717_v10, %v1719_v59  ;;  %v7031_v18 = vpop.f32.mrb[96].mxu0  ;;  %7604 = vmatpush3.bf16.msra.mxu1 %v7601_v14  ;;  %v10532_v10 = vld [vmem:[#allocation11_spill] sm:$0xff] }
 0x1ad   : > { %v9594_v13 = vadd.f32 %v1770_v34, %v961_v58  ;;  %v9599_v33 = vadd.f32 %v1718_v24, %v10525_v31  ;;  %v9602_v12 = vadd.f32 %v1720_v28, %v10527_v32  ;;  %v2728_v15 = vrot.slane %v7031_v18, 1  ;;  %v9604_v25 = vpop.f32.mrb[97].mxu0  ;;  %7365 = vmatmul.mubr.msk.f32.gmra.mrb[202].mxu0 %vm318_vm0, %v10530_v37  ;;  %v7111_v5 = vpop.f32.mrb[48].mxu1  ;;  %v10533_v31 = vld [vmem:[#allocation14_spill] sm:$0xff]  ;;  %v10534_v37 = vld [vmem:[#allocation15_spill] sm:$0xff] }
 0x1ae   : > { %10529 = vst [vmem:[#allocation6_spill] sm:$0xff] %v9604_v25  ;;  %v10456_v20 = vrot.slane %v9604_v25, 1  ;;  %v3279_v58 = vrot.slane %v7111_v5, 2  ;;  %v9609_v59 = vpop.f32.mrb[49].mxu1  ;;  %7367 = vmatprep.mubr.msk.f32.mxu0 %vm318_vm0, %v10532_v10 }
 0x1af   : > { %10524 = vst [vmem:[#allocation7_spill] sm:$0xff] %v9594_v13  ;;  %10526 = vst [vmem:[#allocation8_spill] sm:$0xff] %v9599_v33  ;;  %v10459_v24 = vrot.slane %v9609_v59, 2 }
 0x1b0   : > { %10528 = vst [vmem:[#allocation5_spill] sm:$0xff] %v9602_v12  ;;  %10531 = vst [vmem:[#allocation9_spill] sm:$0xff] %v9609_v59  ;;  %v2729_v18 = vsel %vm816_vm1, %v10456_v20, %v2728_v15  ;;  %v7034_v36 = vpop.f32.mrb[98].mxu0 }
 0x1b1   : > { %v2732_v34 = vrot.slane %v7034_v36, 1  ;;  %v2450_v28 = vpop.f32.mrb[99].mxu0  ;;  %7368 = vmatmul.mubr.msk.f32.gmra.mrb[204].mxu0 %vm318_vm0, %v10533_v31  ;;  %v7114_v14 = vpop.f32.mrb[50].mxu1  ;;  %v3280_v32 = vsel %vm1625_vm2, %v10459_v24, %v3279_v58  ;;  %v7634_v5 = vadd.f32 %v10534_v37, %v2729_v18 }
 0x1b2   : > { %v2730_v10 = vrot.slane %v2450_v28, 1  ;;  %v3283_v12 = vrot.slane %v7114_v14, 2  ;;  %v3001_v13 = vpop.f32.mrb[51].mxu1  ;;  %7370 = vmatprep.mubr.msk.f32.mxu0 %vm318_vm0, %v9125_v21  ;;  %v10536_v14 = vld [vmem:[#allocation16_spill] sm:$0xff] }
 0x1b3   : > { %v3281_v20 = vrot.slane %v3001_v13, 2  ;;  %v9625_v33 = vadd.f32 %v7634_v5, %v3280_v32  ;;  %v5230_v13 = vld [vmem:[%s10442_s3 + $0x20] sm:$0xff] }
 0x1b4   : > { %v2731_v36 = vsel %vm816_vm1, %v2728_v15, %v2730_v10  ;;  %v2733_v31 = vsel %vm816_vm1, %v2730_v10, %v2732_v34  ;;  %v7037_v25 = vpop.f32.mrb[100].mxu0  ;;  %v5231_v15 = vld [vmem:[%s10442_s3 + $0x28] sm:$0xff] }
 0x1b5   : > { %10535 = vst [vmem:[#allocation12_spill] sm:$0xff] %v9625_v33  ;;  %v2736_v40 = vrot.slane %v7037_v25, 1  ;;  %v2460_v59 = vpop.f32.mrb[101].mxu0  ;;  %7371 = vmatmul.mubr.msk.f32.gmra.mrb[206].mxu0 %vm318_vm0, %v9144_v30  ;;  %v7117_v18 = vpop.f32.mrb[52].mxu1  ;;  %v3282_v28 = vsel %vm1625_vm2, %v3279_v58, %v3281_v20  ;;  %v7630_v37 = vadd.f32 %v10536_v14, %v2731_v36  ;;  %v3284_v21 = vsel %vm1625_vm2, %v3281_v20, %v3283_v12  ;;  %v10537_v30 = vld [vmem:[#allocation17_spill] sm:$0xff] }
 0x1b6   : > { %v2734_v25 = vrot.slane %v2460_v59, 1  ;;  %v3287_v32 = vrot.slane %v7117_v18, 2  ;;  %v3011_v5 = vpop.f32.mrb[53].mxu1  ;;  %7373 = vmatprep.mubr.msk.f32.mxu0 %vm318_vm0, %v9149_v35  ;;  %v7642_v58 = vadd.f32 %v10537_v30, %v2733_v31  ;;  %v7605_v10 = vpack.c.bf16 %v5231_v15, %v5230_v13  ;;  %v10538_v13 = vld [vmem:[#allocation18_spill] sm:$0xff] }
 0x1b7   : > { %v3285_v36 = vrot.slane %v3011_v5, 2  ;;  %v9643_v14 = vadd.f32 %v7630_v37, %v3282_v28 }
 0x1b8   : > { %v2735_v20 = vsel %vm816_vm1, %v2732_v34, %v2734_v25  ;;  %v2737_v24 = vsel %vm816_vm1, %v2734_v25, %v2736_v40  ;;  %v7040_v33 = vpop.f32.mrb[102].mxu0  ;;  %v9647_v16 = vadd.f32 %v7642_v58, %v3284_v21  ;;  %7606 = vmatprep.subr.bf16.mxu1 %v7605_v10  ;;  %v10539_v21 = vld [vmem:[#allocation19_spill] sm:$0xff] }
 0x1b9   : > { %v2740_v59 = vrot.slane %v7040_v33, 1  ;;  %v2470_v18 = vpop.f32.mrb[103].mxu0  ;;  %7374 = vmatmul.mubr.msk.f32.gmra.mrb[208].mxu0 %vm318_vm0, %v9166_v43  ;;  %v7120_v35 = vpop.f32.mrb[54].mxu1  ;;  %v3286_v31 = vsel %vm1625_vm2, %v3283_v12, %v3285_v36  ;;  %v7638_v15 = vadd.f32 %v10538_v13, %v2735_v20  ;;  %v3288_v28 = vsel %vm1625_vm2, %v3285_v36, %v3287_v32  ;;  %7608 = vmatpush3.bf16.msra.mxu1 %v7605_v10 }
 0x1ba   : > { %v2738_v34 = vrot.slane %v2470_v18, 1  ;;  %v3291_v37 = vrot.slane %v7120_v35, 2  ;;  %v3021_v25 = vpop.f32.mrb[55].mxu1  ;;  %7376 = vmatprep.mubr.msk.f32.mxu0 %vm318_vm0, %v9171_v38  ;;  %v7650_v33 = vadd.f32 %v10539_v21, %v2737_v24  ;;  %v10540_v35 = vld [vmem:[#allocation20_spill] sm:$0xff] }
 0x1bb   : > { %v3289_v5 = vrot.slane %v3021_v25, 2  ;;  %v9657_v30 = vadd.f32 %v7638_v15, %v3286_v31 }
 0x1bc   : > { %v2739_v43 = vsel %vm816_vm1, %v2736_v40, %v2738_v34  ;;  %v2741_v12 = vsel %vm816_vm1, %v2738_v34, %v2740_v59  ;;  %v7043_v58 = vpop.f32.mrb[104].mxu0  ;;  %v9661_v20 = vadd.f32 %v7650_v33, %v3288_v28  ;;  %v10541_v28 = vld [vmem:[#allocation21_spill] sm:$0xff] }
 0x1bd   : > { %v2744_v36 = vrot.slane %v7043_v58, 1  ;;  %v2480_v10 = vpop.f32.mrb[105].mxu0  ;;  %7377 = vmatmul.mubr.msk.f32.gmra.mrb[210].mxu0 %vm318_vm0, %v9188_v27  ;;  %v7123_v18 = vpop.f32.mrb[56].mxu1  ;;  %v3290_v38 = vsel %vm1625_vm2, %v3287_v32, %v3289_v5  ;;  %v7646_v24 = vadd.f32 %v10540_v35, %v2739_v43  ;;  %v3292_v31 = vsel %vm1625_vm2, %v3289_v5, %v3291_v37  ;;  %v5233_v35 = vld [vmem:[%s10442_s3 + $0x38] sm:$0xff] }
 0x1be   : > { %v2742_v13 = vrot.slane %v2480_v10, 1  ;;  %v3295_v15 = vrot.slane %v7123_v18, 2  ;;  %v3031_v40 = vpop.f32.mrb[57].mxu1  ;;  %7379 = vmatprep.mubr.msk.f32.mxu0 %vm318_vm0, %v9193_v44  ;;  %v7658_v34 = vadd.f32 %v10541_v28, %v2741_v12  ;;  %v10542_v18 = vld [vmem:[#allocation22_spill] sm:$0xff] }
 0x1bf   : > { %v3293_v25 = vrot.slane %v3031_v40, 2  ;;  %v9671_v21 = vadd.f32 %v7646_v24, %v3290_v38 }
 0x1c0   : > { %v2743_v27 = vsel %vm816_vm1, %v2740_v59, %v2742_v13  ;;  %v2745_v33 = vsel %vm816_vm1, %v2742_v13, %v2744_v36  ;;  %v7046_v32 = vpop.f32.mrb[106].mxu0  ;;  %v9675_v58 = vadd.f32 %v7658_v34, %v3292_v31  ;;  %v5232_v59 = vld [vmem:[%s10442_s3 + $0x30] sm:$0xff] }
 0x1c1   : > { %v2748_v43 = vrot.slane %v7046_v32, 1  ;;  %v2490_v5 = vpop.f32.mrb[107].mxu0  ;;  %7380 = vmatmul.mubr.msk.f32.gmra.mrb[212].mxu0 %vm318_vm0, %v9210_v22  ;;  %v7126_v10 = vpop.f32.mrb[58].mxu1  ;;  %v3294_v44 = vsel %vm1625_vm2, %v3291_v37, %v3293_v25  ;;  %v7654_v12 = vadd.f32 %v10542_v18, %v2743_v27  ;;  %v3296_v38 = vsel %vm1625_vm2, %v3293_v25, %v3295_v15  ;;  %v10543_v22 = vld [vmem:[#allocation23_spill] sm:$0xff] }
 0x1c2   : > { %v2746_v24 = vrot.slane %v2490_v5, 1  ;;  %v3299_v31 = vrot.slane %v7126_v10, 2  ;;  %v3041_v13 = vpop.f32.mrb[59].mxu1  ;;  %7382 = vmatprep.mubr.msk.f32.mxu0 %vm318_vm0, %v9215_v45  ;;  %v7666_v37 = vadd.f32 %v10543_v22, %v2745_v33  ;;  %v7609_v40 = vpack.c.bf16 %v5233_v35, %v5232_v59  ;;  %v10544_v59 = vld [vmem:[#allocation24_spill] sm:$0xff] }
 0x1c3   : > { %v3297_v28 = vrot.slane %v3041_v13, 2  ;;  %v9691_v34 = vadd.f32 %v7654_v12, %v3294_v44 }
 0x1c4   : > { %v2747_v25 = vsel %vm816_vm1, %v2744_v36, %v2746_v24  ;;  %v2749_v27 = vsel %vm816_vm1, %v2746_v24, %v2748_v43  ;;  %v7049_v32 = vpop.f32.mrb[108].mxu0  ;;  %v9695_v18 = vadd.f32 %v7666_v37, %v3296_v38  ;;  %7610 = vmatprep.subr.bf16.mxu1 %v7609_v40  ;;  %v10545_v38 = vld [vmem:[#allocation25_spill] sm:$0xff] }
 0x1c5   : > { %v2752_v5 = vrot.slane %v7049_v32, 1  ;;  %v2500_v10 = vpop.f32.mrb[109].mxu0  ;;  %7383 = vmatmul.mubr.msk.f32.gmra.mrb[214].mxu0 %vm318_vm0, %v9232_v29  ;;  %v7129_v45 = vpop.f32.mrb[60].mxu1  ;;  %v3298_v33 = vsel %vm1625_vm2, %v3295_v15, %v3297_v28  ;;  %v7662_v35 = vadd.f32 %v10544_v59, %v2747_v25  ;;  %v3300_v44 = vsel %vm1625_vm2, %v3297_v28, %v3299_v31  ;;  %7612 = vmatpush3.bf16.msra.mxu1 %v7609_v40 }
 0x1c6   : > { %v2750_v36 = vrot.slane %v2500_v10, 1  ;;  %v3303_v12 = vrot.slane %v7129_v45, 2  ;;  %v3051_v24 = vpop.f32.mrb[61].mxu1  ;;  %7385 = vmatprep.mubr.msk.f32.mxu0 %vm318_vm0, %v9237_v47  ;;  %v7674_v13 = vadd.f32 %v10545_v38, %v2749_v27  ;;  %v10546_v45 = vld [vmem:[#allocation26_spill] sm:$0xff] }
 0x1c7   : > { %v3301_v22 = vrot.slane %v3051_v24, 2  ;;  %v9705_v37 = vadd.f32 %v7662_v35, %v3298_v33 }
 0x1c8   : > { %v2751_v29 = vsel %vm816_vm1, %v2748_v43, %v2750_v36  ;;  %v2753_v15 = vsel %vm816_vm1, %v2750_v36, %v2752_v5  ;;  %v7052_v32 = vpop.f32.mrb[110].mxu0  ;;  %v9709_v25 = vadd.f32 %v7674_v13, %v3300_v44  ;;  %v10547_v44 = vld [vmem:[#allocation27_spill] sm:$0xff] }
 0x1c9   : > { %v2756_v28 = vrot.slane %v7052_v32, 1  ;;  %v2510_v40 = vpop.f32.mrb[111].mxu0  ;;  %7386 = vmatmul.mubr.msk.f32.gmra.mrb[216].mxu0 %vm318_vm0, %v9254_v39  ;;  %v7132_v10 = vpop.f32.mrb[62].mxu1  ;;  %v3302_v47 = vsel %vm1625_vm2, %v3299_v31, %v3301_v22  ;;  %v7670_v27 = vadd.f32 %v10546_v45, %v2751_v29  ;;  %v3304_v33 = vsel %vm1625_vm2, %v3301_v22, %v3303_v12  ;;  %v5235_v45 = vld [vmem:[%s10442_s3 + $0x48] sm:$0xff] }
 0x1ca   : > { %v2754_v59 = vrot.slane %v2510_v40, 1  ;;  %v3307_v35 = vrot.slane %v7132_v10, 2  ;;  %v3061_v43 = vpop.f32.mrb[63].mxu1  ;;  %7388 = vmatprep.mubr.msk.f32.mxu0 %vm318_vm0, %v9259_v49  ;;  %v7682_v36 = vadd.f32 %v10547_v44, %v2753_v15  ;;  %v10548_v10 = vld [vmem:[#allocation28_spill] sm:$0xff] }
 0x1cb   : > { %v3305_v24 = vrot.slane %v3061_v43, 2  ;;  %v9719_v38 = vadd.f32 %v7670_v27, %v3302_v47 }
 0x1cc   : > { %v2755_v39 = vsel %vm816_vm1, %v2752_v5, %v2754_v59  ;;  %v2757_v13 = vsel %vm816_vm1, %v2754_v59, %v2756_v28  ;;  %v7055_v31 = vpop.f32.mrb[112].mxu0  ;;  %v9723_v32 = vadd.f32 %v7682_v36, %v3304_v33  ;;  %v5234_v5 = vld [vmem:[%s10442_s3 + $0x40] sm:$0xff] }
 0x1cd   : > { %v2760_v29 = vrot.slane %v7055_v31, 1  ;;  %v2520_v22 = vpop.f32.mrb[113].mxu0  ;;  %7389 = vmatmul.mubr.msk.f32.gmra.mrb[218].mxu0 %vm318_vm0, %v9276_v19  ;;  %v7135_v40 = vpop.f32.mrb[64].mxu1  ;;  %v3306_v49 = vsel %vm1625_vm2, %v3303_v12, %v3305_v24  ;;  %v7678_v15 = vadd.f32 %v10548_v10, %v2755_v39  ;;  %v3308_v47 = vsel %vm1625_vm2, %v3305_v24, %v3307_v35  ;;  %v10549_v19 = vld [vmem:[#allocation29_spill] sm:$0xff] }
 0x1ce   : > { %v2758_v27 = vrot.slane %v2520_v22, 1  ;;  %v3311_v33 = vrot.slane %v7135_v40, 2  ;;  %v3071_v59 = vpop.f32.mrb[65].mxu1  ;;  %7391 = vmatprep.mubr.msk.f32.mxu0 %vm318_vm0, %v9281_v51  ;;  %v7690_v12 = vadd.f32 %v10549_v19, %v2757_v13  ;;  %v7613_v43 = vpack.c.bf16 %v5235_v45, %v5234_v5  ;;  %v10550_v5 = vld [vmem:[#allocation30_spill] sm:$0xff] }
 0x1cf   : > { %v3309_v44 = vrot.slane %v3071_v59, 2  ;;  %v9739_v36 = vadd.f32 %v7678_v15, %v3306_v49 }
 0x1d0   : > { %v2759_v24 = vsel %vm816_vm1, %v2756_v28, %v2758_v27  ;;  %v2761_v39 = vsel %vm816_vm1, %v2758_v27, %v2760_v29  ;;  %v7058_v31 = vpop.f32.mrb[114].mxu0  ;;  %v9743_v10 = vadd.f32 %v7690_v12, %v3308_v47  ;;  %7614 = vmatprep.subr.bf16.mxu1 %v7613_v43  ;;  %v10551_v47 = vld [vmem:[#allocation31_spill] sm:$0xff] }
 0x1d1   : > { %v2764_v22 = vrot.slane %v7058_v31, 1  ;;  %v2530_v40 = vpop.f32.mrb[115].mxu0  ;;  %7392 = vmatmul.mubr.msk.f32.gmra.mrb[220].mxu0 %vm318_vm0, %v9298_v46  ;;  %v7138_v51 = vpop.f32.mrb[66].mxu1  ;;  %v3310_v13 = vsel %vm1625_vm2, %v3307_v35, %v3309_v44  ;;  %v7686_v45 = vadd.f32 %v10550_v5, %v2759_v24  ;;  %v3312_v49 = vsel %vm1625_vm2, %v3309_v44, %v3311_v33  ;;  %7616 = vmatpush3.bf16.msra.mxu1 %v7613_v43 }
 0x1d2   : > { %v2762_v28 = vrot.slane %v2530_v40, 1  ;;  %v3315_v15 = vrot.slane %v7138_v51, 2  ;;  %v3081_v27 = vpop.f32.mrb[67].mxu1  ;;  %7394 = vmatprep.mubr.msk.f32.mxu0 %vm318_vm0, %v9303_v53  ;;  %v7698_v59 = vadd.f32 %v10551_v47, %v2761_v39  ;;  %v10552_v51 = vld [vmem:[#allocation32_spill] sm:$0xff] }
 0x1d3   : > { %v3313_v19 = vrot.slane %v3081_v27, 2  ;;  %v9753_v12 = vadd.f32 %v7686_v45, %v3310_v13 }
 0x1d4   : > { %v2763_v46 = vsel %vm816_vm1, %v2760_v29, %v2762_v28  ;;  %v2765_v35 = vsel %vm816_vm1, %v2762_v28, %v2764_v22  ;;  %v7061_v31 = vpop.f32.mrb[116].mxu0  ;;  %v9757_v24 = vadd.f32 %v7698_v59, %v3312_v49  ;;  %v10553_v49 = vld [vmem:[#allocation33_spill] sm:$0xff] }
 0x1d5   : > { %v2768_v44 = vrot.slane %v7061_v31, 1  ;;  %v2540_v43 = vpop.f32.mrb[117].mxu0  ;;  %7395 = vmatmul.mubr.msk.f32.gmra.mrb[222].mxu0 %vm318_vm0, %v9320_v48  ;;  %v7141_v40 = vpop.f32.mrb[68].mxu1  ;;  %v3314_v53 = vsel %vm1625_vm2, %v3311_v33, %v3313_v19  ;;  %v7694_v39 = vadd.f32 %v10552_v51, %v2763_v46  ;;  %v3316_v13 = vsel %vm1625_vm2, %v3313_v19, %v3315_v15  ;;  %v5237_v51 = vld [vmem:[%s10442_s3 + $0x58] sm:$0xff] }
 0x1d6   : > { %v2766_v5 = vrot.slane %v2540_v43, 1  ;;  %v3319_v45 = vrot.slane %v7141_v40, 2  ;;  %v3091_v29 = vpop.f32.mrb[69].mxu1  ;;  %7397 = vmatprep.mubr.msk.f32.mxu0 %vm318_vm0, %v9325_v55  ;;  %v7706_v28 = vadd.f32 %v10553_v49, %v2765_v35  ;;  %v10554_v40 = vld [vmem:[#allocation34_spill] sm:$0xff] }
 0x1d7   : > { %v3317_v27 = vrot.slane %v3091_v29, 2  ;;  %v9767_v47 = vadd.f32 %v7694_v39, %v3314_v53 }
 0x1d8   : > { %v2767_v48 = vsel %vm816_vm1, %v2764_v22, %v2766_v5  ;;  %v2769_v59 = vsel %vm816_vm1, %v2766_v5, %v2768_v44  ;;  %v7064_v33 = vpop.f32.mrb[118].mxu0  ;;  %v9771_v31 = vadd.f32 %v7706_v28, %v3316_v13  ;;  %v5236_v22 = vld [vmem:[%s10442_s3 + $0x50] sm:$0xff] }
 0x1d9   : > { %v2772_v46 = vrot.slane %v7064_v33, 1  ;;  %v2550_v19 = vpop.f32.mrb[119].mxu0  ;;  %7398 = vmatmul.mubr.msk.f32.gmra.mrb[224].mxu0 %vm318_vm0, %v9342_v50  ;;  %v7144_v43 = vpop.f32.mrb[70].mxu1  ;;  %v3318_v55 = vsel %vm1625_vm2, %v3315_v15, %v3317_v27  ;;  %v7702_v35 = vadd.f32 %v10554_v40, %v2767_v48  ;;  %v3320_v53 = vsel %vm1625_vm2, %v3317_v27, %v3319_v45  ;;  %v10555_v50 = vld [vmem:[#allocation35_spill] sm:$0xff] }
 0x1da   : > { %v2770_v39 = vrot.slane %v2550_v19, 1  ;;  %v3323_v13 = vrot.slane %v7144_v43, 2  ;;  %v3101_v5 = vpop.f32.mrb[71].mxu1  ;;  %7400 = vmatprep.mubr.msk.f32.mxu0 %vm318_vm0, %v9347_v57  ;;  %v7714_v15 = vadd.f32 %v10555_v50, %v2769_v59  ;;  %v7617_v29 = vpack.c.bf16 %v5237_v51, %v5236_v22  ;;  %v10556_v22 = vld [vmem:[#allocation36_spill] sm:$0xff] }
 0x1db   : > { %v3321_v49 = vrot.slane %v3101_v5, 2  ;;  %v9787_v28 = vadd.f32 %v7702_v35, %v3318_v55 }
 0x1dc   : > { %v2771_v27 = vsel %vm816_vm1, %v2768_v44, %v2770_v39  ;;  %v2773_v48 = vsel %vm816_vm1, %v2770_v39, %v2772_v46  ;;  %v7067_v33 = vpop.f32.mrb[120].mxu0  ;;  %v9791_v40 = vadd.f32 %v7714_v15, %v3320_v53  ;;  %7618 = vmatprep.subr.bf16.mxu1 %v7617_v29  ;;  %v10557_v53 = vld [vmem:[#allocation37_spill] sm:$0xff] }
 0x1dd   : > { %v2776_v19 = vrot.slane %v7067_v33, 1  ;;  %v2560_v43 = vpop.f32.mrb[121].mxu0  ;;  %7401 = vmatmul.mubr.msk.f32.gmra.mrb[226].mxu0 %vm318_vm0, %v9364_v52  ;;  %v7147_v57 = vpop.f32.mrb[72].mxu1  ;;  %v3322_v59 = vsel %vm1625_vm2, %v3319_v45, %v3321_v49  ;;  %v7710_v51 = vadd.f32 %v10556_v22, %v2771_v27  ;;  %v3324_v55 = vsel %vm1625_vm2, %v3321_v49, %v3323_v13  ;;  %7620 = vmatpush3.bf16.msra.mxu1 %v7617_v29 }
 0x1de   : > { %v2774_v44 = vrot.slane %v2560_v43, 1  ;;  %v3327_v35 = vrot.slane %v7147_v57, 2  ;;  %v3111_v39 = vpop.f32.mrb[73].mxu1  ;;  %7403 = vmatprep.mubr.msk.f32.mxu0 %vm318_vm0, %v9369_v62  ;;  %v7722_v5 = vadd.f32 %v10557_v53, %v2773_v48  ;;  %v10558_v57 = vld [vmem:[#allocation38_spill] sm:$0xff] }
 0x1df   : > { %v3325_v50 = vrot.slane %v3111_v39, 2  ;;  %v9801_v15 = vadd.f32 %v7710_v51, %v3322_v59 }
 0x1e0   : > { %v2775_v52 = vsel %vm816_vm1, %v2772_v46, %v2774_v44  ;;  %v2777_v45 = vsel %vm816_vm1, %v2774_v44, %v2776_v19  ;;  %v7070_v33 = vpop.f32.mrb[122].mxu0  ;;  %v9805_v27 = vadd.f32 %v7722_v5, %v3324_v55  ;;  %v10559_v55 = vld [vmem:[#allocation39_spill] sm:$0xff] }
 0x1e1   : > { %v2780_v49 = vrot.slane %v7070_v33, 1  ;;  %v2570_v29 = vpop.f32.mrb[123].mxu0  ;;  %7404 = vmatmul.mubr.msk.f32.gmra.mrb[228].mxu0 %vm318_vm0, %v9386_v54  ;;  %v7150_v43 = vpop.f32.mrb[74].mxu1  ;;  %v3326_v62 = vsel %vm1625_vm2, %v3323_v13, %v3325_v50  ;;  %v7718_v48 = vadd.f32 %v10558_v57, %v2775_v52  ;;  %v3328_v59 = vsel %vm1625_vm2, %v3325_v50, %v3327_v35  ;;  %v5239_v57 = vld [vmem:[%s10442_s3 + $0x68] sm:$0xff] }
 0x1e2   : > { %v2778_v22 = vrot.slane %v2570_v29, 1  ;;  %v3331_v51 = vrot.slane %v7150_v43, 2  ;;  %v3121_v46 = vpop.f32.mrb[75].mxu1  ;;  %7406 = vmatprep.mubr.msk.f32.mxu0 %vm318_vm0, %v9391_v0  ;;  %v7730_v44 = vadd.f32 %v10559_v55, %v2777_v45  ;;  %v10560_v43 = vld [vmem:[#allocation40_spill] sm:$0xff] }
 0x1e3   : > { %v3329_v39 = vrot.slane %v3121_v46, 2  ;;  %v9815_v53 = vadd.f32 %v7718_v48, %v3326_v62 }
 0x1e4   : > { %v2779_v54 = vsel %vm816_vm1, %v2776_v19, %v2778_v22  ;;  %v2781_v5 = vsel %vm816_vm1, %v2778_v22, %v2780_v49  ;;  %v7073_v13 = vpop.f32.mrb[124].mxu0  ;;  %v9819_v33 = vadd.f32 %v7730_v44, %v3328_v59  ;;  %v5238_v19 = vld [vmem:[%s10442_s3 + $0x60] sm:$0xff] }
 0x1e5   : > { %v2784_v52 = vrot.slane %v7073_v13, 1  ;;  %v2580_v50 = vpop.f32.mrb[125].mxu0  ;;  %7407 = vmatmul.mubr.msk.f32.gmra.mrb[230].mxu0 %vm318_vm0, %v9408_v56  ;;  %v7153_v29 = vpop.f32.mrb[76].mxu1  ;;  %v3330_v0 = vsel %vm1625_vm2, %v3327_v35, %v3329_v39  ;;  %v7726_v45 = vadd.f32 %v10560_v43, %v2779_v54  ;;  %v3332_v62 = vsel %vm1625_vm2, %v3329_v39, %v3331_v51  ;;  %v10561_v56 = vld [vmem:[#allocation41_spill] sm:$0xff] }
 0x1e6   : > { %v2782_v48 = vrot.slane %v2580_v50, 1  ;;  %v3335_v59 = vrot.slane %v7153_v29, 2  ;;  %v3131_v22 = vpop.f32.mrb[77].mxu1  ;;  %7409 = vmatprep.mubr.msk.f32.mxu0 %vm318_vm0, %v9413_v2  ;;  %v7738_v35 = vadd.f32 %v10561_v56, %v2781_v5  ;;  %v7621_v46 = vpack.c.bf16 %v5239_v57, %v5238_v19  ;;  %v10562_v19 = vld [vmem:[#allocation42_spill] sm:$0xff] }
 0x1e7   : > { %v3333_v55 = vrot.slane %v3131_v22, 2  ;;  %v9835_v44 = vadd.f32 %v7726_v45, %v3330_v0 }
 0x1e8   : > { %v2783_v39 = vsel %vm816_vm1, %v2780_v49, %v2782_v48  ;;  %v2785_v54 = vsel %vm816_vm1, %v2782_v48, %v2784_v52  ;;  %v7076_v13 = vpop.f32.mrb[126].mxu0  ;;  %v9839_v43 = vadd.f32 %v7738_v35, %v3332_v62  ;;  %7622 = vmatprep.subr.bf16.mxu1 %v7621_v46  ;;  %v10563_v62 = vld [vmem:[#allocation43_spill] sm:$0xff] }
 0x1e9   : > { %v2788_v50 = vrot.slane %v7076_v13, 1  ;;  %v2590_v29 = vpop.f32.mrb[127].mxu0  ;;  %7410 = vmatmul.mubr.msk.f32.gmra.mrb[232].mxu0 %vm318_vm0, %v9430_v61  ;;  %v7156_v2 = vpop.f32.mrb[78].mxu1  ;;  %v3334_v5 = vsel %vm1625_vm2, %v3331_v51, %v3333_v55  ;;  %v7734_v57 = vadd.f32 %v10562_v19, %v2783_v39  ;;  %v3336_v0 = vsel %vm1625_vm2, %v3333_v55, %v3335_v59  ;;  %7624 = vmatpush3.bf16.msra.mxu1 %v7621_v46 }
 0x1ea   : > { %v2786_v49 = vrot.slane %v2590_v29, 1  ;;  %v3339_v45 = vrot.slane %v7156_v2, 2  ;;  %v3141_v48 = vpop.f32.mrb[79].mxu1  ;;  %7412 = vmatprep.mubr.msk.f32.mxu0 %vm318_vm0, %v9435_v4  ;;  %v7746_v22 = vadd.f32 %v10563_v62, %v2785_v54  ;;  %v10564_v2 = vld [vmem:[#allocation44_spill] sm:$0xff] }
 0x1eb   : > { %v3337_v56 = vrot.slane %v3141_v48, 2  ;;  %v9849_v35 = vadd.f32 %v7734_v57, %v3334_v5 }
 0x1ec   : > { %v2787_v61 = vsel %vm816_vm1, %v2784_v52, %v2786_v49  ;;  %v2789_v51 = vsel %vm816_vm1, %v2786_v49, %v2788_v50  ;;  %v7079_v13 = vpop.f32.mrb[128].mxu0  ;;  %v9853_v39 = vadd.f32 %v7746_v22, %v3336_v0  ;;  %v10565_v0 = vld [vmem:[#allocation45_spill] sm:$0xff] }
 0x1ed   : > { %v2792_v55 = vrot.slane %v7079_v13, 1  ;;  %v2600_v46 = vpop.f32.mrb[129].mxu0  ;;  %7413 = vmatmul.mubr.msk.f32.gmra.mrb[234].mxu0 %vm318_vm0, %v9452_v63  ;;  %v7159_v29 = vpop.f32.mrb[80].mxu1  ;;  %v3338_v4 = vsel %vm1625_vm2, %v3335_v59, %v3337_v56  ;;  %v7742_v54 = vadd.f32 %v10564_v2, %v2787_v61  ;;  %v3340_v5 = vsel %vm1625_vm2, %v3337_v56, %v3339_v45 }
 0x1ee   : > { %v2790_v19 = vrot.slane %v2600_v46, 1  ;;  %v3343_v57 = vrot.slane %v7159_v29, 2  ;;  %v3151_v52 = vpop.f32.mrb[81].mxu1  ;;  %7415 = vmatprep.mubr.msk.f32.mxu0 %vm318_vm0, %v9457_v6  ;;  %v7754_v49 = vadd.f32 %v10565_v0, %v2789_v51 }
 0x1ef   : > { %v3341_v48 = vrot.slane %v3151_v52, 2  ;;  %v9863_v62 = vadd.f32 %v7742_v54, %v3338_v4  ;;  %v5241_v4 = vld [vmem:[%s10442_s3 + $0x78] sm:$0xff] }
 0x1f0   : > { %v2791_v63 = vsel %vm816_vm1, %v2788_v50, %v2790_v19  ;;  %v2793_v22 = vsel %vm816_vm1, %v2790_v19, %v2792_v55  ;;  %v7082_v59 = vpop.f32.mrb[130].mxu0  ;;  %v9867_v13 = vadd.f32 %v7754_v49, %v3340_v5  ;;  %v5240_v50 = vld [vmem:[%s10442_s3 + $0x70] sm:$0xff] }
 0x1f1   : > { %v2796_v61 = vrot.slane %v7082_v59, 1  ;;  %v2610_v56 = vpop.f32.mrb[131].mxu0  ;;  %7416 = vmatmul.mubr.msk.f32.gmra.mrb[236].mxu0 %vm318_vm0, %v9474_v1  ;;  %v7162_v46 = vpop.f32.mrb[82].mxu1  ;;  %v3342_v6 = vsel %vm1625_vm2, %v3339_v45, %v3341_v48  ;;  %v7750_v51 = vadd.f32 %v9484_v26, %v2791_v63  ;;  %v3344_v29 = vsel %vm1625_vm2, %v3341_v48, %v3343_v57  ;;  %v10566_v1 = vld [vmem:[#allocation46_spill] sm:$0xff] }
 0x1f2   : > { %v2794_v2 = vrot.slane %v2610_v56, 1  ;;  %v3347_v54 = vrot.slane %v7162_v46, 2  ;;  %v3161_v5 = vpop.f32.mrb[83].mxu1  ;;  %7418 = vmatprep.mubr.msk.f32.mxu0 %vm318_vm0, %v9479_v8  ;;  %v7762_v45 = vadd.f32 %v10566_v1, %v2793_v22  ;;  %v7625_v19 = vpack.c.bf16 %v5241_v4, %v5240_v50 }
 0x1f3   : > { %v3345_v26 = vrot.slane %v3161_v5, 2  ;;  %v9883_v52 = vadd.f32 %v7750_v51, %v3342_v6 }
 0x1f4   : > { %v2795_v0 = vsel %vm816_vm1, %v2792_v55, %v2794_v2  ;;  %v2797_v49 = vsel %vm816_vm1, %v2794_v2, %v2796_v61  ;;  %v7085_v48 = vpop.f32.mrb[132].mxu0  ;;  %v9887_v63 = vadd.f32 %v7762_v45, %v3344_v29  ;;  %7626 = vmatprep.subr.bf16.mxu1 %v7625_v19 }
 0x1f5   : > { %v2800_v59 = vrot.slane %v7085_v48, 1  ;;  %v2620_v56 = vpop.f32.mrb[133].mxu0  ;;  %7419 = vmatmul.mubr.msk.f32.gmra.mrb[238].mxu0 %vm318_vm0, %v9496_v3  ;;  %v7165_v8 = vpop.f32.mrb[84].mxu1  ;;  %v3346_v22 = vsel %vm1625_vm2, %v3343_v57, %v3345_v26  ;;  %v7758_v46 = vadd.f32 %v9503_v9, %v2795_v0  ;;  %v3348_v6 = vsel %vm1625_vm2, %v3345_v26, %v3347_v54  ;;  %7628 = vmatpush3.bf16.msra.mxu1 %v7625_v19 }
 0x1f6   : > { %v2798_v55 = vrot.slane %v2620_v56, 1  ;;  %v3351_v51 = vrot.slane %v7165_v8, 2  ;;  %v3171_v50 = vpop.f32.mrb[85].mxu1  ;;  %v7770_v29 = vadd.f32 %v9506_v60, %v2797_v49 }
 0x1f7   : > { %v3349_v4 = vrot.slane %v3171_v50, 2  ;;  %v9895_v2 = vadd.f32 %v7758_v46, %v3346_v22 }
 0x1f8   : > { %v2799_v5 = vsel %vm816_vm1, %v2796_v61, %v2798_v55  ;;  %v2801_v3 = vsel %vm816_vm1, %v2798_v55, %v2800_v59  ;;  %v7088_v1 = vpop.f32.mrb[134].mxu0  ;;  %v9899_v45 = vadd.f32 %v7770_v29, %v3348_v6 }
 0x1f9   : > { %v2804_v57 = vrot.slane %v7088_v1, 1  ;;  %v2630_v9 = vpop.f32.mrb[135].mxu0  ;;  %v7168_v0 = vpop.f32.mrb[86].mxu1  ;;  %v3350_v19 = vsel %vm1625_vm2, %v3347_v54, %v3349_v4  ;;  %v7766_v26 = vadd.f32 %v9517_v17, %v2799_v5  ;;  %v3352_v48 = vsel %vm1625_vm2, %v3349_v4, %v3351_v51 }
 0x1fa   : > { %v2802_v60 = vrot.slane %v2630_v9, 1  ;;  %v3355_v49 = vrot.slane %v7168_v0, 2  ;;  %v3181_v56 = vpop.f32.mrb[87].mxu1  ;;  %v7778_v8 = vadd.f32 %v9520_v11, %v2801_v3 }
 0x1fb   : > { %v3353_v61 = vrot.slane %v3181_v56, 2  ;;  %v9905_v22 = vadd.f32 %v7766_v26, %v3350_v19 }
 0x1fc   : > { %v2803_v46 = vsel %vm816_vm1, %v2800_v59, %v2802_v60  ;;  %v2805_v6 = vsel %vm816_vm1, %v2802_v60, %v2804_v57  ;;  %v7091_v55 = vpop.f32.mrb[136].mxu0  ;;  %v9909_v50 = vadd.f32 %v7778_v8, %v3352_v48 }
 0x1fd   : > { %v2808_v54 = vrot.slane %v7091_v55, 1  ;;  %v2640_v29 = vpop.f32.mrb[137].mxu0  ;;  %v7171_v17 = vpop.f32.mrb[88].mxu1  ;;  %v3354_v4 = vsel %vm1625_vm2, %v3351_v51, %v3353_v61  ;;  %v7774_v5 = vadd.f32 %v9529_v41, %v2803_v46  ;;  %v3356_v1 = vsel %vm1625_vm2, %v3353_v61, %v3355_v49 }
 0x1fe   : > { %v2806_v11 = vrot.slane %v2640_v29, 1  ;;  %v3359_v3 = vrot.slane %v7171_v17, 2  ;;  %v3191_v9 = vpop.f32.mrb[89].mxu1  ;;  %v7786_v0 = vadd.f32 %v9532_v42, %v2805_v6 }
 0x1ff   : > { %v3357_v59 = vrot.slane %v3191_v9, 2  ;;  %v9915_v19 = vadd.f32 %v7774_v5, %v3354_v4 }
 0x200   : > { %v2807_v26 = vsel %vm816_vm1, %v2804_v57, %v2806_v11  ;;  %v2809_v48 = vsel %vm816_vm1, %v2806_v11, %v2808_v54  ;;  %v7094_v60 = vpop.f32.mrb[138].mxu0  ;;  %v9919_v56 = vadd.f32 %v7786_v0, %v3356_v1 }
 0x201   : > { %v2812_v51 = vrot.slane %v7094_v60, 1  ;;  %v2650_v8 = vpop.f32.mrb[139].mxu0  ;;  %v7174_v41 = vpop.f32.mrb[90].mxu1  ;;  %v3358_v61 = vsel %vm1625_vm2, %v3355_v49, %v3357_v59  ;;  %v7782_v46 = vadd.f32 %v9547_v23, %v2807_v26  ;;  %v3360_v55 = vsel %vm1625_vm2, %v3357_v59, %v3359_v3  ;;  %v10568_v26 = vld [vmem:[#allocation47_spill] sm:$0xff] }
 0x202   : > { %v2810_v42 = vrot.slane %v2650_v8, 1  ;;  %v3363_v6 = vrot.slane %v7174_v41, 2  ;;  %v3201_v29 = vpop.f32.mrb[91].mxu1  ;;  %v7794_v17 = vadd.f32 %v9550_v7, %v2809_v48 }
 0x203   : > { %v3361_v57 = vrot.slane %v3201_v29, 2  ;;  %v9925_v4 = vadd.f32 %v7782_v46, %v3358_v61  ;;  %v10569_v61 = vld [vmem:[#allocation4_spill] sm:$0xff] }
 0x204   : > { %v2811_v5 = vsel %vm816_vm1, %v2808_v54, %v2810_v42  ;;  %v2813_v1 = vsel %vm816_vm1, %v2810_v42, %v2812_v51  ;;  %v7097_v11 = vpop.f32.mrb[140].mxu0  ;;  %v9929_v9 = vadd.f32 %v7794_v17, %v3360_v55 }
 0x205   : > { %v2816_v49 = vrot.slane %v7097_v11, 1  ;;  %v2660_v0 = vpop.f32.mrb[141].mxu0  ;;  %v7177_v23 = vpop.f32.mrb[92].mxu1  ;;  %v3362_v59 = vsel %vm1625_vm2, %v3359_v3, %v3361_v57  ;;  %v7790_v60 = vadd.f32 %v10568_v26, %v2811_v5  ;;  %v3364_v8 = vsel %vm1625_vm2, %v3361_v57, %v3363_v6 }
 0x206   : > { %10567 = vst [vmem:[#allocation13_spill] sm:$0xff] %v9929_v9  ;;  %v2814_v7 = vrot.slane %v2660_v0, 1  ;;  %v3367_v48 = vrot.slane %v7177_v23, 2  ;;  %v3211_v41 = vpop.f32.mrb[93].mxu1  ;;  %v7802_v46 = vadd.f32 %v10569_v61, %v2813_v1  ;;  %v10572_v0 = vld [vmem:[#allocation2_spill] sm:$0xff] }
 0x207   : > { %v3365_v54 = vrot.slane %v3211_v41, 2  ;;  %v9935_v29 = vadd.f32 %v7790_v60, %v3362_v59  ;;  %v10573_v60 = vld [vmem:[#allocation3_spill] sm:$0xff] }
 0x208   : > { %v2815_v55 = vsel %vm816_vm1, %v2812_v51, %v2814_v7  ;;  %v2817_v42 = vsel %vm816_vm1, %v2814_v7, %v2816_v49  ;;  %v7100_v17 = vpop.f32.mrb[142].mxu0  ;;  %v9939_v11 = vadd.f32 %v7802_v46, %v3364_v8  ;;  %v10574_v51 = vld [vmem:[#allocation6_spill] sm:$0xff] }
 0x209   : > { %10570 = vst [vmem:[#allocation10_spill] sm:$0xff] %v9935_v29  ;;  %v2820_v3 = vrot.slane %v7100_v17, 1  ;;  %v2670_v9 = vpop.f32.mrb[143].mxu0  ;;  %v7180_v5 = vpop.f32.mrb[94].mxu1  ;;  %v3366_v57 = vsel %vm1625_vm2, %v3363_v6, %v3365_v54  ;;  %v7798_v23 = vadd.f32 %v10572_v0, %v2815_v55  ;;  %v3368_v26 = vsel %vm1625_vm2, %v3365_v54, %v3367_v48  ;;  %v10578_v54 = vld [vmem:[#allocation9_spill] sm:$0xff] }
 0x20a   : > { %10571 = vst [vmem:[#allocation11_spill] sm:$0xff] %v9939_v11  ;;  %v2818_v1 = vrot.slane %v2670_v9, 1  ;;  %v3371_v41 = vrot.slane %v7180_v5, 2  ;;  %v3221_v59 = vpop.f32.mrb[95].mxu1  ;;  %v7810_v61 = vadd.f32 %v10573_v60, %v2817_v42  ;;  %v10575_v29 = vrot.slane %v10574_v51, 1 }
 0x20b   : > { %v3369_v8 = vrot.slane %v3221_v59, 2  ;;  %v9948_v46 = vadd.f32 %v7798_v23, %v3366_v57  ;;  %v10579_v9 = vrot.slane %v10578_v54, 2  ;;  %v10580_v59 = vld [vmem:[#allocation8_spill] sm:$0xff]  ;;  %v10581_v23 = vld [vmem:[#allocation7_spill] sm:$0xff] }
 0x20c   : > { %v2871_v7 = vsel %vm816_vm1, %v2820_v3, %v10575_v29  ;;  %v2819_v17 = vsel %vm816_vm1, %v2816_v49, %v2818_v1  ;;  %v2821_v6 = vsel %vm816_vm1, %v2818_v1, %v2820_v3  ;;  %v7271_v11 = vpop.f32.mrb[144].mxu0  ;;  %v9952_v55 = vadd.f32 %v7810_v61, %v3368_v26  ;;  %v10582_v61 = vld [vmem:[#allocation5_spill] sm:$0xff] }
 0x20d   : > { %10576 = vst [vmem:[#allocation14_spill] sm:$0xff] %v9948_v46  ;;  %v3422_v5 = vsel %vm1625_vm2, %v3371_v41, %v10579_v9  ;;  %v7191_v0 = vpop.f32.mrb[0].mxu1  ;;  %v4380_v42 = vrot.slane %v7271_v11, 1  ;;  %v9957_v60 = vpop.f32.mrb[145].mxu0  ;;  %v3370_v29 = vsel %vm1625_vm2, %v3367_v48, %v3369_v8  ;;  %v7806_v57 = vadd.f32 %v10580_v59, %v2819_v17  ;;  %v10583_v9 = vld [vmem:[#allocation12_spill] sm:$0xff] }
 0x20e   : > { %10577 = vst [vmem:[#allocation15_spill] sm:$0xff] %v9952_v55  ;;  %v7814_v51 = vadd.f32 %v10581_v23, %v2871_v7  ;;  %v7632_v49 = vadd.f32 %v9643_v14, %v7191_v0  ;;  %v3734_v3 = vpop.f32.mrb[1].mxu1  ;;  %v10460_v26 = vrot.slane %v9957_v60, 1  ;;  %v3372_v1 = vsel %vm1625_vm2, %v3369_v8, %v3371_v41 }
 0x20f   : > { %v7818_v54 = vadd.f32 %v10582_v61, %v2821_v6  ;;  %v7636_v55 = vadd.f32 %v10583_v9, %v3734_v3  ;;  %v9967_v11 = vadd.f32 %v7806_v57, %v3370_v29 }
 0x210   : > { %v9969_v46 = vadd.f32 %v7814_v51, %v3422_v5  ;;  %v4381_v48 = vsel %vm816_vm1, %v10460_v26, %v4380_v42  ;;  %v7274_v7 = vpop.f32.mrb[146].mxu0 }
 0x211   : > { %v9974_v17 = vadd.f32 %v7818_v54, %v3372_v1  ;;  %v9976_v14 = vadd.f32 %v7636_v55, %v4381_v48  ;;  %v7194_v0 = vpop.f32.mrb[2].mxu1  ;;  %v4384_v59 = vrot.slane %v7274_v7, 1  ;;  %v4102_v41 = vpop.f32.mrb[147].mxu0 }
 0x212   : > { %v7640_v8 = vadd.f32 %v9657_v30, %v7194_v0  ;;  %v3744_v6 = vpop.f32.mrb[3].mxu1  ;;  %v4382_v23 = vrot.slane %v4102_v41, 1 }
 0x213   : > { %v7644_v29 = vadd.f32 %v9647_v16, %v3744_v6 }
 0x214   : > { %v4383_v5 = vsel %vm816_vm1, %v4380_v42, %v4382_v23  ;;  %v4385_v57 = vsel %vm816_vm1, %v4382_v23, %v4384_v59  ;;  %v7277_v51 = vpop.f32.mrb[148].mxu0 }
 0x215   : > { %v9982_v3 = vadd.f32 %v7632_v49, %v4383_v5  ;;  %v9984_v1 = vadd.f32 %v7644_v29, %v4385_v57  ;;  %v7197_v55 = vpop.f32.mrb[4].mxu1  ;;  %v4388_v61 = vrot.slane %v7277_v51, 1  ;;  %v4112_v54 = vpop.f32.mrb[149].mxu0 }
 0x216   : > { %v7648_v9 = vadd.f32 %v9671_v21, %v7197_v55  ;;  %v3754_v48 = vpop.f32.mrb[5].mxu1  ;;  %v4386_v30 = vrot.slane %v4112_v54, 1 }
 0x217   : > { %v7652_v7 = vadd.f32 %v9661_v20, %v3754_v48 }
 0x218   : > { %v4387_v16 = vsel %vm816_vm1, %v4384_v59, %v4386_v30  ;;  %v4389_v42 = vsel %vm816_vm1, %v4386_v30, %v4388_v61  ;;  %v7280_v0 = vpop.f32.mrb[150].mxu0 }
 0x219   : > { %v9990_v41 = vadd.f32 %v7640_v8, %v4387_v16  ;;  %v9992_v49 = vadd.f32 %v7652_v7, %v4389_v42  ;;  %v7200_v6 = vpop.f32.mrb[6].mxu1  ;;  %v4392_v23 = vrot.slane %v7280_v0, 1  ;;  %v4122_v29 = vpop.f32.mrb[151].mxu0 }
 0x21a   : > { %v7656_v5 = vadd.f32 %v9691_v34, %v7200_v6  ;;  %v3764_v57 = vpop.f32.mrb[7].mxu1  ;;  %v4390_v21 = vrot.slane %v4122_v29, 1 }
 0x21b   : > { %v7660_v51 = vadd.f32 %v9675_v58, %v3764_v57 }
 0x21c   : > { %v4391_v20 = vsel %vm816_vm1, %v4388_v61, %v4390_v21  ;;  %v4393_v59 = vsel %vm816_vm1, %v4390_v21, %v4392_v23  ;;  %v7283_v55 = vpop.f32.mrb[152].mxu0 }
 0x21d   : > { %v9998_v54 = vadd.f32 %v7648_v9, %v4391_v20  ;;  %v10000_v8 = vadd.f32 %v7660_v51, %v4393_v59  ;;  %v7203_v48 = vpop.f32.mrb[8].mxu1  ;;  %v4396_v30 = vrot.slane %v7283_v55, 1  ;;  %v4132_v7 = vpop.f32.mrb[153].mxu0 }
 0x21e   : > { %v7664_v16 = vadd.f32 %v9705_v37, %v7203_v48  ;;  %v3774_v42 = vpop.f32.mrb[9].mxu1  ;;  %v4394_v34 = vrot.slane %v4132_v7, 1 }
 0x21f   : > { %v7668_v0 = vadd.f32 %v9695_v18, %v3774_v42 }
 0x220   : > { %v4395_v58 = vsel %vm816_vm1, %v4392_v23, %v4394_v34  ;;  %v4397_v61 = vsel %vm816_vm1, %v4394_v34, %v4396_v30  ;;  %v7286_v6 = vpop.f32.mrb[154].mxu0 }
 0x221   : > { %v10006_v29 = vadd.f32 %v7656_v5, %v4395_v58  ;;  %v10008_v9 = vadd.f32 %v7668_v0, %v4397_v61  ;;  %v7206_v57 = vpop.f32.mrb[10].mxu1  ;;  %v4400_v21 = vrot.slane %v7286_v6, 1  ;;  %v4142_v51 = vpop.f32.mrb[155].mxu0 }
 0x222   : > { %v7672_v20 = vadd.f32 %v9719_v38, %v7206_v57  ;;  %v3784_v59 = vpop.f32.mrb[11].mxu1  ;;  %v4398_v37 = vrot.slane %v4142_v51, 1 }
 0x223   : > { %v7676_v55 = vadd.f32 %v9709_v25, %v3784_v59 }
 0x224   : > { %v4399_v18 = vsel %vm816_vm1, %v4396_v30, %v4398_v37  ;;  %v4401_v23 = vsel %vm816_vm1, %v4398_v37, %v4400_v21  ;;  %v7289_v48 = vpop.f32.mrb[156].mxu0 }
 0x225   : > { %v10014_v7 = vadd.f32 %v7664_v16, %v4399_v18  ;;  %v10016_v5 = vadd.f32 %v7676_v55, %v4401_v23  ;;  %v7209_v42 = vpop.f32.mrb[12].mxu1  ;;  %v4404_v34 = vrot.slane %v7289_v48, 1  ;;  %v4152_v0 = vpop.f32.mrb[157].mxu0 }
 0x226   : > { %v7680_v58 = vadd.f32 %v9739_v36, %v7209_v42  ;;  %v3794_v61 = vpop.f32.mrb[13].mxu1  ;;  %v4402_v38 = vrot.slane %v4152_v0, 1 }
 0x227   : > { %v7684_v6 = vadd.f32 %v9723_v32, %v3794_v61 }
 0x228   : > { %v4403_v25 = vsel %vm816_vm1, %v4400_v21, %v4402_v38  ;;  %v4405_v30 = vsel %vm816_vm1, %v4402_v38, %v4404_v34  ;;  %v7292_v57 = vpop.f32.mrb[158].mxu0 }
 0x229   : > { %v10022_v51 = vadd.f32 %v7672_v20, %v4403_v25  ;;  %v10024_v16 = vadd.f32 %v7684_v6, %v4405_v30  ;;  %v7212_v59 = vpop.f32.mrb[14].mxu1  ;;  %v4408_v37 = vrot.slane %v7292_v57, 1  ;;  %v4162_v55 = vpop.f32.mrb[159].mxu0 }
 0x22a   : > { %v7688_v18 = vadd.f32 %v9753_v12, %v7212_v59  ;;  %v3804_v23 = vpop.f32.mrb[15].mxu1  ;;  %v4406_v36 = vrot.slane %v4162_v55, 1 }
 0x22b   : > { %v7692_v48 = vadd.f32 %v9743_v10, %v3804_v23 }
 0x22c   : > { %v4407_v32 = vsel %vm816_vm1, %v4404_v34, %v4406_v36  ;;  %v4409_v21 = vsel %vm816_vm1, %v4406_v36, %v4408_v37  ;;  %v7295_v42 = vpop.f32.mrb[160].mxu0 }
 0x22d   : > { %v10030_v0 = vadd.f32 %v7680_v58, %v4407_v32  ;;  %v10032_v20 = vadd.f32 %v7692_v48, %v4409_v21  ;;  %v7215_v61 = vpop.f32.mrb[16].mxu1  ;;  %v4412_v38 = vrot.slane %v7295_v42, 1  ;;  %v4172_v6 = vpop.f32.mrb[161].mxu0 }
 0x22e   : > { %v7696_v25 = vadd.f32 %v9767_v47, %v7215_v61  ;;  %v3814_v30 = vpop.f32.mrb[17].mxu1  ;;  %v4410_v12 = vrot.slane %v4172_v6, 1 }
 0x22f   : > { %v7700_v57 = vadd.f32 %v9757_v24, %v3814_v30 }
 0x230   : > { %v4411_v10 = vsel %vm816_vm1, %v4408_v37, %v4410_v12  ;;  %v4413_v34 = vsel %vm816_vm1, %v4410_v12, %v4412_v38  ;;  %v7298_v59 = vpop.f32.mrb[162].mxu0 }
 0x231   : > { %v10038_v55 = vadd.f32 %v7688_v18, %v4411_v10  ;;  %v10040_v58 = vadd.f32 %v7700_v57, %v4413_v34  ;;  %v7218_v23 = vpop.f32.mrb[18].mxu1  ;;  %v4416_v36 = vrot.slane %v7298_v59, 1  ;;  %v4182_v48 = vpop.f32.mrb[163].mxu0 }
 0x232   : > { %v7704_v32 = vadd.f32 %v9787_v28, %v7218_v23  ;;  %v3824_v21 = vpop.f32.mrb[19].mxu1  ;;  %v4414_v47 = vrot.slane %v4182_v48, 1 }
 0x233   : > { %v7708_v42 = vadd.f32 %v9771_v31, %v3824_v21 }
 0x234   : > { %v4415_v24 = vsel %vm816_vm1, %v4412_v38, %v4414_v47  ;;  %v4417_v37 = vsel %vm816_vm1, %v4414_v47, %v4416_v36  ;;  %v7301_v61 = vpop.f32.mrb[164].mxu0 }
 0x235   : > { %v10046_v6 = vadd.f32 %v7696_v25, %v4415_v24  ;;  %v10048_v18 = vadd.f32 %v7708_v42, %v4417_v37  ;;  %v7221_v30 = vpop.f32.mrb[20].mxu1  ;;  %v4420_v12 = vrot.slane %v7301_v61, 1  ;;  %v4192_v57 = vpop.f32.mrb[165].mxu0 }
 0x236   : > { %v7712_v10 = vadd.f32 %v9801_v15, %v7221_v30  ;;  %v3834_v34 = vpop.f32.mrb[21].mxu1  ;;  %v4418_v28 = vrot.slane %v4192_v57, 1 }
 0x237   : > { %v7716_v59 = vadd.f32 %v9791_v40, %v3834_v34 }
 0x238   : > { %v4419_v31 = vsel %vm816_vm1, %v4416_v36, %v4418_v28  ;;  %v4421_v38 = vsel %vm816_vm1, %v4418_v28, %v4420_v12  ;;  %v7304_v23 = vpop.f32.mrb[166].mxu0 }
 0x239   : > { %v10054_v48 = vadd.f32 %v7704_v32, %v4419_v31  ;;  %v10056_v25 = vadd.f32 %v7716_v59, %v4421_v38  ;;  %v7224_v21 = vpop.f32.mrb[22].mxu1  ;;  %v4424_v47 = vrot.slane %v7304_v23, 1  ;;  %v4202_v42 = vpop.f32.mrb[167].mxu0 }
 0x23a   : > { %v7720_v24 = vadd.f32 %v9815_v53, %v7224_v21  ;;  %v3844_v37 = vpop.f32.mrb[23].mxu1  ;;  %v4422_v15 = vrot.slane %v4202_v42, 1 }
 0x23b   : > { %v7724_v61 = vadd.f32 %v9805_v27, %v3844_v37 }
 0x23c   : > { %v4423_v40 = vsel %vm816_vm1, %v4420_v12, %v4422_v15  ;;  %v4425_v36 = vsel %vm816_vm1, %v4422_v15, %v4424_v47  ;;  %v7307_v30 = vpop.f32.mrb[168].mxu0 }
 0x23d   : > { %v10062_v57 = vadd.f32 %v7712_v10, %v4423_v40  ;;  %v10064_v32 = vadd.f32 %v7724_v61, %v4425_v36  ;;  %v7227_v34 = vpop.f32.mrb[24].mxu1  ;;  %v4428_v28 = vrot.slane %v7307_v30, 1  ;;  %v4212_v59 = vpop.f32.mrb[169].mxu0 }
 0x23e   : > { %v7728_v31 = vadd.f32 %v9835_v44, %v7227_v34  ;;  %v3854_v38 = vpop.f32.mrb[25].mxu1  ;;  %v4426_v53 = vrot.slane %v4212_v59, 1 }
 0x23f   : > { %v7732_v23 = vadd.f32 %v9819_v33, %v3854_v38 }
 0x240   : > { %v4427_v27 = vsel %vm816_vm1, %v4424_v47, %v4426_v53  ;;  %v4429_v12 = vsel %vm816_vm1, %v4426_v53, %v4428_v28  ;;  %v7310_v21 = vpop.f32.mrb[170].mxu0 }
 0x241   : > { %v10070_v42 = vadd.f32 %v7720_v24, %v4427_v27  ;;  %v10072_v10 = vadd.f32 %v7732_v23, %v4429_v12  ;;  %v7230_v37 = vpop.f32.mrb[26].mxu1  ;;  %v4432_v15 = vrot.slane %v7310_v21, 1  ;;  %v4222_v61 = vpop.f32.mrb[171].mxu0 }
 0x242   : > { %v7736_v40 = vadd.f32 %v9849_v35, %v7230_v37  ;;  %v3864_v36 = vpop.f32.mrb[27].mxu1  ;;  %v4430_v44 = vrot.slane %v4222_v61, 1 }
 0x243   : > { %v7740_v30 = vadd.f32 %v9839_v43, %v3864_v36 }
 0x244   : > { %v4431_v33 = vsel %vm816_vm1, %v4428_v28, %v4430_v44  ;;  %v4433_v47 = vsel %vm816_vm1, %v4430_v44, %v4432_v15  ;;  %v7313_v34 = vpop.f32.mrb[172].mxu0 }
 0x245   : > { %v10078_v59 = vadd.f32 %v7728_v31, %v4431_v33  ;;  %v10080_v24 = vadd.f32 %v7740_v30, %v4433_v47  ;;  %v7233_v38 = vpop.f32.mrb[28].mxu1  ;;  %v4436_v53 = vrot.slane %v7313_v34, 1  ;;  %v4232_v23 = vpop.f32.mrb[173].mxu0 }
 0x246   : > { %v7744_v27 = vadd.f32 %v9863_v62, %v7233_v38  ;;  %v3874_v12 = vpop.f32.mrb[29].mxu1  ;;  %v4434_v35 = vrot.slane %v4232_v23, 1 }
 0x247   : > { %v7748_v21 = vadd.f32 %v9853_v39, %v3874_v12 }
 0x248   : > { %v4435_v43 = vsel %vm816_vm1, %v4432_v15, %v4434_v35  ;;  %v4437_v28 = vsel %vm816_vm1, %v4434_v35, %v4436_v53  ;;  %v7316_v37 = vpop.f32.mrb[174].mxu0 }
 0x249   : > { %v10086_v61 = vadd.f32 %v7736_v40, %v4435_v43  ;;  %v10088_v31 = vadd.f32 %v7748_v21, %v4437_v28  ;;  %v7236_v36 = vpop.f32.mrb[30].mxu1  ;;  %v4440_v44 = vrot.slane %v7316_v37, 1  ;;  %v4242_v30 = vpop.f32.mrb[175].mxu0 }
 0x24a   : > { %v7752_v33 = vadd.f32 %v9883_v52, %v7236_v36  ;;  %v3884_v47 = vpop.f32.mrb[31].mxu1  ;;  %v4438_v62 = vrot.slane %v4242_v30, 1 }
 0x24b   : > { %v7756_v34 = vadd.f32 %v9867_v13, %v3884_v47 }
 0x24c   : > { %v4439_v39 = vsel %vm816_vm1, %v4436_v53, %v4438_v62  ;;  %v4441_v15 = vsel %vm816_vm1, %v4438_v62, %v4440_v44  ;;  %v7319_v38 = vpop.f32.mrb[176].mxu0 }
 0x24d   : > { %v10094_v23 = vadd.f32 %v7744_v27, %v4439_v39  ;;  %v10096_v40 = vadd.f32 %v7756_v34, %v4441_v15  ;;  %v7239_v12 = vpop.f32.mrb[32].mxu1  ;;  %v4444_v35 = vrot.slane %v7319_v38, 1  ;;  %v4252_v21 = vpop.f32.mrb[177].mxu0 }
 0x24e   : > { %v7760_v43 = vadd.f32 %v9895_v2, %v7239_v12  ;;  %v3894_v28 = vpop.f32.mrb[33].mxu1  ;;  %v4442_v52 = vrot.slane %v4252_v21, 1 }
 0x24f   : > { %v7764_v37 = vadd.f32 %v9887_v63, %v3894_v28 }
 0x250   : > { %v4443_v13 = vsel %vm816_vm1, %v4440_v44, %v4442_v52  ;;  %v4445_v53 = vsel %vm816_vm1, %v4442_v52, %v4444_v35  ;;  %v7322_v36 = vpop.f32.mrb[178].mxu0 }
 0x251   : > { %v10102_v30 = vadd.f32 %v7752_v33, %v4443_v13  ;;  %v10104_v27 = vadd.f32 %v7764_v37, %v4445_v53  ;;  %v7242_v47 = vpop.f32.mrb[34].mxu1  ;;  %v4448_v62 = vrot.slane %v7322_v36, 1  ;;  %v4262_v34 = vpop.f32.mrb[179].mxu0 }
 0x252   : > { %v7768_v39 = vadd.f32 %v9905_v22, %v7242_v47  ;;  %v3904_v15 = vpop.f32.mrb[35].mxu1  ;;  %v4446_v2 = vrot.slane %v4262_v34, 1 }
 0x253   : > { %v7772_v38 = vadd.f32 %v9899_v45, %v3904_v15 }
 0x254   : > { %v4447_v63 = vsel %vm816_vm1, %v4444_v35, %v4446_v2  ;;  %v4449_v44 = vsel %vm816_vm1, %v4446_v2, %v4448_v62  ;;  %v7325_v12 = vpop.f32.mrb[180].mxu0 }
 0x255   : > { %v10110_v21 = vadd.f32 %v7760_v43, %v4447_v63  ;;  %v10112_v33 = vadd.f32 %v7772_v38, %v4449_v44  ;;  %v7245_v28 = vpop.f32.mrb[36].mxu1  ;;  %v4452_v52 = vrot.slane %v7325_v12, 1  ;;  %v4272_v37 = vpop.f32.mrb[181].mxu0 }
 0x256   : > { %v7776_v13 = vadd.f32 %v9915_v19, %v7245_v28  ;;  %v3914_v53 = vpop.f32.mrb[37].mxu1  ;;  %v4450_v22 = vrot.slane %v4272_v37, 1 }
 0x257   : > { %v7780_v36 = vadd.f32 %v9909_v50, %v3914_v53 }
 0x258   : > { %v4451_v45 = vsel %vm816_vm1, %v4448_v62, %v4450_v22  ;;  %v4453_v35 = vsel %vm816_vm1, %v4450_v22, %v4452_v52  ;;  %v7328_v47 = vpop.f32.mrb[182].mxu0 }
 0x259   : > { %v10118_v34 = vadd.f32 %v7768_v39, %v4451_v45  ;;  %v10120_v43 = vadd.f32 %v7780_v36, %v4453_v35  ;;  %v7248_v15 = vpop.f32.mrb[38].mxu1  ;;  %v4456_v2 = vrot.slane %v7328_v47, 1  ;;  %v4282_v38 = vpop.f32.mrb[183].mxu0  ;;  %v10585_v45 = vld [vmem:[#allocation10_spill] sm:$0xff] }
 0x25a   : > { %v7784_v63 = vadd.f32 %v9925_v4, %v7248_v15  ;;  %v3924_v44 = vpop.f32.mrb[39].mxu1  ;;  %v4454_v19 = vrot.slane %v4282_v38, 1  ;;  %v10586_v15 = vld [vmem:[#allocation13_spill] sm:$0xff] }
 0x25b   : > { %v7788_v12 = vadd.f32 %v9919_v56, %v3924_v44 }
 0x25c   : > { %v4455_v50 = vsel %vm816_vm1, %v4452_v52, %v4454_v19  ;;  %v4457_v62 = vsel %vm816_vm1, %v4454_v19, %v4456_v2  ;;  %v7331_v28 = vpop.f32.mrb[184].mxu0 }
 0x25d   : > { %v10126_v37 = vadd.f32 %v7776_v13, %v4455_v50  ;;  %v10128_v39 = vadd.f32 %v7788_v12, %v4457_v62  ;;  %v7251_v53 = vpop.f32.mrb[40].mxu1  ;;  %v4460_v22 = vrot.slane %v7331_v28, 1  ;;  %v4292_v36 = vpop.f32.mrb[185].mxu0  ;;  %v10588_v28 = vld [vmem:[#allocation14_spill] sm:$0xff] }
 0x25e   : > { %v7792_v35 = vadd.f32 %v10585_v45, %v7251_v53  ;;  %v3934_v47 = vpop.f32.mrb[41].mxu1  ;;  %v4458_v4 = vrot.slane %v4292_v36, 1  ;;  %v10589_v45 = vld [vmem:[#allocation11_spill] sm:$0xff] }
 0x25f   : > { %10584 = vst [vmem:[#allocation16_spill] sm:$0xff] %v10128_v39  ;;  %v7796_v38 = vadd.f32 %v10586_v15, %v3934_v47 }
 0x260   : > { %v4459_v56 = vsel %vm816_vm1, %v4456_v2, %v4458_v4  ;;  %v4461_v52 = vsel %vm816_vm1, %v4458_v4, %v4460_v22  ;;  %v7334_v44 = vpop.f32.mrb[186].mxu0 }
 0x261   : > { %v10134_v19 = vadd.f32 %v7784_v63, %v4459_v56  ;;  %v10136_v13 = vadd.f32 %v7796_v38, %v4461_v52  ;;  %v7254_v12 = vpop.f32.mrb[42].mxu1  ;;  %v4464_v50 = vrot.slane %v7334_v44, 1  ;;  %v4302_v62 = vpop.f32.mrb[187].mxu0 }
 0x262   : > { %v7800_v26 = vadd.f32 %v10588_v28, %v7254_v12  ;;  %v3944_v39 = vpop.f32.mrb[43].mxu1  ;;  %v4462_v53 = vrot.slane %v4302_v62, 1  ;;  %v10591_v28 = vld [vmem:[#allocation15_spill] sm:$0xff] }
 0x263   : > { %10587 = vst [vmem:[#allocation17_spill] sm:$0xff] %v10136_v13  ;;  %v7804_v36 = vadd.f32 %v10589_v45, %v3944_v39 }
 0x264   : > { %v4463_v47 = vsel %vm816_vm1, %v4460_v22, %v4462_v53  ;;  %v4465_v2 = vsel %vm816_vm1, %v4462_v53, %v4464_v50  ;;  %v7337_v15 = vpop.f32.mrb[188].mxu0 }
 0x265   : > { %v10142_v4 = vadd.f32 %v7792_v35, %v4463_v47  ;;  %v10144_v63 = vadd.f32 %v7804_v36, %v4465_v2  ;;  %v7257_v38 = vpop.f32.mrb[44].mxu1  ;;  %v4468_v56 = vrot.slane %v7337_v15, 1  ;;  %v4312_v52 = vpop.f32.mrb[189].mxu0 }
 0x266   : > { %v7808_v44 = vadd.f32 %v9967_v11, %v7257_v38  ;;  %v3954_v13 = vpop.f32.mrb[45].mxu1  ;;  %v4466_v12 = vrot.slane %v4312_v52, 1  ;;  %v10592_v38 = vrot.slane %v9957_v60, 1 }
 0x267   : > { %10590 = vst [vmem:[#allocation18_spill] sm:$0xff] %v10144_v63  ;;  %v7812_v62 = vadd.f32 %v10591_v28, %v3954_v13 }
 0x268   : > { %v4467_v39 = vsel %vm816_vm1, %v4464_v50, %v4466_v12  ;;  %v4469_v22 = vsel %vm816_vm1, %v4466_v12, %v4468_v56  ;;  %v7340_v45 = vpop.f32.mrb[190].mxu0 }
 0x269   : > { %v10150_v53 = vadd.f32 %v7800_v26, %v4467_v39  ;;  %v10152_v35 = vadd.f32 %v7812_v62, %v4469_v22  ;;  %v7260_v36 = vpop.f32.mrb[46].mxu1  ;;  %v4472_v47 = vrot.slane %v7340_v45, 1  ;;  %v4322_v2 = vpop.f32.mrb[191].mxu0 }
 0x26a   : > { %v7816_v15 = vadd.f32 %v9969_v46, %v7260_v36  ;;  %v3964_v63 = vpop.f32.mrb[47].mxu1  ;;  %v4470_v11 = vrot.slane %v4322_v2, 1 }
 0x26b   : > { %v4523_v13 = vsel %vm816_vm1, %v4472_v47, %v10592_v38  ;;  %v7820_v50 = vadd.f32 %v9974_v17, %v3964_v63 }
 0x26c   : > { %v10159_v52 = vadd.f32 %v7816_v15, %v4523_v13  ;;  %v4471_v26 = vsel %vm816_vm1, %v4468_v56, %v4470_v11  ;;  %v4473_v12 = vsel %vm816_vm1, %v4470_v11, %v4472_v47  ;;  %v7351_v28 = vpop.f32.mrb[192].mxu0  ;;  %v10176_v56 = vld [vmem:[%s10441_s2] ss:$0 sm:$0xff] }
 0x26d   : > { %v10163_v62 = vadd.f32 %v7808_v44, %v4471_v26  ;;  %v10165_v39 = vadd.f32 %v7820_v50, %v4473_v12  ;;  %v4931_v46 = vrot.slane %v7351_v28, 2  ;;  %v10167_v22 = vpop.f32.mrb[193].mxu0 }
 0x26e   : > { %v10461_v60 = vrot.slane %v10167_v22, 2 }
 0x270   : > { %v4932_v17 = vsel %vm1625_vm2, %v10461_v60, %v4931_v46  ;;  %v7354_v63 = vpop.f32.mrb[194].mxu0 }
 0x271   : > { %v5075_v44 = vadd.f32 %v4932_v17, %v9976_v14  ;;  %v4935_v45 = vrot.slane %v7354_v63, 2  ;;  %v4653_v36 = vpop.f32.mrb[195].mxu0 }
 0x272   : > { %v4933_v47 = vrot.slane %v4653_v36, 2 }
 0x273   : > { %v5130_v2 = vadd.f32 %v10176_v56, %v5075_v44 }
 0x274   : > { %v4934_v15 = vsel %vm1625_vm2, %v4931_v46, %v4933_v47  ;;  %v4936_v11 = vsel %vm1625_vm2, %v4933_v47, %v4935_v45  ;;  %v7357_v38 = vpop.f32.mrb[196].mxu0 }
 0x275   : > { %v5076_v13 = vadd.f32 %v4934_v15, %v9982_v3  ;;  %v5077_v50 = vadd.f32 %v4936_v11, %v9984_v1  ;;  %v4939_v26 = vrot.slane %v7357_v38, 2  ;;  %v4663_v12 = vpop.f32.mrb[197].mxu0  ;;  %v5178_v28 = vmax.f32 %v5130_v2, 0.0 }
 0x276   : > { %v4937_v60 = vrot.slane %v4663_v12, 2 }
 0x277   : > { %v5131_v14 = vadd.f32 %v10176_v56, %v5076_v13  ;;  %7453 = vmatprep.mubr.f32.mxu1 %v5178_v28  ;;  %v5132_v17 = vadd.f32 %v10176_v56, %v5077_v50 }
 0x278   : > { %v4938_v63 = vsel %vm1625_vm2, %v4935_v45, %v4937_v60  ;;  %v4940_v46 = vsel %vm1625_vm2, %v4937_v60, %v4939_v26  ;;  %v7360_v44 = vpop.f32.mrb[198].mxu0 }
 0x279   : > { %v5179_v36 = vmax.f32 %v5131_v14, 0.0  ;;  %v5078_v47 = vadd.f32 %v4938_v63, %v9990_v41  ;;  %v5079_v3 = vadd.f32 %v4940_v46, %v9992_v49  ;;  %v4943_v1 = vrot.slane %v7360_v44, 2  ;;  %v4673_v15 = vpop.f32.mrb[199].mxu0 }
 0x27a   : > { %v4941_v11 = vrot.slane %v4673_v15, 2  ;;  %v5180_v2 = vmax.f32 %v5132_v17, 0.0 }
 0x27b   : > { %7454 = vmatmul.mubr.f32.vlgmr.msra.gmra.mrb[96].mxu1 %v5179_v36  ;;  %v5133_v38 = vadd.f32 %v10176_v56, %v5078_v47  ;;  %v5134_v13 = vadd.f32 %v10176_v56, %v5079_v3 }
 0x27c   : > { %v4942_v50 = vsel %vm1625_vm2, %v4939_v26, %v4941_v11  ;;  %v4944_v45 = vsel %vm1625_vm2, %v4941_v11, %v4943_v1  ;;  %v7363_v60 = vpop.f32.mrb[200].mxu0  ;;  %7456 = vmatprep.mubr.f32.mxu1 %v5180_v2 }
 0x27d   : > { %v5080_v12 = vadd.f32 %v4942_v50, %v9998_v54  ;;  %v5081_v41 = vadd.f32 %v4944_v45, %v10000_v8  ;;  %v4947_v49 = vrot.slane %v7363_v60, 2  ;;  %v4683_v28 = vpop.f32.mrb[201].mxu0  ;;  %v5181_v14 = vmax.f32 %v5133_v38, 0.0 }
 0x27e   : > { %v4945_v63 = vrot.slane %v4683_v28, 2  ;;  %v5182_v17 = vmax.f32 %v5134_v13, 0.0 }
 0x27f   : > { %7457 = vmatmul.mubr.f32.gmra.mrb[98].mxu1 %v5181_v14  ;;  %v5135_v46 = vadd.f32 %v10176_v56, %v5080_v12  ;;  %v5136_v44 = vadd.f32 %v10176_v56, %v5081_v41 }
 0x280   : > { %v4946_v26 = vsel %vm1625_vm2, %v4943_v1, %v4945_v63  ;;  %v4948_v36 = vsel %vm1625_vm2, %v4945_v63, %v4947_v49  ;;  %v7366_v47 = vpop.f32.mrb[202].mxu0  ;;  %7459 = vmatprep.mubr.f32.mxu1 %v5182_v17 }
 0x281   : > { %v5082_v54 = vadd.f32 %v4946_v26, %v10006_v29  ;;  %v5083_v8 = vadd.f32 %v4948_v36, %v10008_v9  ;;  %v4951_v3 = vrot.slane %v7366_v47, 2  ;;  %v4693_v15 = vpop.f32.mrb[203].mxu0  ;;  %v5183_v11 = vmax.f32 %v5135_v46, 0.0 }
 0x282   : > { %v4949_v2 = vrot.slane %v4693_v15, 2  ;;  %v5184_v38 = vmax.f32 %v5136_v44, 0.0 }
 0x283   : > { %7460 = vmatmul.mubr.f32.gmra.mrb[100].mxu1 %v5183_v11  ;;  %v5137_v13 = vadd.f32 %v10176_v56, %v5082_v54  ;;  %v5138_v50 = vadd.f32 %v10176_v56, %v5083_v8 }
 0x284   : > { %v4950_v1 = vsel %vm1625_vm2, %v4947_v49, %v4949_v2  ;;  %v4952_v45 = vsel %vm1625_vm2, %v4949_v2, %v4951_v3  ;;  %v7369_v60 = vpop.f32.mrb[204].mxu0  ;;  %7462 = vmatprep.mubr.f32.mxu1 %v5184_v38 }
 0x285   : > { %v5084_v29 = vadd.f32 %v4950_v1, %v10014_v7  ;;  %v5085_v9 = vadd.f32 %v4952_v45, %v10016_v5  ;;  %v4955_v12 = vrot.slane %v7369_v60, 2  ;;  %v4703_v41 = vpop.f32.mrb[205].mxu0  ;;  %v5185_v28 = vmax.f32 %v5137_v13, 0.0 }
 0x286   : > { %v4953_v14 = vrot.slane %v4703_v41, 2  ;;  %v5186_v63 = vmax.f32 %v5138_v50, 0.0 }
 0x287   : > { %7463 = vmatmul.mubr.f32.gmra.mrb[102].mxu1 %v5185_v28  ;;  %v5139_v17 = vadd.f32 %v10176_v56, %v5084_v29  ;;  %v5140_v46 = vadd.f32 %v10176_v56, %v5085_v9 }
 0x288   : > { %v4954_v49 = vsel %vm1625_vm2, %v4951_v3, %v4953_v14  ;;  %v4956_v44 = vsel %vm1625_vm2, %v4953_v14, %v4955_v12  ;;  %v7372_v26 = vpop.f32.mrb[206].mxu0  ;;  %7465 = vmatprep.mubr.f32.mxu1 %v5186_v63 }
 0x289   : > { %v5086_v7 = vadd.f32 %v4954_v49, %v10022_v51  ;;  %v5087_v5 = vadd.f32 %v4956_v44, %v10024_v16  ;;  %v4959_v36 = vrot.slane %v7372_v26, 2  ;;  %v4713_v47 = vpop.f32.mrb[207].mxu0  ;;  %v5187_v54 = vmax.f32 %v5139_v17, 0.0 }
 0x28a   : > { %v4957_v8 = vrot.slane %v4713_v47, 2  ;;  %v5188_v15 = vmax.f32 %v5140_v46, 0.0 }
 0x28b   : > { %7466 = vmatmul.mubr.f32.gmra.mrb[104].mxu1 %v5187_v54  ;;  %v5141_v11 = vadd.f32 %v10176_v56, %v5086_v7  ;;  %v5142_v2 = vadd.f32 %v10176_v56, %v5087_v5 }
 0x28c   : > { %v4958_v3 = vsel %vm1625_vm2, %v4955_v12, %v4957_v8  ;;  %v4960_v38 = vsel %vm1625_vm2, %v4957_v8, %v4959_v36  ;;  %v7375_v13 = vpop.f32.mrb[208].mxu0  ;;  %7468 = vmatprep.mubr.f32.mxu1 %v5188_v15 }
 0x28d   : > { %v5088_v51 = vadd.f32 %v4958_v3, %v10030_v0  ;;  %v5089_v16 = vadd.f32 %v4960_v38, %v10032_v20  ;;  %v4963_v50 = vrot.slane %v7375_v13, 2  ;;  %v4723_v1 = vpop.f32.mrb[209].mxu0  ;;  %v5189_v45 = vmax.f32 %v5141_v11, 0.0 }
 0x28e   : > { %v4961_v60 = vrot.slane %v4723_v1, 2  ;;  %v5190_v29 = vmax.f32 %v5142_v2, 0.0 }
 0x28f   : > { %7469 = vmatmul.mubr.f32.gmra.mrb[106].mxu1 %v5189_v45  ;;  %v5143_v9 = vadd.f32 %v10176_v56, %v5088_v51  ;;  %v5144_v41 = vadd.f32 %v10176_v56, %v5089_v16 }
 0x290   : > { %v4962_v12 = vsel %vm1625_vm2, %v4959_v36, %v4961_v60  ;;  %v4964_v28 = vsel %vm1625_vm2, %v4961_v60, %v4963_v50  ;;  %v7378_v14 = vpop.f32.mrb[210].mxu0  ;;  %7471 = vmatprep.mubr.f32.mxu1 %v5190_v29 }
 0x291   : > { %v5090_v0 = vadd.f32 %v4962_v12, %v10038_v55  ;;  %v5091_v20 = vadd.f32 %v4964_v28, %v10040_v58  ;;  %v4967_v63 = vrot.slane %v7378_v14, 2  ;;  %v4733_v17 = vpop.f32.mrb[211].mxu0  ;;  %v5191_v46 = vmax.f32 %v5143_v9, 0.0 }
 0x292   : > { %v4965_v49 = vrot.slane %v4733_v17, 2  ;;  %v5192_v44 = vmax.f32 %v5144_v41, 0.0 }
 0x293   : > { %7472 = vmatmul.mubr.f32.gmra.mrb[108].mxu1 %v5191_v46  ;;  %v5145_v26 = vadd.f32 %v10176_v56, %v5090_v0  ;;  %v5146_v7 = vadd.f32 %v10176_v56, %v5091_v20 }
 0x294   : > { %v4966_v5 = vsel %vm1625_vm2, %v4963_v50, %v4965_v49  ;;  %v4968_v36 = vsel %vm1625_vm2, %v4965_v49, %v4967_v63  ;;  %v7381_v47 = vpop.f32.mrb[212].mxu0  ;;  %7474 = vmatprep.mubr.f32.mxu1 %v5192_v44 }
 0x295   : > { %v5092_v55 = vadd.f32 %v4966_v5, %v10046_v6  ;;  %v5093_v58 = vadd.f32 %v4968_v36, %v10048_v18  ;;  %v4971_v54 = vrot.slane %v7381_v47, 2  ;;  %v4743_v8 = vpop.f32.mrb[213].mxu0  ;;  %v5193_v15 = vmax.f32 %v5145_v26, 0.0 }
 0x296   : > { %v4969_v11 = vrot.slane %v4743_v8, 2  ;;  %v5194_v2 = vmax.f32 %v5146_v7, 0.0 }
 0x297   : > { %7475 = vmatmul.mubr.f32.gmra.mrb[110].mxu1 %v5193_v15  ;;  %v5147_v3 = vadd.f32 %v10176_v56, %v5092_v55  ;;  %v5148_v38 = vadd.f32 %v10176_v56, %v5093_v58 }
 0x298   : > { %v4970_v13 = vsel %vm1625_vm2, %v4967_v63, %v4969_v11  ;;  %v4972_v51 = vsel %vm1625_vm2, %v4969_v11, %v4971_v54  ;;  %v7384_v16 = vpop.f32.mrb[214].mxu0  ;;  %7477 = vmatprep.mubr.f32.mxu1 %v5194_v2 }
 0x299   : > { %v5094_v6 = vadd.f32 %v4970_v13, %v10054_v48  ;;  %v5095_v18 = vadd.f32 %v4972_v51, %v10056_v25  ;;  %v4975_v50 = vrot.slane %v7384_v16, 2  ;;  %v4753_v1 = vpop.f32.mrb[215].mxu0  ;;  %v5195_v45 = vmax.f32 %v5147_v3, 0.0 }
 0x29a   : > { %v4973_v60 = vrot.slane %v4753_v1, 2  ;;  %v5196_v29 = vmax.f32 %v5148_v38, 0.0 }
 0x29b   : > { %7478 = vmatmul.mubr.f32.gmra.mrb[112].mxu1 %v5195_v45  ;;  %v5149_v9 = vadd.f32 %v10176_v56, %v5094_v6  ;;  %v5150_v41 = vadd.f32 %v10176_v56, %v5095_v18 }
 0x29c   : > { %v4974_v12 = vsel %vm1625_vm2, %v4971_v54, %v4973_v60  ;;  %v4976_v28 = vsel %vm1625_vm2, %v4973_v60, %v4975_v50  ;;  %v7387_v14 = vpop.f32.mrb[216].mxu0  ;;  %7480 = vmatprep.mubr.f32.mxu1 %v5196_v29 }
 0x29d   : > { %v5096_v48 = vadd.f32 %v4974_v12, %v10062_v57  ;;  %v5097_v25 = vadd.f32 %v4976_v28, %v10064_v32  ;;  %v4979_v0 = vrot.slane %v7387_v14, 2  ;;  %v4763_v20 = vpop.f32.mrb[217].mxu0  ;;  %v5197_v63 = vmax.f32 %v5149_v9, 0.0 }
 0x29e   : > { %v4977_v17 = vrot.slane %v4763_v20, 2  ;;  %v5198_v46 = vmax.f32 %v5150_v41, 0.0 }
 0x29f   : > { %7481 = vmatmul.mubr.f32.gmra.mrb[114].mxu1 %v5197_v63  ;;  %v5151_v49 = vadd.f32 %v10176_v56, %v5096_v48  ;;  %v5152_v44 = vadd.f32 %v10176_v56, %v5097_v25 }
 0x2a0   : > { %v4978_v26 = vsel %vm1625_vm2, %v4975_v50, %v4977_v17  ;;  %v4980_v7 = vsel %vm1625_vm2, %v4977_v17, %v4979_v0  ;;  %v7390_v5 = vpop.f32.mrb[218].mxu0  ;;  %7483 = vmatprep.mubr.f32.mxu1 %v5198_v46 }
 0x2a1   : > { %v5098_v57 = vadd.f32 %v4978_v26, %v10070_v42  ;;  %v5099_v32 = vadd.f32 %v4980_v7, %v10072_v10  ;;  %v4983_v36 = vrot.slane %v7390_v5, 2  ;;  %v4773_v47 = vpop.f32.mrb[219].mxu0  ;;  %v5199_v55 = vmax.f32 %v5151_v49, 0.0 }
 0x2a2   : > { %v4981_v58 = vrot.slane %v4773_v47, 2  ;;  %v5200_v54 = vmax.f32 %v5152_v44, 0.0 }
 0x2a3   : > { %7484 = vmatmul.mubr.f32.gmra.mrb[116].mxu1 %v5199_v55  ;;  %v5153_v8 = vadd.f32 %v10176_v56, %v5098_v57  ;;  %v5154_v15 = vadd.f32 %v10176_v56, %v5099_v32 }
 0x2a4   : > { %v4982_v11 = vsel %vm1625_vm2, %v4979_v0, %v4981_v58  ;;  %v4984_v2 = vsel %vm1625_vm2, %v4981_v58, %v4983_v36  ;;  %v7393_v3 = vpop.f32.mrb[220].mxu0  ;;  %7486 = vmatprep.mubr.f32.mxu1 %v5200_v54 }
 0x2a5   : > { %v5100_v42 = vadd.f32 %v4982_v11, %v10078_v59  ;;  %v5101_v10 = vadd.f32 %v4984_v2, %v10080_v24  ;;  %v4987_v38 = vrot.slane %v7393_v3, 2  ;;  %v4783_v13 = vpop.f32.mrb[221].mxu0  ;;  %v5201_v51 = vmax.f32 %v5153_v8, 0.0 }
 0x2a6   : > { %v4985_v16 = vrot.slane %v4783_v13, 2  ;;  %v5202_v6 = vmax.f32 %v5154_v15, 0.0 }
 0x2a7   : > { %7487 = vmatmul.mubr.f32.gmra.mrb[118].mxu1 %v5201_v51  ;;  %v5155_v18 = vadd.f32 %v10176_v56, %v5100_v42  ;;  %v5156_v50 = vadd.f32 %v10176_v56, %v5101_v10 }
 0x2a8   : > { %v4986_v1 = vsel %vm1625_vm2, %v4983_v36, %v4985_v16  ;;  %v4988_v45 = vsel %vm1625_vm2, %v4985_v16, %v4987_v38  ;;  %v7396_v60 = vpop.f32.mrb[222].mxu0  ;;  %7489 = vmatprep.mubr.f32.mxu1 %v5202_v6 }
 0x2a9   : > { %v5102_v59 = vadd.f32 %v4986_v1, %v10086_v61  ;;  %v5103_v24 = vadd.f32 %v4988_v45, %v10088_v31  ;;  %v4991_v29 = vrot.slane %v7396_v60, 2  ;;  %v4793_v9 = vpop.f32.mrb[223].mxu0  ;;  %v5203_v41 = vmax.f32 %v5155_v18, 0.0 }
 0x2aa   : > { %v4989_v12 = vrot.slane %v4793_v9, 2  ;;  %v5204_v28 = vmax.f32 %v5156_v50, 0.0 }
 0x2ab   : > { %7490 = vmatmul.mubr.f32.gmra.mrb[120].mxu1 %v5203_v41  ;;  %v5157_v14 = vadd.f32 %v10176_v56, %v5102_v59  ;;  %v5158_v48 = vadd.f32 %v10176_v56, %v5103_v24 }
 0x2ac   : > { %v4990_v25 = vsel %vm1625_vm2, %v4987_v38, %v4989_v12  ;;  %v4992_v0 = vsel %vm1625_vm2, %v4989_v12, %v4991_v29  ;;  %v7399_v20 = vpop.f32.mrb[224].mxu0  ;;  %7492 = vmatprep.mubr.f32.mxu1 %v5204_v28 }
 0x2ad   : > { %v5104_v61 = vadd.f32 %v4990_v25, %v10094_v23  ;;  %v5105_v31 = vadd.f32 %v4992_v0, %v10096_v40  ;;  %v4995_v63 = vrot.slane %v7399_v20, 2  ;;  %v4803_v17 = vpop.f32.mrb[225].mxu0  ;;  %v5205_v46 = vmax.f32 %v5157_v14, 0.0 }
 0x2ae   : > { %v4993_v49 = vrot.slane %v4803_v17, 2  ;;  %v5206_v44 = vmax.f32 %v5158_v48, 0.0  ;;  %v10593_v48 = vld [vmem:[#allocation16_spill] sm:$0xff] }
 0x2af   : > { %7493 = vmatmul.mubr.f32.gmra.mrb[122].mxu1 %v5205_v46  ;;  %v5159_v26 = vadd.f32 %v10176_v56, %v5104_v61  ;;  %v5160_v7 = vadd.f32 %v10176_v56, %v5105_v31 }
 0x2b0   : > { %v4994_v5 = vsel %vm1625_vm2, %v4991_v29, %v4993_v49  ;;  %v4996_v57 = vsel %vm1625_vm2, %v4993_v49, %v4995_v63  ;;  %v7402_v32 = vpop.f32.mrb[226].mxu0  ;;  %7495 = vmatprep.mubr.f32.mxu1 %v5206_v44 }
 0x2b1   : > { %v5106_v23 = vadd.f32 %v4994_v5, %v10102_v30  ;;  %v5107_v40 = vadd.f32 %v4996_v57, %v10104_v27  ;;  %v4999_v36 = vrot.slane %v7402_v32, 2  ;;  %v4813_v47 = vpop.f32.mrb[227].mxu0  ;;  %v5207_v55 = vmax.f32 %v5159_v26, 0.0  ;;  %v10594_v26 = vld [vmem:[#allocation17_spill] sm:$0xff] }
 0x2b2   : > { %v4997_v58 = vrot.slane %v4813_v47, 2  ;;  %v5208_v54 = vmax.f32 %v5160_v7, 0.0 }
 0x2b3   : > { %7496 = vmatmul.mubr.f32.gmra.mrb[124].mxu1 %v5207_v55  ;;  %v5161_v8 = vadd.f32 %v10176_v56, %v5106_v23  ;;  %v5162_v15 = vadd.f32 %v10176_v56, %v5107_v40 }
 0x2b4   : > { %v4998_v11 = vsel %vm1625_vm2, %v4995_v63, %v4997_v58  ;;  %v5000_v2 = vsel %vm1625_vm2, %v4997_v58, %v4999_v36  ;;  %v7405_v3 = vpop.f32.mrb[228].mxu0  ;;  %7498 = vmatprep.mubr.f32.mxu1 %v5208_v54 }
 0x2b5   : > { %v5108_v30 = vadd.f32 %v4998_v11, %v10110_v21  ;;  %v5109_v27 = vadd.f32 %v5000_v2, %v10112_v33  ;;  %v5003_v42 = vrot.slane %v7405_v3, 2  ;;  %v4823_v10 = vpop.f32.mrb[229].mxu0  ;;  %v5209_v38 = vmax.f32 %v5161_v8, 0.0  ;;  %v10595_v8 = vld [vmem:[#allocation18_spill] sm:$0xff] }
 0x2b6   : > { %v5001_v13 = vrot.slane %v4823_v10, 2  ;;  %v5210_v51 = vmax.f32 %v5162_v15, 0.0 }
 0x2b7   : > { %7499 = vmatmul.mubr.f32.gmra.mrb[126].mxu1 %v5209_v38  ;;  %v5163_v16 = vadd.f32 %v10176_v56, %v5108_v30  ;;  %v5164_v6 = vadd.f32 %v10176_v56, %v5109_v27 }
 0x2b8   : > { %v5002_v18 = vsel %vm1625_vm2, %v4999_v36, %v5001_v13  ;;  %v5004_v50 = vsel %vm1625_vm2, %v5001_v13, %v5003_v42  ;;  %v7408_v1 = vpop.f32.mrb[230].mxu0  ;;  %7501 = vmatprep.mubr.f32.mxu1 %v5210_v51 }
 0x2b9   : > { %v5110_v21 = vadd.f32 %v5002_v18, %v10118_v34  ;;  %v5111_v33 = vadd.f32 %v5004_v50, %v10120_v43  ;;  %v5007_v45 = vrot.slane %v7408_v1, 2  ;;  %v4833_v60 = vpop.f32.mrb[231].mxu0  ;;  %v5211_v59 = vmax.f32 %v5163_v16, 0.0 }
 0x2ba   : > { %v5005_v24 = vrot.slane %v4833_v60, 2  ;;  %v5212_v29 = vmax.f32 %v5164_v6, 0.0 }
 0x2bb   : > { %7502 = vmatmul.mubr.f32.gmra.mrb[128].mxu1 %v5211_v59  ;;  %v5165_v9 = vadd.f32 %v10176_v56, %v5110_v21  ;;  %v5166_v41 = vadd.f32 %v10176_v56, %v5111_v33  ;;  %v10596_v33 = vrot.slane %v10167_v22, 2 }
 0x2bc   : > { %v5006_v12 = vsel %vm1625_vm2, %v5003_v42, %v5005_v24  ;;  %v5008_v28 = vsel %vm1625_vm2, %v5005_v24, %v5007_v45  ;;  %v7411_v14 = vpop.f32.mrb[232].mxu0  ;;  %7504 = vmatprep.mubr.f32.mxu1 %v5212_v29 }
 0x2bd   : > { %v5112_v34 = vadd.f32 %v5006_v12, %v10126_v37  ;;  %v5113_v43 = vadd.f32 %v5008_v28, %v10593_v48  ;;  %v5011_v25 = vrot.slane %v7411_v14, 2  ;;  %v4843_v0 = vpop.f32.mrb[233].mxu0  ;;  %v5213_v20 = vmax.f32 %v5165_v9, 0.0 }
 0x2be   : > { %v5009_v61 = vrot.slane %v4843_v0, 2  ;;  %v5214_v31 = vmax.f32 %v5166_v41, 0.0 }
 0x2bf   : > { %7505 = vmatmul.mubr.f32.gmra.mrb[130].mxu1 %v5213_v20  ;;  %v5167_v63 = vadd.f32 %v10176_v56, %v5112_v34  ;;  %v5168_v17 = vadd.f32 %v10176_v56, %v5113_v43 }
 0x2c0   : > { %v5010_v46 = vsel %vm1625_vm2, %v5007_v45, %v5009_v61  ;;  %v5012_v49 = vsel %vm1625_vm2, %v5009_v61, %v5011_v25  ;;  %v7414_v44 = vpop.f32.mrb[234].mxu0  ;;  %7507 = vmatprep.mubr.f32.mxu1 %v5214_v31 }
 0x2c1   : > { %v5114_v37 = vadd.f32 %v5010_v46, %v10134_v19  ;;  %v5115_v7 = vadd.f32 %v5012_v49, %v10594_v26  ;;  %v5015_v5 = vrot.slane %v7414_v44, 2  ;;  %v4853_v57 = vpop.f32.mrb[235].mxu0  ;;  %v5215_v32 = vmax.f32 %v5167_v63, 0.0 }
 0x2c2   : > { %v5013_v23 = vrot.slane %v4853_v57, 2  ;;  %v5216_v40 = vmax.f32 %v5168_v17, 0.0 }
 0x2c3   : > { %7508 = vmatmul.mubr.f32.gmra.mrb[132].mxu1 %v5215_v32  ;;  %v5169_v36 = vadd.f32 %v10176_v56, %v5114_v37  ;;  %v5170_v47 = vadd.f32 %v10176_v56, %v5115_v7 }
 0x2c4   : > { %v5014_v55 = vsel %vm1625_vm2, %v5011_v25, %v5013_v23  ;;  %v5016_v58 = vsel %vm1625_vm2, %v5013_v23, %v5015_v5  ;;  %v7417_v54 = vpop.f32.mrb[236].mxu0  ;;  %7510 = vmatprep.mubr.f32.mxu1 %v5216_v40 }
 0x2c5   : > { %v5116_v19 = vadd.f32 %v5014_v55, %v10142_v4  ;;  %v5117_v15 = vadd.f32 %v5016_v58, %v10595_v8  ;;  %v5019_v11 = vrot.slane %v7417_v54, 2  ;;  %v4863_v2 = vpop.f32.mrb[237].mxu0  ;;  %v5217_v3 = vmax.f32 %v5169_v36, 0.0 }
 0x2c6   : > { %v5017_v30 = vrot.slane %v4863_v2, 2  ;;  %v5218_v27 = vmax.f32 %v5170_v47, 0.0 }
 0x2c7   : > { %7511 = vmatmul.mubr.f32.gmra.mrb[134].mxu1 %v5217_v3  ;;  %v5171_v42 = vadd.f32 %v10176_v56, %v5116_v19  ;;  %v5172_v10 = vadd.f32 %v10176_v56, %v5117_v15 }
 0x2c8   : > { %v5018_v38 = vsel %vm1625_vm2, %v5015_v5, %v5017_v30  ;;  %v5020_v13 = vsel %vm1625_vm2, %v5017_v30, %v5019_v11  ;;  %v7420_v51 = vpop.f32.mrb[238].mxu0  ;;  %7513 = vmatprep.mubr.f32.mxu1 %v5218_v27 }
 0x2c9   : > { %v5118_v4 = vadd.f32 %v5018_v38, %v10150_v53  ;;  %v5119_v16 = vadd.f32 %v5020_v13, %v10152_v35  ;;  %v5023_v6 = vrot.slane %v7420_v51, 2  ;;  %v4873_v18 = vpop.f32.mrb[239].mxu0  ;;  %v5219_v50 = vmax.f32 %v5171_v42, 0.0 }
 0x2ca   : > { %v5021_v1 = vrot.slane %v4873_v18, 2  ;;  %v5220_v21 = vmax.f32 %v5172_v10, 0.0 }
 0x2cb   : > { %v5074_v45 = vsel %vm1625_vm2, %v5023_v6, %v10596_v33  ;;  %7514 = vmatmul.mubr.f32.gmra.mrb[136].mxu1 %v5219_v50  ;;  %v5173_v60 = vadd.f32 %v10176_v56, %v5118_v4  ;;  %v5174_v59 = vadd.f32 %v10176_v56, %v5119_v16 }
 0x2cc   : > { %v5122_v24 = vadd.f32 %v5074_v45, %v10159_v52  ;;  %v5022_v53 = vsel %vm1625_vm2, %v5019_v11, %v5021_v1  ;;  %v5024_v35 = vsel %vm1625_vm2, %v5021_v1, %v5023_v6  ;;  %7516 = vmatprep.mubr.f32.mxu1 %v5220_v21 }
 0x2cd   : > { %v5120_v29 = vadd.f32 %v5022_v53, %v10163_v62  ;;  %v5121_v9 = vadd.f32 %v5024_v35, %v10165_v39  ;;  %v5221_v22 = vmax.f32 %v5173_v60, 0.0  ;;  %v5222_v41 = vmax.f32 %v5174_v59, 0.0  ;;  %v10327_v62 = vld [vmem:[%s10443_s4] ss:$0 sm:$0xff] }
 0x2ce   : > { %v5177_v34 = vadd.f32 %v10176_v56, %v5122_v24 }
 0x2cf   : > { %7517 = vmatmul.mubr.f32.gmra.mrb[138].mxu1 %v5221_v22  ;;  %v5175_v12 = vadd.f32 %v10176_v56, %v5120_v29  ;;  %v5176_v28 = vadd.f32 %v10176_v56, %v5121_v9 }
 0x2d0   : > { %7519 = vmatprep.mubr.f32.mxu1 %v5222_v41  ;;  %v5225_v48 = vmax.f32 %v5177_v34, 0.0 }
 0x2d1   : > { %v5223_v14 = vmax.f32 %v5175_v12, 0.0  ;;  %v5224_v52 = vmax.f32 %v5176_v28, 0.0 }
 0x2d3   : > { %7520 = vmatmul.mubr.f32.gmra.mrb[140].mxu1 %v5223_v14 }
 0x2d4   : > { %7522 = vmatprep.mubr.f32.mxu1 %v5224_v52 }
 0x2d7   : > { %7523 = vmatmul.mubr.f32.gmra.mrb[142].mxu1 %v5225_v48 }
 0x34e   : > { %v7455_v39 = vpop.f32.mrb[96].mxu1 }
 0x34f   : > { %v5321_v56 = vadd.f32 %v7455_v39, %v10327_v62  ;;  %v5315_v43 = vpop.f32.mrb[97].mxu1 }
 0x350   : > { %v5316_v25 = vadd.f32 %v10327_v62, %v5315_v43 }
 0x351   : > { %5555 = vst [vmem:[%s10332_s9 + $0x8] sm:$0xff] %v5321_v56 }
 0x352   : > { %5554 = vst [vmem:[%s10332_s9] sm:$0xff] %v5316_v25  ;;  %v7458_v0 = vpop.f32.mrb[98].mxu1 }
 0x353   : > { %v5331_v20 = vadd.f32 %v7458_v0, %v10327_v62  ;;  %v5325_v61 = vpop.f32.mrb[99].mxu1 }
 0x354   : > { %v5326_v31 = vadd.f32 %v10327_v62, %v5325_v61 }
 0x355   : > { %5557 = vst [vmem:[%s10332_s9 + $0x18] sm:$0xff] %v5331_v20 }
 0x356   : > { %5556 = vst [vmem:[%s10332_s9 + $0x10] sm:$0xff] %v5326_v31  ;;  %v7461_v63 = vpop.f32.mrb[100].mxu1 }
 0x357   : > { %v5341_v17 = vadd.f32 %v7461_v63, %v10327_v62  ;;  %v5335_v46 = vpop.f32.mrb[101].mxu1 }
 0x358   : > { %v5336_v49 = vadd.f32 %v10327_v62, %v5335_v46 }
 0x359   : > { %5559 = vst [vmem:[%s10332_s9 + $0x28] sm:$0xff] %v5341_v17 }
 0x35a   : > { %5558 = vst [vmem:[%s10332_s9 + $0x20] sm:$0xff] %v5336_v49  ;;  %v7464_v44 = vpop.f32.mrb[102].mxu1 }
 0x35b   : > { %v5351_v37 = vadd.f32 %v7464_v44, %v10327_v62  ;;  %v5345_v26 = vpop.f32.mrb[103].mxu1 }
 0x35c   : > { %v5346_v7 = vadd.f32 %v10327_v62, %v5345_v26 }
 0x35d   : > { %5561 = vst [vmem:[%s10332_s9 + $0x38] sm:$0xff] %v5351_v37 }
 0x35e   : > { %5560 = vst [vmem:[%s10332_s9 + $0x30] sm:$0xff] %v5346_v7  ;;  %v7467_v5 = vpop.f32.mrb[104].mxu1 }
 0x35f   : > { %v5361_v57 = vadd.f32 %v7467_v5, %v10327_v62  ;;  %v5355_v32 = vpop.f32.mrb[105].mxu1 }
 0x360   : > { %v5356_v23 = vadd.f32 %v10327_v62, %v5355_v32 }
 0x361   : > { %5563 = vst [vmem:[%s10332_s9 + $0x48] sm:$0xff] %v5361_v57 }
 0x362   : > { %5562 = vst [vmem:[%s10332_s9 + $0x40] sm:$0xff] %v5356_v23  ;;  %v7470_v40 = vpop.f32.mrb[106].mxu1 }
 0x363   : > { %v5371_v36 = vadd.f32 %v7470_v40, %v10327_v62  ;;  %v5365_v47 = vpop.f32.mrb[107].mxu1 }
 0x364   : > { %v5366_v55 = vadd.f32 %v10327_v62, %v5365_v47 }
 0x365   : > { %5565 = vst [vmem:[%s10332_s9 + $0x58] sm:$0xff] %v5371_v36 }
 0x366   : > { %5564 = vst [vmem:[%s10332_s9 + $0x50] sm:$0xff] %v5366_v55  ;;  %v7473_v58 = vpop.f32.mrb[108].mxu1 }
 0x367   : > { %v5381_v54 = vadd.f32 %v7473_v58, %v10327_v62  ;;  %v5375_v19 = vpop.f32.mrb[109].mxu1 }
 0x368   : > { %v5376_v8 = vadd.f32 %v10327_v62, %v5375_v19 }
 0x369   : > { %5567 = vst [vmem:[%s10332_s9 + $0x68] sm:$0xff] %v5381_v54 }
 0x36a   : > { %5566 = vst [vmem:[%s10332_s9 + $0x60] sm:$0xff] %v5376_v8  ;;  %v7476_v15 = vpop.f32.mrb[110].mxu1 }
 0x36b   : > { %v5391_v11 = vadd.f32 %v7476_v15, %v10327_v62  ;;  %v5385_v2 = vpop.f32.mrb[111].mxu1 }
 0x36c   : > { %v5386_v3 = vadd.f32 %v10327_v62, %v5385_v2 }
 0x36d   : > { %5569 = vst [vmem:[%s10332_s9 + $0x78] sm:$0xff] %v5391_v11 }
 0x36e   : > { %5568 = vst [vmem:[%s10332_s9 + $0x70] sm:$0xff] %v5386_v3  ;;  %v7479_v30 = vpop.f32.mrb[112].mxu1 }
 0x36f   : > { %v5401_v27 = vadd.f32 %v7479_v30, %v10327_v62  ;;  %v5395_v42 = vpop.f32.mrb[113].mxu1 }
 0x370   : > { %v5396_v10 = vadd.f32 %v10327_v62, %v5395_v42 }
 0x371   : > { %5571 = vst [vmem:[%s10332_s9 + $0x88] sm:$0xff] %v5401_v27 }
 0x372   : > { %5570 = vst [vmem:[%s10332_s9 + $0x80] sm:$0xff] %v5396_v10  ;;  %v7482_v38 = vpop.f32.mrb[114].mxu1 }
 0x373   : > { %v5411_v13 = vadd.f32 %v7482_v38, %v10327_v62  ;;  %v5405_v51 = vpop.f32.mrb[115].mxu1 }
 0x374   : > { %v5406_v4 = vadd.f32 %v10327_v62, %v5405_v51 }
 0x375   : > { %5573 = vst [vmem:[%s10332_s9 + $0x98] sm:$0xff] %v5411_v13 }
 0x376   : > { %5572 = vst [vmem:[%s10332_s9 + $0x90] sm:$0xff] %v5406_v4  ;;  %v7485_v16 = vpop.f32.mrb[116].mxu1 }
 0x377   : > { %v5421_v6 = vadd.f32 %v7485_v16, %v10327_v62  ;;  %v5415_v18 = vpop.f32.mrb[117].mxu1 }
 0x378   : > { %v5416_v50 = vadd.f32 %v10327_v62, %v5415_v18 }
 0x379   : > { %5575 = vst [vmem:[%s10332_s9 + $0xa8] sm:$0xff] %v5421_v6 }
 0x37a   : > { %5574 = vst [vmem:[%s10332_s9 + $0xa0] sm:$0xff] %v5416_v50  ;;  %v7488_v1 = vpop.f32.mrb[118].mxu1 }
 0x37b   : > { %v5431_v21 = vadd.f32 %v7488_v1, %v10327_v62  ;;  %v5425_v33 = vpop.f32.mrb[119].mxu1 }
 0x37c   : > { %v5426_v45 = vadd.f32 %v10327_v62, %v5425_v33 }
 0x37d   : > { %5577 = vst [vmem:[%s10332_s9 + $0xb8] sm:$0xff] %v5431_v21 }
 0x37e   : > { %5576 = vst [vmem:[%s10332_s9 + $0xb0] sm:$0xff] %v5426_v45  ;;  %v7491_v60 = vpop.f32.mrb[120].mxu1 }
 0x37f   : > { %v5441_v59 = vadd.f32 %v7491_v60, %v10327_v62  ;;  %v5435_v24 = vpop.f32.mrb[121].mxu1 }
 0x380   : > { %v5436_v53 = vadd.f32 %v10327_v62, %v5435_v24 }
 0x381   : > { %5579 = vst [vmem:[%s10332_s9 + $0xc8] sm:$0xff] %v5441_v59 }
 0x382   : > { %5578 = vst [vmem:[%s10332_s9 + $0xc0] sm:$0xff] %v5436_v53  ;;  %v7494_v35 = vpop.f32.mrb[122].mxu1 }
 0x383   : > { %v5451_v29 = vadd.f32 %v7494_v35, %v10327_v62  ;;  %v5445_v9 = vpop.f32.mrb[123].mxu1 }
 0x384   : > { %v5446_v22 = vadd.f32 %v10327_v62, %v5445_v9 }
 0x385   : > { %5581 = vst [vmem:[%s10332_s9 + $0xd8] sm:$0xff] %v5451_v29 }
 0x386   : > { %5580 = vst [vmem:[%s10332_s9 + $0xd0] sm:$0xff] %v5446_v22  ;;  %v7497_v41 = vpop.f32.mrb[124].mxu1 }
 0x387   : > { %v5461_v12 = vadd.f32 %v7497_v41, %v10327_v62  ;;  %v5455_v28 = vpop.f32.mrb[125].mxu1 }
 0x388   : > { %v5456_v14 = vadd.f32 %v10327_v62, %v5455_v28 }
 0x389   : > { %5583 = vst [vmem:[%s10332_s9 + $0xe8] sm:$0xff] %v5461_v12 }
 0x38a   : > { %5582 = vst [vmem:[%s10332_s9 + $0xe0] sm:$0xff] %v5456_v14  ;;  %v7500_v52 = vpop.f32.mrb[126].mxu1 }
 0x38b   : > { %v5471_v34 = vadd.f32 %v7500_v52, %v10327_v62  ;;  %v5465_v48 = vpop.f32.mrb[127].mxu1 }
 0x38c   : > { %v5466_v39 = vadd.f32 %v10327_v62, %v5465_v48 }
 0x38d   : > { %5585 = vst [vmem:[%s10332_s9 + $0xf8] sm:$0xff] %v5471_v34 }
 0x38e   : > { %5584 = vst [vmem:[%s10332_s9 + $0xf0] sm:$0xff] %v5466_v39  ;;  %v7503_v56 = vpop.f32.mrb[128].mxu1 }
 0x38f   : > { %v5481_v43 = vadd.f32 %v7503_v56, %v10327_v62  ;;  %v5475_v25 = vpop.f32.mrb[129].mxu1 }
 0x390   : > { %v5476_v0 = vadd.f32 %v10327_v62, %v5475_v25 }
 0x391   : > { %5587 = vst [vmem:[%s10332_s9 + $0x108] sm:$0xff] %v5481_v43 }
 0x392   : > { %5586 = vst [vmem:[%s10332_s9 + $0x100] sm:$0xff] %v5476_v0  ;;  %v7506_v20 = vpop.f32.mrb[130].mxu1 }
 0x393   : > { %v5491_v61 = vadd.f32 %v7506_v20, %v10327_v62  ;;  %v5485_v31 = vpop.f32.mrb[131].mxu1 }
 0x394   : > { %v5486_v63 = vadd.f32 %v10327_v62, %v5485_v31 }
 0x395   : > { %5589 = vst [vmem:[%s10332_s9 + $0x118] sm:$0xff] %v5491_v61 }
 0x396   : > { %5588 = vst [vmem:[%s10332_s9 + $0x110] sm:$0xff] %v5486_v63  ;;  %v7509_v17 = vpop.f32.mrb[132].mxu1 }
 0x397   : > { %v5501_v46 = vadd.f32 %v7509_v17, %v10327_v62  ;;  %v5495_v49 = vpop.f32.mrb[133].mxu1 }
 0x398   : > { %v5496_v44 = vadd.f32 %v10327_v62, %v5495_v49 }
 0x399   : > { %5591 = vst [vmem:[%s10332_s9 + $0x128] sm:$0xff] %v5501_v46 }
 0x39a   : > { %5590 = vst [vmem:[%s10332_s9 + $0x120] sm:$0xff] %v5496_v44  ;;  %v7512_v37 = vpop.f32.mrb[134].mxu1 }
 0x39b   : > { %v5511_v26 = vadd.f32 %v7512_v37, %v10327_v62  ;;  %v5505_v7 = vpop.f32.mrb[135].mxu1 }
 0x39c   : > { %v5506_v5 = vadd.f32 %v10327_v62, %v5505_v7 }
 0x39d   : > { %5593 = vst [vmem:[%s10332_s9 + $0x138] sm:$0xff] %v5511_v26 }
 0x39e   : > { %5592 = vst [vmem:[%s10332_s9 + $0x130] sm:$0xff] %v5506_v5  ;;  %v7515_v57 = vpop.f32.mrb[136].mxu1 }
 0x39f   : > { %v5521_v32 = vadd.f32 %v7515_v57, %v10327_v62  ;;  %v5515_v23 = vpop.f32.mrb[137].mxu1 }
 0x3a0   : > { %v5516_v40 = vadd.f32 %v10327_v62, %v5515_v23 }
 0x3a1   : > { %5595 = vst [vmem:[%s10332_s9 + $0x148] sm:$0xff] %v5521_v32 }
 0x3a2   : > { %5594 = vst [vmem:[%s10332_s9 + $0x140] sm:$0xff] %v5516_v40  ;;  %v7518_v36 = vpop.f32.mrb[138].mxu1 }
 0x3a3   : > { %v5531_v47 = vadd.f32 %v7518_v36, %v10327_v62  ;;  %v5525_v55 = vpop.f32.mrb[139].mxu1 }
 0x3a4   : > { %v5526_v58 = vadd.f32 %v10327_v62, %v5525_v55 }
 0x3a5   : > { %5597 = vst [vmem:[%s10332_s9 + $0x158] sm:$0xff] %v5531_v47 }
 0x3a6   : > { %5596 = vst [vmem:[%s10332_s9 + $0x150] sm:$0xff] %v5526_v58  ;;  %v7521_v54 = vpop.f32.mrb[140].mxu1 }
 0x3a7   : > { %v5541_v19 = vadd.f32 %v7521_v54, %v10327_v62  ;;  %v5535_v8 = vpop.f32.mrb[141].mxu1 }
 0x3a8   : > { %v5536_v15 = vadd.f32 %v10327_v62, %v5535_v8 }
 0x3a9   : > { %5599 = vst [vmem:[%s10332_s9 + $0x168] sm:$0xff] %v5541_v19 }
 0x3aa   : > { %5598 = vst [vmem:[%s10332_s9 + $0x160] sm:$0xff] %v5536_v15  ;;  %v7524_v11 = vpop.f32.mrb[142].mxu1 }
 0x3ab   : > { %v5551_v2 = vadd.f32 %v7524_v11, %v10327_v62  ;;  %v5545_v3 = vpop.f32.mrb[143].mxu1 }
 0x3ac   : > { %v5546_v30 = vadd.f32 %v10327_v62, %v5545_v3 }
 0x3ad   : > { %5601 = vst [vmem:[%s10332_s9 + $0x178] sm:$0xff] %v5551_v2 }
 0x3ae   : > { %5600 = vst [vmem:[%s10332_s9 + $0x170] sm:$0xff] %v5546_v30 }
 0x3af PF: > { %s15_s20 = sadd.s32 1, %s7965_s20   ;;  %s10597_s18 = smov %s7961_s19 }
 0x3b0   : > { %p12_p5 = scmp.ge.s32.totalorder %s15_s20, 4   ;;  %s10598_s19 = smov %s10600_s21 }
 0x3b2   :  { %14 = sbr.rel (!%p12_p5) target bundleno = 2 (0x2), region = 78 }

</bundles_post_ra>
